<compile_context>
chip_gen: v5e
topology: v5e:2x2
jax: 0.10.0
libtpu: 0.0.40
codegen_flags: <defaults>
</compile_context>

<pallas_src>
import functools

import jax
import jax.numpy as jnp
from jax.experimental import pallas as pl
from jax.experimental.pallas import tpu as pltpu


# ----------------------------------------------------------------------------
# Pallas kernel 1: whole ChebNet (all ChebConv K=2 layers + ReLU) in one call.
#   per layer: h = relu( h @ W0 + (L_hat @ h) @ W1 + b )
# ----------------------------------------------------------------------------
def _make_chebnet_kernel(num_layers):
    def kernel(lhat_ref, x_ref, *refs):
        o_ref = refs[-1]
        lhat = lhat_ref[...]
        h = x_ref[...]
        for l in range(num_layers):
            w0 = refs[3 * l][...]
            w1 = refs[3 * l + 1][...]
            b = refs[3 * l + 2][...]
            tx1 = jnp.dot(lhat, h, preferred_element_type=jnp.float32)
            h = jnp.maximum(
                jnp.dot(h, w0, preferred_element_type=jnp.float32)
                + jnp.dot(tx1, w1, preferred_element_type=jnp.float32)
                + b,
                0.0)
        o_ref[...] = h
    return kernel


def chebnet_forward(x, lhat, layers):
    """All ChebConv(K=2)+ReLU layers fused into a single pallas_call."""
    num_layers = len(layers)
    n = x.shape[0]
    f_out = layers[-1][0].shape[1]
    vmem = pl.BlockSpec(memory_space=pltpu.MemorySpace.VMEM)
    flat = []
    for (w0, w1, b) in layers:
        flat += [w0, w1, b.reshape(1, -1)]
    return pl.pallas_call(
        _make_chebnet_kernel(num_layers),
        out_shape=jax.ShapeDtypeStruct((n, f_out), jnp.float32),
        in_specs=[vmem] * (2 + 3 * num_layers),
        out_specs=vmem,
    )(lhat, x, *flat)


# ----------------------------------------------------------------------------
# Pallas kernel 2: fused M-ALSTM-S.  grid=(3,) over the three scales.
#   For the scale at grid index s with window start start_t = T_MAX - seq_len:
#     - run all LSTM layers over t = 0..T_MAX-1 (unrolled), re-zeroing (h, c)
#       at t == start_t (PyTorch gate order [i, f, g, o]);
#     - attention logits masked to t >= start_t, softmax over time, context
#       accumulated as (B, H) running sums (no (T, B, H) temporaries);
#     - final FC -> (B, 1) written to o_ref block s.
# ----------------------------------------------------------------------------
def _make_fused_malstm_kernel(num_layers, hidden, t_max):
    def kernel(start_ref, x_ref, *refs):
        layer_refs = refs[:3 * num_layers]
        wa_ref, ba_ref, wf_ref, bf_ref, o_ref = refs[3 * num_layers:]

        s = pl.program_id(0)
        start_t = start_ref[s]                      # first valid timestep (SMEM)

        x2d = x_ref[...]                            # (T*B, D), time-major rows
        bsz = x2d.shape[0] // t_max
        h4 = 4 * hidden

        wihs = [layer_refs[3 * l][0] for l in range(num_layers)]      # (din_l, 4H)
        whhs = [layer_refs[3 * l + 1][0] for l in range(num_layers)]  # (H, 4H)
        bs = [layer_refs[3 * l + 2][0] for l in range(num_layers)]    # (1, 4H)
        wa = wa_ref[0]                              # (1, H)
        ba = ba_ref[0]                              # (1, 1)
        wf = wf_ref[0]                              # (H, 1)
        bf = bf_ref[0]                              # (1, 1)

        # Hoist the layer-0 input projection out of the recurrence: one batched
        # matmul over all timesteps instead of one per sequential step.
        xw0 = jnp.dot(x2d, wihs[0], preferred_element_type=jnp.float32) + bs[0]

        hs = [jnp.zeros((bsz, hidden), jnp.float32) for _ in range(num_layers)]
        cs = [jnp.zeros((bsz, hidden), jnp.float32) for _ in range(num_layers)]
        h_seq = []
        logits = []
        for t in range(t_max):
            # re-zero recurrent state at the start of this scale's window
            is_start = t == start_t
            hs = [jnp.where(is_start, 0.0, h) for h in hs]
            cs = [jnp.where(is_start, 0.0, c) for c in cs]
            inp = None
            for l in range(num_layers):
                if l == 0:
                    pre = xw0[t * bsz:(t + 1) * bsz, :]               # (B, 4H)
                else:
                    pre = jnp.dot(inp, wihs[l],
                                  preferred_element_type=jnp.float32) + bs[l]
                gates = pre + jnp.dot(hs[l], whhs[l],
                                      preferred_element_type=jnp.float32)
                i = jax.nn.sigmoid(gates[:, 0 * hidden:1 * hidden])
                f = jax.nn.sigmoid(gates[:, 1 * hidden:2 * hidden])
                g = jnp.tanh(gates[:, 2 * hidden:3 * hidden])
                o = jax.nn.sigmoid(gates[:, 3 * hidden:4 * hidden])
                cs[l] = f * cs[l] + i * g
                hs[l] = o * jnp.tanh(cs[l])
                inp = hs[l]
            h_t = hs[-1]
            h_seq.append(h_t)
            lg = jnp.sum(h_t * wa, axis=-1, keepdims=True) + ba       # (B, 1)
            logits.append(jnp.where(t >= start_t, lg, -1e30))

        # masked softmax over time + context accumulation, all (B, *) values
        m = functools.reduce(jnp.maximum, logits)                     # (B, 1)
        num = jnp.zeros((bsz, hidden), jnp.float32)
        den = jnp.zeros((bsz, 1), jnp.float32)
        for t in range(t_max):
            e = jnp.where(t >= start_t, jnp.exp(logits[t] - m), 0.0)  # (B, 1)
            num = num + e * h_seq[t]
            den = den + e
        ctx = num * pl.reciprocal(den, approx=True)                   # (B, H)
        out = jnp.dot(ctx, wf, preferred_element_type=jnp.float32) + bf
        o_ref[...] = out[None]                                        # (1, B, 1)
    return kernel


def m_alstm_s_forward(combined, p, t_max=15, seq_lens=(5, 10, 15)):
    """combined: (batch, num_stocks, T_full, D) -> (batch, num_stocks)."""
    batch, num_stocks, _, d_in = combined.shape
    bsz = batch * num_stocks
    hidden = p["alstm1"]["wf"].shape[0]
    num_layers = len(p["alstm1"]["lstm"])

    # last T_MAX timesteps, time-major, flattened to (T*B, D)
    xs = combined[:, :, -t_max:, :].reshape(bsz, t_max, d_in)
    xs = jnp.transpose(xs, (1, 0, 2)).reshape(t_max * bsz, d_in)

    scales = (p["alstm1"], p["alstm2"], p["alstm3"])
    starts = jnp.array([t_max - sl for sl in seq_lens], dtype=jnp.int32)

    flat_args = []
    in_specs = [pl.BlockSpec((t_max * bsz, d_in), lambda s, st: (0, 0))]
    for l in range(num_layers):
        wih = jnp.stack([sc["lstm"][l][0] for sc in scales])          # (3, din, 4H)
        whh = jnp.stack([sc["lstm"][l][1] for sc in scales])          # (3, H, 4H)
        b = jnp.stack([sc["lstm"][l][2] for sc in scales])            # (3, 1, 4H)
        flat_args += [wih, whh, b]
        din = wih.shape[1]
        in_specs += [
            pl.BlockSpec((1, din, 4 * hidden), lambda s, st: (s, 0, 0)),
            pl.BlockSpec((1, hidden, 4 * hidden), lambda s, st: (s, 0, 0)),
            pl.BlockSpec((1, 1, 4 * hidden), lambda s, st: (s, 0, 0)),
        ]
    wa = jnp.stack([sc["wa"].reshape(1, hidden) for sc in scales])    # (3, 1, H)
    ba = jnp.stack([sc["ba"].reshape(1, 1) for sc in scales])         # (3, 1, 1)
    wf = jnp.stack([sc["wf"] for sc in scales])                       # (3, H, 1)
    bf = jnp.stack([sc["bf"].reshape(1, 1) for sc in scales])         # (3, 1, 1)
    flat_args += [wa, ba, wf, bf]
    in_specs += [
        pl.BlockSpec((1, 1, hidden), lambda s, st: (s, 0, 0)),
        pl.BlockSpec((1, 1, 1), lambda s, st: (s, 0, 0)),
        pl.BlockSpec((1, hidden, 1), lambda s, st: (s, 0, 0)),
        pl.BlockSpec((1, 1, 1), lambda s, st: (s, 0, 0)),
    ]

    outs = pl.pallas_call(
        _make_fused_malstm_kernel(num_layers, hidden, t_max),
        out_shape=jax.ShapeDtypeStruct((3, bsz, 1), jnp.float32),
        grid_spec=pltpu.PrefetchScalarGridSpec(
            num_scalar_prefetch=1,
            grid=(3,),
            in_specs=in_specs,
            out_specs=pl.BlockSpec((1, bsz, 1), lambda s, st: (s, 0, 0)),
        ),
        compiler_params=pltpu.CompilerParams(
            dimension_semantics=("parallel",)),   # independent scales (2 TCs on v7x)
    )(starts, xs, *flat_args)                     # (3, B_eff, 1)

    outs = outs.reshape(3, batch, num_stocks)
    wn = jax.nn.softmax(p["weights"], axis=0).reshape(3, 1, 1)
    return jnp.sum(outs * wn, axis=0)             # (batch, num_stocks)


# ----------------------------------------------------------------------------
# Plain-JAX glue (Laplacian construction, feature concat, parameter plumbing).
# ----------------------------------------------------------------------------
def build_scaled_laplacian(edge_index, edge_weight, num_nodes):
    """PyG ChebConv scaled Laplacian, sym norm, lambda_max=2 (PyG default):
       L_hat = -D^{-1/2} A D^{-1/2} (zero diagonal)."""
    src, dst = edge_index[0], edge_index[1]
    adj = jnp.zeros((num_nodes, num_nodes), jnp.float32).at[dst, src].add(edge_weight)
    deg = adj.sum(axis=1)
    dinv = jnp.where(deg > 0, 1.0 / jnp.sqrt(deg), 0.0)
    return -(dinv[:, None] * adj * dinv[None, :])


def cograsp_forward(graph_x, edge_index, edge_weight, seq_data, params):
    num_nodes = graph_x.shape[0]
    lhat = build_scaled_laplacian(edge_index, edge_weight, num_nodes)
    gfeat = chebnet_forward(graph_x, lhat, params["gnn"])             # (N, Hg)
    t_len = seq_data.shape[2]
    gfeat_rep = jnp.broadcast_to(
        gfeat[None, :, None, :],
        (seq_data.shape[0], num_nodes, t_len, gfeat.shape[-1]))
    combined = jnp.concatenate([seq_data, gfeat_rep], axis=-1)
    return m_alstm_s_forward(combined, params["malstm"])


# ----------------------------------------------------------------------------
# Deterministic synthetic parameter init (shapes follow the PyTorch module).
# Dropout layers are inference no-ops (dropout_rate=0 in COGRASP's M_ALSTM_S).
# ----------------------------------------------------------------------------
def init_params(key, features, gnn_hidden, lstm_hidden, gnn_layers, lstm_layers):
    keys = iter(jax.random.split(key, 128))

    def nrm(shape, scale=0.1):
        return scale * jax.random.normal(next(keys), shape, dtype=jnp.float32)

    gnn = []
    fin = features
    for _ in range(gnn_layers):
        gnn.append((nrm((fin, gnn_hidden)),         # ChebConv lin[0]
                    nrm((fin, gnn_hidden)),         # ChebConv lin[1]
                    nrm((gnn_hidden,))))            # bias
        fin = gnn_hidden

    lstm_in = features + gnn_hidden

    def alstm_params():
        lstm = []
        din = lstm_in
        for _ in range(lstm_layers):
            lstm.append((nrm((din, 4 * lstm_hidden)),          # W_ih^T
                         nrm((lstm_hidden, 4 * lstm_hidden)),  # W_hh^T
                         nrm((1, 4 * lstm_hidden))))           # b_ih + b_hh
            din = lstm_hidden
        return {"lstm": lstm,
                "wa": nrm((lstm_hidden,)), "ba": nrm((1,)),
                "wf": nrm((lstm_hidden, 1)), "bf": nrm((1,))}

    malstm = {"alstm1": alstm_params(),
              "alstm2": alstm_params(),
              "alstm3": alstm_params(),
              "weights": jnp.ones((3, 1), dtype=jnp.float32)}
    return {"gnn": gnn, "malstm": malstm}


if __name__ == "__main__":
    NUM_NODES = 8      # num_stocks / graph nodes
    FEATURES = 4
    GNN_HIDDEN = 8
    LSTM_HIDDEN = 16
    GNN_LAYERS = 2
    LSTM_LAYERS = 2
    SEQ_LEN = 16       # >= 15 (max ALSTM window)

    key = jax.random.PRNGKey(0)
    k_x, k_w, k_s, k_p = jax.random.split(key, 4)

    graph_x = jax.random.normal(k_x, (NUM_NODES, FEATURES), dtype=jnp.float32)

    # undirected ring graph (both directions, shared weights)
    src = jnp.arange(NUM_NODES, dtype=jnp.int32)
    dst = (src + 1) % NUM_NODES
    edge_index = jnp.stack([jnp.concatenate([src, dst]),
                            jnp.concatenate([dst, src])])
    ew = jnp.abs(jax.random.normal(k_w, (NUM_NODES,), dtype=jnp.float32)) + 0.5
    edge_weight = jnp.concatenate([ew, ew])

    # sequence_data: (batch=1, num_stocks, seq_len, features)
    seq_data = jax.random.normal(
        k_s, (1, NUM_NODES, SEQ_LEN, FEATURES), dtype=jnp.float32)

    params = init_params(k_p, FEATURES, GNN_HIDDEN, LSTM_HIDDEN,
                         GNN_LAYERS, LSTM_LAYERS)

    fwd = jax.jit(cograsp_forward)
    out = fwd(graph_x, edge_index, edge_weight, seq_data, params)
    out = jax.block_until_ready(out)
    assert out.shape == (1, NUM_NODES), out.shape
    assert bool(jnp.all(jnp.isfinite(out)))
    print("KERNEL_OK")
</pallas_src>

<mosaic_0001>
module attributes {stable_mosaic.version = 11 : i64} {
  func.func @kernel(%arg0: memref<8x8xf32, #tpu.memory_space<vmem>>, %arg1: memref<8x4xf32, #tpu.memory_space<vmem>>, %arg2: memref<4x8xf32, #tpu.memory_space<vmem>>, %arg3: memref<4x8xf32, #tpu.memory_space<vmem>>, %arg4: memref<1x8xf32, #tpu.memory_space<vmem>>, %arg5: memref<8x8xf32, #tpu.memory_space<vmem>>, %arg6: memref<8x8xf32, #tpu.memory_space<vmem>>, %arg7: memref<1x8xf32, #tpu.memory_space<vmem>>, %arg8: memref<8x8xf32, #tpu.memory_space<vmem>>) attributes {dimension_semantics = [], scalar_prefetch = 0 : i64, scratch_operands = 0 : i64, tpu.core_type = #tpu.core_type<tc>} {
    %c0 = arith.constant 0 : index
    %c0_0 = arith.constant 0 : index
    %0 = vector.load %arg0[%c0, %c0_0] : memref<8x8xf32, #tpu.memory_space<vmem>>, vector<8x8xf32>
    %c0_1 = arith.constant 0 : index
    %c0_2 = arith.constant 0 : index
    %1 = vector.load %arg1[%c0_1, %c0_2] : memref<8x4xf32, #tpu.memory_space<vmem>>, vector<8x4xf32>
    %c0_3 = arith.constant 0 : index
    %c0_4 = arith.constant 0 : index
    %2 = vector.load %arg2[%c0_3, %c0_4] : memref<4x8xf32, #tpu.memory_space<vmem>>, vector<4x8xf32>
    %c0_5 = arith.constant 0 : index
    %c0_6 = arith.constant 0 : index
    %3 = vector.load %arg3[%c0_5, %c0_6] : memref<4x8xf32, #tpu.memory_space<vmem>>, vector<4x8xf32>
    %c0_7 = arith.constant 0 : index
    %c0_8 = arith.constant 0 : index
    %4 = vector.load %arg4[%c0_7, %c0_8] : memref<1x8xf32, #tpu.memory_space<vmem>>, vector<1x8xf32>
    %cst = arith.constant dense<0.000000e+00> : vector<8x4xf32>
    %5 = tpu.matmul %0, %1, %cst {dimension_numbers = #tpu.dot_dimension_numbers<[1], [0], [0], [1], [0, 0, 1, 1], [], []>} : vector<8x8xf32>, vector<8x4xf32>, vector<8x4xf32> -> vector<8x4xf32>
    %cst_9 = arith.constant dense<0.000000e+00> : vector<8x8xf32>
    %6 = tpu.matmul %1, %2, %cst_9 {dimension_numbers = #tpu.dot_dimension_numbers<[1], [0], [0], [1], [0, 0, 1, 1], [], []>} : vector<8x4xf32>, vector<4x8xf32>, vector<8x8xf32> -> vector<8x8xf32>
    %cst_10 = arith.constant dense<0.000000e+00> : vector<8x8xf32>
    %7 = tpu.matmul %5, %3, %cst_10 {dimension_numbers = #tpu.dot_dimension_numbers<[1], [0], [0], [1], [0, 0, 1, 1], [], []>} : vector<8x4xf32>, vector<4x8xf32>, vector<8x8xf32> -> vector<8x8xf32>
    %8 = arith.addf %6, %7 : vector<8x8xf32>
    %9 = vector.broadcast %4 : vector<1x8xf32> to vector<8x8xf32>
    %10 = arith.addf %8, %9 : vector<8x8xf32>
    %cst_11 = arith.constant 0.000000e+00 : f32
    %11 = vector.broadcast %cst_11 : f32 to vector<8x8xf32>
    %12 = arith.maximumf %10, %11 : vector<8x8xf32>
    %c0_12 = arith.constant 0 : index
    %c0_13 = arith.constant 0 : index
    %13 = vector.load %arg5[%c0_12, %c0_13] : memref<8x8xf32, #tpu.memory_space<vmem>>, vector<8x8xf32>
    %c0_14 = arith.constant 0 : index
    %c0_15 = arith.constant 0 : index
    %14 = vector.load %arg6[%c0_14, %c0_15] : memref<8x8xf32, #tpu.memory_space<vmem>>, vector<8x8xf32>
    %c0_16 = arith.constant 0 : index
    %c0_17 = arith.constant 0 : index
    %15 = vector.load %arg7[%c0_16, %c0_17] : memref<1x8xf32, #tpu.memory_space<vmem>>, vector<1x8xf32>
    %cst_18 = arith.constant dense<0.000000e+00> : vector<8x8xf32>
    %16 = tpu.matmul %0, %12, %cst_18 {dimension_numbers = #tpu.dot_dimension_numbers<[1], [0], [0], [1], [0, 0, 1, 1], [], []>} : vector<8x8xf32>, vector<8x8xf32>, vector<8x8xf32> -> vector<8x8xf32>
    %cst_19 = arith.constant dense<0.000000e+00> : vector<8x8xf32>
    %17 = tpu.matmul %12, %13, %cst_19 {dimension_numbers = #tpu.dot_dimension_numbers<[1], [0], [0], [1], [0, 0, 1, 1], [], []>} : vector<8x8xf32>, vector<8x8xf32>, vector<8x8xf32> -> vector<8x8xf32>
    %cst_20 = arith.constant dense<0.000000e+00> : vector<8x8xf32>
    %18 = tpu.matmul %16, %14, %cst_20 {dimension_numbers = #tpu.dot_dimension_numbers<[1], [0], [0], [1], [0, 0, 1, 1], [], []>} : vector<8x8xf32>, vector<8x8xf32>, vector<8x8xf32> -> vector<8x8xf32>
    %19 = arith.addf %17, %18 : vector<8x8xf32>
    %20 = vector.broadcast %15 : vector<1x8xf32> to vector<8x8xf32>
    %21 = arith.addf %19, %20 : vector<8x8xf32>
    %cst_21 = arith.constant 0.000000e+00 : f32
    %22 = vector.broadcast %cst_21 : f32 to vector<8x8xf32>
    %23 = arith.maximumf %21, %22 : vector<8x8xf32>
    %c0_22 = arith.constant 0 : index
    %c0_23 = arith.constant 0 : index
    %24 = vector.load %arg8[%c0_22, %c0_23] : memref<8x8xf32, #tpu.memory_space<vmem>>, vector<8x8xf32>
    tpu.vector_store %arg8[%c0_22, %c0_23], %23 {strides = array<i32>} : memref<8x8xf32, #tpu.memory_space<vmem>>, vector<8x8xf32>,
    return
  }
}

module attributes {stable_mosaic.version = 11 : i64} {
  func.func @kernel(%arg0: i32, %arg1: memref<3xi32, #tpu.memory_space<smem>>, %arg2: memref<120x12xf32, #tpu.memory_space<vmem>>, %arg3: memref<1x12x64xf32, #tpu.memory_space<vmem>>, %arg4: memref<1x16x64xf32, #tpu.memory_space<vmem>>, %arg5: memref<1x1x64xf32, #tpu.memory_space<vmem>>, %arg6: memref<1x16x64xf32, #tpu.memory_space<vmem>>, %arg7: memref<1x16x64xf32, #tpu.memory_space<vmem>>, %arg8: memref<1x1x64xf32, #tpu.memory_space<vmem>>, %arg9: memref<1x1x16xf32, #tpu.memory_space<vmem>>, %arg10: memref<1x1x1xf32, #tpu.memory_space<vmem>>, %arg11: memref<1x16x1xf32, #tpu.memory_space<vmem>>, %arg12: memref<1x1x1xf32, #tpu.memory_space<vmem>>, %arg13: memref<1x8x1xf32, #tpu.memory_space<vmem>>) attributes {dimension_semantics = [#tpu.dimension_semantics<parallel>], iteration_bounds = array<i64: 3>, scalar_prefetch = 1 : i64, scratch_operands = 0 : i64, tpu.core_type = #tpu.core_type<tc>, window_params = [{pipeline_mode = #tpu.pipeline_mode<synchronous>, transform_indices = @transform_0, window_bounds = array<i64: 120, 12>}, {transform_indices = @transform_1, window_bounds = array<i64: 1, 12, 64>}, {transform_indices = @transform_2, window_bounds = array<i64: 1, 16, 64>}, {transform_indices = @transform_3, window_bounds = array<i64: 1, 1, 64>}, {transform_indices = @transform_4, window_bounds = array<i64: 1, 16, 64>}, {transform_indices = @transform_5, window_bounds = array<i64: 1, 16, 64>}, {transform_indices = @transform_6, window_bounds = array<i64: 1, 1, 64>}, {transform_indices = @transform_7, window_bounds = array<i64: 1, 1, 16>}, {transform_indices = @transform_8, window_bounds = array<i64: 1, 1, 1>}, {transform_indices = @transform_9, window_bounds = array<i64: 1, 16, 1>}, {transform_indices = @transform_10, window_bounds = array<i64: 1, 1, 1>}, {transform_indices = @transform_11, window_bounds = array<i64: 1, 8, 1>}]} {
    %0 = arith.index_cast %arg0 : i32 to index
    %1 = memref.load %arg1[%0] : memref<3xi32, #tpu.memory_space<smem>>
    %c0 = arith.constant 0 : index
    %c0_0 = arith.constant 0 : index
    %2 = vector.load %arg2[%c0, %c0_0] : memref<120x12xf32, #tpu.memory_space<vmem>>, vector<120x12xf32>
    %c0_1 = arith.constant 0 : index
    %c0_2 = arith.constant 0 : index
    %c0_3 = arith.constant 0 : index
    %3 = vector.load %arg3[%c0_1, %c0_2, %c0_3] : memref<1x12x64xf32, #tpu.memory_space<vmem>>, vector<1x12x64xf32>
    %4 = vector.shape_cast %3 : vector<1x12x64xf32> to vector<12x64xf32>
    %c0_4 = arith.constant 0 : index
    %c0_5 = arith.constant 0 : index
    %c0_6 = arith.constant 0 : index
    %5 = vector.load %arg6[%c0_4, %c0_5, %c0_6] : memref<1x16x64xf32, #tpu.memory_space<vmem>>, vector<1x16x64xf32>
    %6 = vector.shape_cast %5 : vector<1x16x64xf32> to vector<16x64xf32>
    %c0_7 = arith.constant 0 : index
    %c0_8 = arith.constant 0 : index
    %c0_9 = arith.constant 0 : index
    %7 = vector.load %arg4[%c0_7, %c0_8, %c0_9] : memref<1x16x64xf32, #tpu.memory_space<vmem>>, vector<1x16x64xf32>
    %8 = vector.shape_cast %7 : vector<1x16x64xf32> to vector<16x64xf32>
    %c0_10 = arith.constant 0 : index
    %c0_11 = arith.constant 0 : index
    %c0_12 = arith.constant 0 : index
    %9 = vector.load %arg7[%c0_10, %c0_11, %c0_12] : memref<1x16x64xf32, #tpu.memory_space<vmem>>, vector<1x16x64xf32>
    %10 = vector.shape_cast %9 : vector<1x16x64xf32> to vector<16x64xf32>
    %c0_13 = arith.constant 0 : index
    %c0_14 = arith.constant 0 : index
    %c0_15 = arith.constant 0 : index
    %11 = vector.load %arg5[%c0_13, %c0_14, %c0_15] : memref<1x1x64xf32, #tpu.memory_space<vmem>>, vector<1x1x64xf32>
    %12 = vector.shape_cast %11 : vector<1x1x64xf32> to vector<1x64xf32>
    %c0_16 = arith.constant 0 : index
    %c0_17 = arith.constant 0 : index
    %c0_18 = arith.constant 0 : index
    %13 = vector.load %arg8[%c0_16, %c0_17, %c0_18] : memref<1x1x64xf32, #tpu.memory_space<vmem>>, vector<1x1x64xf32>
    %14 = vector.shape_cast %13 : vector<1x1x64xf32> to vector<1x64xf32>
    %c0_19 = arith.constant 0 : index
    %c0_20 = arith.constant 0 : index
    %c0_21 = arith.constant 0 : index
    %15 = vector.load %arg9[%c0_19, %c0_20, %c0_21] : memref<1x1x16xf32, #tpu.memory_space<vmem>>, vector<1x1x16xf32>
    %16 = vector.shape_cast %15 : vector<1x1x16xf32> to vector<1x16xf32>
    %c0_22 = arith.constant 0 : index
    %c0_23 = arith.constant 0 : index
    %c0_24 = arith.constant 0 : index
    %17 = vector.load %arg10[%c0_22, %c0_23, %c0_24] : memref<1x1x1xf32, #tpu.memory_space<vmem>>, vector<1x1x1xf32>
    %18 = vector.shape_cast %17 : vector<1x1x1xf32> to vector<1x1xf32>
    %c0_25 = arith.constant 0 : index
    %c0_26 = arith.constant 0 : index
    %c0_27 = arith.constant 0 : index
    %19 = vector.load %arg11[%c0_25, %c0_26, %c0_27] : memref<1x16x1xf32, #tpu.memory_space<vmem>>, vector<1x16x1xf32>
    %20 = vector.shape_cast %19 : vector<1x16x1xf32> to vector<16x1xf32>
    %c0_28 = arith.constant 0 : index
    %c0_29 = arith.constant 0 : index
    %c0_30 = arith.constant 0 : index
    %21 = vector.load %arg12[%c0_28, %c0_29, %c0_30] : memref<1x1x1xf32, #tpu.memory_space<vmem>>, vector<1x1x1xf32>
    %22 = vector.shape_cast %21 : vector<1x1x1xf32> to vector<1x1xf32>
    %cst = arith.constant dense<0.000000e+00> : vector<120x64xf32>
    %23 = tpu.matmul %2, %4, %cst {dimension_numbers = #tpu.dot_dimension_numbers<[1], [0], [0], [1], [0, 0, 1, 1], [], []>} : vector<120x12xf32>, vector<12x64xf32>, vector<120x64xf32> -> vector<120x64xf32>
    %24 = vector.broadcast %12 : vector<1x64xf32> to vector<120x64xf32>
    %25 = arith.addf %23, %24 : vector<120x64xf32>
    %cst_31 = arith.constant 0.000000e+00 : f32
    %26 = vector.broadcast %cst_31 : f32 to vector<8x16xf32>
    %cst_32 = arith.constant 0.000000e+00 : f32
    %27 = vector.broadcast %cst_32 : f32 to vector<8x16xf32>
    %cst_33 = arith.constant 0.000000e+00 : f32
    %28 = vector.broadcast %cst_33 : f32 to vector<8x16xf32>
    %cst_34 = arith.constant 0.000000e+00 : f32
    %29 = vector.broadcast %cst_34 : f32 to vector<8x16xf32>
    %c0_i32 = arith.constant 0 : i32
    %30 = arith.cmpi eq, %1, %c0_i32 : i32
    %cst_35 = arith.constant 0.000000e+00 : f32
    %31 = vector.broadcast %cst_35 : f32 to vector<8x16xf32>
    %32 = arith.select %30, %31, %26 : vector<8x16xf32>
    %cst_36 = arith.constant 0.000000e+00 : f32
    %33 = vector.broadcast %cst_36 : f32 to vector<8x16xf32>
    %34 = arith.select %30, %33, %27 : vector<8x16xf32>
    %cst_37 = arith.constant 0.000000e+00 : f32
    %35 = vector.broadcast %cst_37 : f32 to vector<8x16xf32>
    %36 = arith.select %30, %35, %28 : vector<8x16xf32>
    %cst_38 = arith.constant 0.000000e+00 : f32
    %37 = vector.broadcast %cst_38 : f32 to vector<8x16xf32>
    %38 = arith.select %30, %37, %29 : vector<8x16xf32>
    %39 = vector.extract_strided_slice %25 {offsets = [0, 0], sizes = [8, 64], strides = [1, 1]} : vector<120x64xf32> to vector<8x64xf32>
    %cst_39 = arith.constant dense<0.000000e+00> : vector<8x64xf32>
    %40 = tpu.matmul %32, %8, %cst_39 {dimension_numbers = #tpu.dot_dimension_numbers<[1], [0], [0], [1], [0, 0, 1, 1], [], []>} : vector<8x16xf32>, vector<16x64xf32>, vector<8x64xf32> -> vector<8x64xf32>
    %41 = arith.addf %39, %40 : vector<8x64xf32>
    %42 = vector.extract_strided_slice %41 {offsets = [0, 0], sizes = [8, 16], strides = [1, 1]} : vector<8x64xf32> to vector<8x16xf32>
    %43 = arith.negf %42 : vector<8x16xf32>
    %44 = math.exp %43 : vector<8x16xf32>
    %cst_40 = arith.constant 1.000000e+00 : f32
    %45 = vector.broadcast %cst_40 : f32 to vector<8x16xf32>
    %46 = arith.addf %45, %44 : vector<8x16xf32>
    %47 = arith.divf %45, %46 : vector<8x16xf32>
    %48 = vector.extract_strided_slice %41 {offsets = [0, 16], sizes = [8, 16], strides = [1, 1]} : vector<8x64xf32> to vector<8x16xf32>
    %49 = arith.negf %48 : vector<8x16xf32>
    %50 = math.exp %49 : vector<8x16xf32>
    %cst_41 = arith.constant 1.000000e+00 : f32
    %51 = vector.broadcast %cst_41 : f32 to vector<8x16xf32>
    %52 = arith.addf %51, %50 : vector<8x16xf32>
    %53 = arith.divf %51, %52 : vector<8x16xf32>
    %54 = vector.extract_strided_slice %41 {offsets = [0, 32], sizes = [8, 16], strides = [1, 1]} : vector<8x64xf32> to vector<8x16xf32>
    %55 = math.tanh %54 : vector<8x16xf32>
    %56 = vector.extract_strided_slice %41 {offsets = [0, 48], sizes = [8, 16], strides = [1, 1]} : vector<8x64xf32> to vector<8x16xf32>
    %57 = arith.negf %56 : vector<8x16xf32>
    %58 = math.exp %57 : vector<8x16xf32>
    %cst_42 = arith.constant 1.000000e+00 : f32
    %59 = vector.broadcast %cst_42 : f32 to vector<8x16xf32>
    %60 = arith.addf %59, %58 : vector<8x16xf32>
    %61 = arith.divf %59, %60 : vector<8x16xf32>
    %62 = arith.mulf %53, %36 : vector<8x16xf32>
    %63 = arith.mulf %47, %55 : vector<8x16xf32>
    %64 = arith.addf %62, %63 : vector<8x16xf32>
    %65 = math.tanh %64 : vector<8x16xf32>
    %66 = arith.mulf %61, %65 : vector<8x16xf32>
    %cst_43 = arith.constant dense<0.000000e+00> : vector<8x64xf32>
    %67 = tpu.matmul %66, %6, %cst_43 {dimension_numbers = #tpu.dot_dimension_numbers<[1], [0], [0], [1], [0, 0, 1, 1], [], []>} : vector<8x16xf32>, vector<16x64xf32>, vector<8x64xf32> -> vector<8x64xf32>
    %68 = vector.broadcast %14 : vector<1x64xf32> to vector<8x64xf32>
    %69 = arith.addf %67, %68 : vector<8x64xf32>
    %cst_44 = arith.constant dense<0.000000e+00> : vector<8x64xf32>
    %70 = tpu.matmul %34, %10, %cst_44 {dimension_numbers = #tpu.dot_dimension_numbers<[1], [0], [0], [1], [0, 0, 1, 1], [], []>} : vector<8x16xf32>, vector<16x64xf32>, vector<8x64xf32> -> vector<8x64xf32>
    %71 = arith.addf %69, %70 : vector<8x64xf32>
    %72 = vector.extract_strided_slice %71 {offsets = [0, 0], sizes = [8, 16], strides = [1, 1]} : vector<8x64xf32> to vector<8x16xf32>
    %73 = arith.negf %72 : vector<8x16xf32>
    %74 = math.exp %73 : vector<8x16xf32>
    %cst_45 = arith.constant 1.000000e+00 : f32
    %75 = vector.broadcast %cst_45 : f32 to vector<8x16xf32>
    %76 = arith.addf %75, %74 : vector<8x16xf32>
    %77 = arith.divf %75, %76 : vector<8x16xf32>
    %78 = vector.extract_strided_slice %71 {offsets = [0, 16], sizes = [8, 16], strides = [1, 1]} : vector<8x64xf32> to vector<8x16xf32>
    %79 = arith.negf %78 : vector<8x16xf32>
    %80 = math.exp %79 : vector<8x16xf32>
    %cst_46 = arith.constant 1.000000e+00 : f32
    %81 = vector.broadcast %cst_46 : f32 to vector<8x16xf32>
    %82 = arith.addf %81, %80 : vector<8x16xf32>
    %83 = arith.divf %81, %82 : vector<8x16xf32>
    %84 = vector.extract_strided_slice %71 {offsets = [0, 32], sizes = [8, 16], strides = [1, 1]} : vector<8x64xf32> to vector<8x16xf32>
    %85 = math.tanh %84 : vector<8x16xf32>
    %86 = vector.extract_strided_slice %71 {offsets = [0, 48], sizes = [8, 16], strides = [1, 1]} : vector<8x64xf32> to vector<8x16xf32>
    %87 = arith.negf %86 : vector<8x16xf32>
    %88 = math.exp %87 : vector<8x16xf32>
    %cst_47 = arith.constant 1.000000e+00 : f32
    %89 = vector.broadcast %cst_47 : f32 to vector<8x16xf32>
    %90 = arith.addf %89, %88 : vector<8x16xf32>
    %91 = arith.divf %89, %90 : vector<8x16xf32>
    %92 = arith.mulf %83, %38 : vector<8x16xf32>
    %93 = arith.mulf %77, %85 : vector<8x16xf32>
    %94 = arith.addf %92, %93 : vector<8x16xf32>
    %95 = math.tanh %94 : vector<8x16xf32>
    %96 = arith.mulf %91, %95 : vector<8x16xf32>
    %97 = vector.broadcast %16 : vector<1x16xf32> to vector<8x16xf32>
    %98 = arith.mulf %96, %97 : vector<8x16xf32>
    %cst_48 = arith.constant dense<0.000000e+00> : vector<8xf32>
    %99 = vector.multi_reduction <add>, %98, %cst_48 [1] : vector<8x16xf32> to vector<8xf32>
    %100 = vector.shape_cast %99 : vector<8xf32> to vector<8x1xf32>
    %101 = vector.broadcast %18 : vector<1x1xf32> to vector<8x1xf32>
    %102 = arith.addf %100, %101 : vector<8x1xf32>
    %c0_i32_49 = arith.constant 0 : i32
    %103 = arith.cmpi sle, %1, %c0_i32_49 : i32
    %cst_50 = arith.constant -1.000000e+30 : f32
    %104 = vector.broadcast %cst_50 : f32 to vector<8x1xf32>
    %105 = arith.select %103, %102, %104 : vector<8x1xf32>
    %c1_i32 = arith.constant 1 : i32
    %106 = arith.cmpi eq, %1, %c1_i32 : i32
    %cst_51 = arith.constant 0.000000e+00 : f32
    %107 = vector.broadcast %cst_51 : f32 to vector<8x16xf32>
    %108 = arith.select %106, %107, %66 : vector<8x16xf32>
    %cst_52 = arith.constant 0.000000e+00 : f32
    %109 = vector.broadcast %cst_52 : f32 to vector<8x16xf32>
    %110 = arith.select %106, %109, %96 : vector<8x16xf32>
    %cst_53 = arith.constant 0.000000e+00 : f32
    %111 = vector.broadcast %cst_53 : f32 to vector<8x16xf32>
    %112 = arith.select %106, %111, %64 : vector<8x16xf32>
    %cst_54 = arith.constant 0.000000e+00 : f32
    %113 = vector.broadcast %cst_54 : f32 to vector<8x16xf32>
    %114 = arith.select %106, %113, %94 : vector<8x16xf32>
    %115 = vector.extract_strided_slice %25 {offsets = [8, 0], sizes = [8, 64], strides = [1, 1]} : vector<120x64xf32> to vector<8x64xf32>
    %cst_55 = arith.constant dense<0.000000e+00> : vector<8x64xf32>
    %116 = tpu.matmul %108, %8, %cst_55 {dimension_numbers = #tpu.dot_dimension_numbers<[1], [0], [0], [1], [0, 0, 1, 1], [], []>} : vector<8x16xf32>, vector<16x64xf32>, vector<8x64xf32> -> vector<8x64xf32>
    %117 = arith.addf %115, %116 : vector<8x64xf32>
    %118 = vector.extract_strided_slice %117 {offsets = [0, 0], sizes = [8, 16], strides = [1, 1]} : vector<8x64xf32> to vector<8x16xf32>
    %119 = arith.negf %118 : vector<8x16xf32>
    %120 = math.exp %119 : vector<8x16xf32>
    %cst_56 = arith.constant 1.000000e+00 : f32
    %121 = vector.broadcast %cst_56 : f32 to vector<8x16xf32>
    %122 = arith.addf %121, %120 : vector<8x16xf32>
    %123 = arith.divf %121, %122 : vector<8x16xf32>
    %124 = vector.extract_strided_slice %117 {offsets = [0, 16], sizes = [8, 16], strides = [1, 1]} : vector<8x64xf32> to vector<8x16xf32>
    %125 = arith.negf %124 : vector<8x16xf32>
    %126 = math.exp %125 : vector<8x16xf32>
    %cst_57 = arith.constant 1.000000e+00 : f32
    %127 = vector.broadcast %cst_57 : f32 to vector<8x16xf32>
    %128 = arith.addf %127, %126 : vector<8x16xf32>
    %129 = arith.divf %127, %128 : vector<8x16xf32>
    %130 = vector.extract_strided_slice %117 {offsets = [0, 32], sizes = [8, 16], strides = [1, 1]} : vector<8x64xf32> to vector<8x16xf32>
    %131 = math.tanh %130 : vector<8x16xf32>
    %132 = vector.extract_strided_slice %117 {offsets = [0, 48], sizes = [8, 16], strides = [1, 1]} : vector<8x64xf32> to vector<8x16xf32>
    %133 = arith.negf %132 : vector<8x16xf32>
    %134 = math.exp %133 : vector<8x16xf32>
    %cst_58 = arith.constant 1.000000e+00 : f32
    %135 = vector.broadcast %cst_58 : f32 to vector<8x16xf32>
    %136 = arith.addf %135, %134 : vector<8x16xf32>
    %137 = arith.divf %135, %136 : vector<8x16xf32>
    %138 = arith.mulf %129, %112 : vector<8x16xf32>
    %139 = arith.mulf %123, %131 : vector<8x16xf32>
    %140 = arith.addf %138, %139 : vector<8x16xf32>
    %141 = math.tanh %140 : vector<8x16xf32>
    %142 = arith.mulf %137, %141 : vector<8x16xf32>
    %cst_59 = arith.constant dense<0.000000e+00> : vector<8x64xf32>
    %143 = tpu.matmul %142, %6, %cst_59 {dimension_numbers = #tpu.dot_dimension_numbers<[1], [0], [0], [1], [0, 0, 1, 1], [], []>} : vector<8x16xf32>, vector<16x64xf32>, vector<8x64xf32> -> vector<8x64xf32>
    %144 = vector.broadcast %14 : vector<1x64xf32> to vector<8x64xf32>
    %145 = arith.addf %143, %144 : vector<8x64xf32>
    %cst_60 = arith.constant dense<0.000000e+00> : vector<8x64xf32>
    %146 = tpu.matmul %110, %10, %cst_60 {dimension_numbers = #tpu.dot_dimension_numbers<[1], [0], [0], [1], [0, 0, 1, 1], [], []>} : vector<8x16xf32>, vector<16x64xf32>, vector<8x64xf32> -> vector<8x64xf32>
    %147 = arith.addf %145, %146 : vector<8x64xf32>
    %148 = vector.extract_strided_slice %147 {offsets = [0, 0], sizes = [8, 16], strides = [1, 1]} : vector<8x64xf32> to vector<8x16xf32>
    %149 = arith.negf %148 : vector<8x16xf32>
    %150 = math.exp %149 : vector<8x16xf32>
    %cst_61 = arith.constant 1.000000e+00 : f32
    %151 = vector.broadcast %cst_61 : f32 to vector<8x16xf32>
    %152 = arith.addf %151, %150 : vector<8x16xf32>
    %153 = arith.divf %151, %152 : vector<8x16xf32>
    %154 = vector.extract_strided_slice %147 {offsets = [0, 16], sizes = [8, 16], strides = [1, 1]} : vector<8x64xf32> to vector<8x16xf32>
    %155 = arith.negf %154 : vector<8x16xf32>
    %156 = math.exp %155 : vector<8x16xf32>
    %cst_62 = arith.constant 1.000000e+00 : f32
    %157 = vector.broadcast %cst_62 : f32 to vector<8x16xf32>
    %158 = arith.addf %157, %156 : vector<8x16xf32>
    %159 = arith.divf %157, %158 : vector<8x16xf32>
    %160 = vector.extract_strided_slice %147 {offsets = [0, 32], sizes = [8, 16], strides = [1, 1]} : vector<8x64xf32> to vector<8x16xf32>
    %161 = math.tanh %160 : vector<8x16xf32>
    %162 = vector.extract_strided_slice %147 {offsets = [0, 48], sizes = [8, 16], strides = [1, 1]} : vector<8x64xf32> to vector<8x16xf32>
    %163 = arith.negf %162 : vector<8x16xf32>
    %164 = math.exp %163 : vector<8x16xf32>
    %cst_63 = arith.constant 1.000000e+00 : f32
    %165 = vector.broadcast %cst_63 : f32 to vector<8x16xf32>
    %166 = arith.addf %165, %164 : vector<8x16xf32>
    %167 = arith.divf %165, %166 : vector<8x16xf32>
    %168 = arith.mulf %159, %114 : vector<8x16xf32>
    %169 = arith.mulf %153, %161 : vector<8x16xf32>
    %170 = arith.addf %168, %169 : vector<8x16xf32>
    %171 = math.tanh %170 : vector<8x16xf32>
    %172 = arith.mulf %167, %171 : vector<8x16xf32>
    %173 = vector.broadcast %16 : vector<1x16xf32> to vector<8x16xf32>
    %174 = arith.mulf %172, %173 : vector<8x16xf32>
    %cst_64 = arith.constant dense<0.000000e+00> : vector<8xf32>
    %175 = vector.multi_reduction <add>, %174, %cst_64 [1] : vector<8x16xf32> to vector<8xf32>
    %176 = vector.shape_cast %175 : vector<8xf32> to vector<8x1xf32>
    %177 = vector.broadcast %18 : vector<1x1xf32> to vector<8x1xf32>
    %178 = arith.addf %176, %177 : vector<8x1xf32>
    %c1_i32_65 = arith.constant 1 : i32
    %179 = arith.cmpi sle, %1, %c1_i32_65 : i32
    %cst_66 = arith.constant -1.000000e+30 : f32
    %180 = vector.broadcast %cst_66 : f32 to vector<8x1xf32>
    %181 = arith.select %179, %178, %180 : vector<8x1xf32>
    %c2_i32 = arith.constant 2 : i32
    %182 = arith.cmpi eq, %1, %c2_i32 : i32
    %cst_67 = arith.constant 0.000000e+00 : f32
    %183 = vector.broadcast %cst_67 : f32 to vector<8x16xf32>
    %184 = arith.select %182, %183, %142 : vector<8x16xf32>
    %cst_68 = arith.constant 0.000000e+00 : f32
    %185 = vector.broadcast %cst_68 : f32 to vector<8x16xf32>
    %186 = arith.select %182, %185, %172 : vector<8x16xf32>
    %cst_69 = arith.constant 0.000000e+00 : f32
    %187 = vector.broadcast %cst_69 : f32 to vector<8x16xf32>
    %188 = arith.select %182, %187, %140 : vector<8x16xf32>
    %cst_70 = arith.constant 0.000000e+00 : f32
    %189 = vector.broadcast %cst_70 : f32 to vector<8x16xf32>
    %190 = arith.select %182, %189, %170 : vector<8x16xf32>
    %191 = vector.extract_strided_slice %25 {offsets = [16, 0], sizes = [8, 64], strides = [1, 1]} : vector<120x64xf32> to vector<8x64xf32>
    %cst_71 = arith.constant dense<0.000000e+00> : vector<8x64xf32>
    %192 = tpu.matmul %184, %8, %cst_71 {dimension_numbers = #tpu.dot_dimension_numbers<[1], [0], [0], [1], [0, 0, 1, 1], [], []>} : vector<8x16xf32>, vector<16x64xf32>, vector<8x64xf32> -> vector<8x64xf32>
    %193 = arith.addf %191, %192 : vector<8x64xf32>
    %194 = vector.extract_strided_slice %193 {offsets = [0, 0], sizes = [8, 16], strides = [1, 1]} : vector<8x64xf32> to vector<8x16xf32>
    %195 = arith.negf %194 : vector<8x16xf32>
    %196 = math.exp %195 : vector<8x16xf32>
    %cst_72 = arith.constant 1.000000e+00 : f32
    %197 = vector.broadcast %cst_72 : f32 to vector<8x16xf32>
    %198 = arith.addf %197, %196 : vector<8x16xf32>
    %199 = arith.divf %197, %198 : vector<8x16xf32>
    %200 = vector.extract_strided_slice %193 {offsets = [0, 16], sizes = [8, 16], strides = [1, 1]} : vector<8x64xf32> to vector<8x16xf32>
    %201 = arith.negf %200 : vector<8x16xf32>
    %202 = math.exp %201 : vector<8x16xf32>
    %cst_73 = arith.constant 1.000000e+00 : f32
    %203 = vector.broadcast %cst_73 : f32 to vector<8x16xf32>
    %204 = arith.addf %203, %202 : vector<8x16xf32>
    %205 = arith.divf %203, %204 : vector<8x16xf32>
    %206 = vector.extract_strided_slice %193 {offsets = [0, 32], sizes = [8, 16], strides = [1, 1]} : vector<8x64xf32> to vector<8x16xf32>
    %207 = math.tanh %206 : vector<8x16xf32>
    %208 = vector.extract_strided_slice %193 {offsets = [0, 48], sizes = [8, 16], strides = [1, 1]} : vector<8x64xf32> to vector<8x16xf32>
    %209 = arith.negf %208 : vector<8x16xf32>
    %210 = math.exp %209 : vector<8x16xf32>
    %cst_74 = arith.constant 1.000000e+00 : f32
    %211 = vector.broadcast %cst_74 : f32 to vector<8x16xf32>
    %212 = arith.addf %211, %210 : vector<8x16xf32>
    %213 = arith.divf %211, %212 : vector<8x16xf32>
    %214 = arith.mulf %205, %188 : vector<8x16xf32>
    %215 = arith.mulf %199, %207 : vector<8x16xf32>
    %216 = arith.addf %214, %215 : vector<8x16xf32>
    %217 = math.tanh %216 : vector<8x16xf32>
    %218 = arith.mulf %213, %217 : vector<8x16xf32>
    %cst_75 = arith.constant dense<0.000000e+00> : vector<8x64xf32>
    %219 = tpu.matmul %218, %6, %cst_75 {dimension_numbers = #tpu.dot_dimension_numbers<[1], [0], [0], [1], [0, 0, 1, 1], [], []>} : vector<8x16xf32>, vector<16x64xf32>, vector<8x64xf32> -> vector<8x64xf32>
    %220 = vector.broadcast %14 : vector<1x64xf32> to vector<8x64xf32>
    %221 = arith.addf %219, %220 : vector<8x64xf32>
    %cst_76 = arith.constant dense<0.000000e+00> : vector<8x64xf32>
    %222 = tpu.matmul %186, %10, %cst_76 {dimension_numbers = #tpu.dot_dimension_numbers<[1], [0], [0], [1], [0, 0, 1, 1], [], []>} : vector<8x16xf32>, vector<16x64xf32>, vector<8x64xf32> -> vector<8x64xf32>
    %223 = arith.addf %221, %222 : vector<8x64xf32>
    %224 = vector.extract_strided_slice %223 {offsets = [0, 0], sizes = [8, 16], strides = [1, 1]} : vector<8x64xf32> to vector<8x16xf32>
    %225 = arith.negf %224 : vector<8x16xf32>
    %226 = math.exp %225 : vector<8x16xf32>
    %cst_77 = arith.constant 1.000000e+00 : f32
    %227 = vector.broadcast %cst_77 : f32 to vector<8x16xf32>
    %228 = arith.addf %227, %226 : vector<8x16xf32>
    %229 = arith.divf %227, %228 : vector<8x16xf32>
    %230 = vector.extract_strided_slice %223 {offsets = [0, 16], sizes = [8, 16], strides = [1, 1]} : vector<8x64xf32> to vector<8x16xf32>
    %231 = arith.negf %230 : vector<8x16xf32>
    %232 = math.exp %231 : vector<8x16xf32>
    %cst_78 = arith.constant 1.000000e+00 : f32
    %233 = vector.broadcast %cst_78 : f32 to vector<8x16xf32>
    %234 = arith.addf %233, %232 : vector<8x16xf32>
    %235 = arith.divf %233, %234 : vector<8x16xf32>
    %236 = vector.extract_strided_slice %223 {offsets = [0, 32], sizes = [8, 16], strides = [1, 1]} : vector<8x64xf32> to vector<8x16xf32>
    %237 = math.tanh %236 : vector<8x16xf32>
    %238 = vector.extract_strided_slice %223 {offsets = [0, 48], sizes = [8, 16], strides = [1, 1]} : vector<8x64xf32> to vector<8x16xf32>
    %239 = arith.negf %238 : vector<8x16xf32>
    %240 = math.exp %239 : vector<8x16xf32>
    %cst_79 = arith.constant 1.000000e+00 : f32
    %241 = vector.broadcast %cst_79 : f32 to vector<8x16xf32>
    %242 = arith.addf %241, %240 : vector<8x16xf32>
    %243 = arith.divf %241, %242 : vector<8x16xf32>
    %244 = arith.mulf %235, %190 : vector<8x16xf32>
    %245 = arith.mulf %229, %237 : vector<8x16xf32>
    %246 = arith.addf %244, %245 : vector<8x16xf32>
    %247 = math.tanh %246 : vector<8x16xf32>
    %248 = arith.mulf %243, %247 : vector<8x16xf32>
    %249 = vector.broadcast %16 : vector<1x16xf32> to vector<8x16xf32>
    %250 = arith.mulf %248, %249 : vector<8x16xf32>
    %cst_80 = arith.constant dense<0.000000e+00> : vector<8xf32>
    %251 = vector.multi_reduction <add>, %250, %cst_80 [1] : vector<8x16xf32> to vector<8xf32>
    %252 = vector.shape_cast %251 : vector<8xf32> to vector<8x1xf32>
    %253 = vector.broadcast %18 : vector<1x1xf32> to vector<8x1xf32>
    %254 = arith.addf %252, %253 : vector<8x1xf32>
    %c2_i32_81 = arith.constant 2 : i32
    %255 = arith.cmpi sle, %1, %c2_i32_81 : i32
    %cst_82 = arith.constant -1.000000e+30 : f32
    %256 = vector.broadcast %cst_82 : f32 to vector<8x1xf32>
    %257 = arith.select %255, %254, %256 : vector<8x1xf32>
    %c3_i32 = arith.constant 3 : i32
    %258 = arith.cmpi eq, %1, %c3_i32 : i32
    %cst_83 = arith.constant 0.000000e+00 : f32
    %259 = vector.broadcast %cst_83 : f32 to vector<8x16xf32>
    %260 = arith.select %258, %259, %218 : vector<8x16xf32>
    %cst_84 = arith.constant 0.000000e+00 : f32
    %261 = vector.broadcast %cst_84 : f32 to vector<8x16xf32>
    %262 = arith.select %258, %261, %248 : vector<8x16xf32>
    %cst_85 = arith.constant 0.000000e+00 : f32
    %263 = vector.broadcast %cst_85 : f32 to vector<8x16xf32>
    %264 = arith.select %258, %263, %216 : vector<8x16xf32>
    %cst_86 = arith.constant 0.000000e+00 : f32
    %265 = vector.broadcast %cst_86 : f32 to vector<8x16xf32>
    %266 = arith.select %258, %265, %246 : vector<8x16xf32>
    %267 = vector.extract_strided_slice %25 {offsets = [24, 0], sizes = [8, 64], strides = [1, 1]} : vector<120x64xf32> to vector<8x64xf32>
    %cst_87 = arith.constant dense<0.000000e+00> : vector<8x64xf32>
    %268 = tpu.matmul %260, %8, %cst_87 {dimension_numbers = #tpu.dot_dimension_numbers<[1], [0], [0], [1], [0, 0, 1, 1], [], []>} : vector<8x16xf32>, vector<16x64xf32>, vector<8x64xf32> -> vector<8x64xf32>
    %269 = arith.addf %267, %268 : vector<8x64xf32>
    %270 = vector.extract_strided_slice %269 {offsets = [0, 0], sizes = [8, 16], strides = [1, 1]} : vector<8x64xf32> to vector<8x16xf32>
    %271 = arith.negf %270 : vector<8x16xf32>
    %272 = math.exp %271 : vector<8x16xf32>
    %cst_88 = arith.constant 1.000000e+00 : f32
    %273 = vector.broadcast %cst_88 : f32 to vector<8x16xf32>
    %274 = arith.addf %273, %272 : vector<8x16xf32>
    %275 = arith.divf %273, %274 : vector<8x16xf32>
    %276 = vector.extract_strided_slice %269 {offsets = [0, 16], sizes = [8, 16], strides = [1, 1]} : vector<8x64xf32> to vector<8x16xf32>
    %277 = arith.negf %276 : vector<8x16xf32>
    %278 = math.exp %277 : vector<8x16xf32>
    %cst_89 = arith.constant 1.000000e+00 : f32
    %279 = vector.broadcast %cst_89 : f32 to vector<8x16xf32>
    %280 = arith.addf %279, %278 : vector<8x16xf32>
    %281 = arith.divf %279, %280 : vector<8x16xf32>
    %282 = vector.extract_strided_slice %269 {offsets = [0, 32], sizes = [8, 16], strides = [1, 1]} : vector<8x64xf32> to vector<8x16xf32>
    %283 = math.tanh %282 : vector<8x16xf32>
    %284 = vector.extract_strided_slice %269 {offsets = [0, 48], sizes = [8, 16], strides = [1, 1]} : vector<8x64xf32> to vector<8x16xf32>
    %285 = arith.negf %284 : vector<8x16xf32>
    %286 = math.exp %285 : vector<8x16xf32>
    %cst_90 = arith.constant 1.000000e+00 : f32
    %287 = vector.broadcast %cst_90 : f32 to vector<8x16xf32>
    %288 = arith.addf %287, %286 : vector<8x16xf32>
    %289 = arith.divf %287, %288 : vector<8x16xf32>
    %290 = arith.mulf %281, %264 : vector<8x16xf32>
    %291 = arith.mulf %275, %283 : vector<8x16xf32>
    %292 = arith.addf %290, %291 : vector<8x16xf32>
    %293 = math.tanh %292 : vector<8x16xf32>
    %294 = arith.mulf %289, %293 : vector<8x16xf32>
    %cst_91 = arith.constant dense<0.000000e+00> : vector<8x64xf32>
    %295 = tpu.matmul %294, %6, %cst_91 {dimension_numbers = #tpu.dot_dimension_numbers<[1], [0], [0], [1], [0, 0, 1, 1], [], []>} : vector<8x16xf32>, vector<16x64xf32>, vector<8x64xf32> -> vector<8x64xf32>
    %296 = vector.broadcast %14 : vector<1x64xf32> to vector<8x64xf32>
    %297 = arith.addf %295, %296 : vector<8x64xf32>
    %cst_92 = arith.constant dense<0.000000e+00> : vector<8x64xf32>
    %298 = tpu.matmul %262, %10, %cst_92 {dimension_numbers = #tpu.dot_dimension_numbers<[1], [0], [0], [1], [0, 0, 1, 1], [], []>} : vector<8x16xf32>, vector<16x64xf32>, vector<8x64xf32> -> vector<8x64xf32>
    %299 = arith.addf %297, %298 : vector<8x64xf32>
    %300 = vector.extract_strided_slice %299 {offsets = [0, 0], sizes = [8, 16], strides = [1, 1]} : vector<8x64xf32> to vector<8x16xf32>
    %301 = arith.negf %300 : vector<8x16xf32>
    %302 = math.exp %301 : vector<8x16xf32>
    %cst_93 = arith.constant 1.000000e+00 : f32
    %303 = vector.broadcast %cst_93 : f32 to vector<8x16xf32>
    %304 = arith.addf %303, %302 : vector<8x16xf32>
    %305 = arith.divf %303, %304 : vector<8x16xf32>
    %306 = vector.extract_strided_slice %299 {offsets = [0, 16], sizes = [8, 16], strides = [1, 1]} : vector<8x64xf32> to vector<8x16xf32>
    %307 = arith.negf %306 : vector<8x16xf32>
    %308 = math.exp %307 : vector<8x16xf32>
    %cst_94 = arith.constant 1.000000e+00 : f32
    %309 = vector.broadcast %cst_94 : f32 to vector<8x16xf32>
    %310 = arith.addf %309, %308 : vector<8x16xf32>
    %311 = arith.divf %309, %310 : vector<8x16xf32>
    %312 = vector.extract_strided_slice %299 {offsets = [0, 32], sizes = [8, 16], strides = [1, 1]} : vector<8x64xf32> to vector<8x16xf32>
    %313 = math.tanh %312 : vector<8x16xf32>
    %314 = vector.extract_strided_slice %299 {offsets = [0, 48], sizes = [8, 16], strides = [1, 1]} : vector<8x64xf32> to vector<8x16xf32>
    %315 = arith.negf %314 : vector<8x16xf32>
    %316 = math.exp %315 : vector<8x16xf32>
    %cst_95 = arith.constant 1.000000e+00 : f32
    %317 = vector.broadcast %cst_95 : f32 to vector<8x16xf32>
    %318 = arith.addf %317, %316 : vector<8x16xf32>
    %319 = arith.divf %317, %318 : vector<8x16xf32>
    %320 = arith.mulf %311, %266 : vector<8x16xf32>
    %321 = arith.mulf %305, %313 : vector<8x16xf32>
    %322 = arith.addf %320, %321 : vector<8x16xf32>
    %323 = math.tanh %322 : vector<8x16xf32>
    %324 = arith.mulf %319, %323 : vector<8x16xf32>
    %325 = vector.broadcast %16 : vector<1x16xf32> to vector<8x16xf32>
    %326 = arith.mulf %324, %325 : vector<8x16xf32>
    %cst_96 = arith.constant dense<0.000000e+00> : vector<8xf32>
    %327 = vector.multi_reduction <add>, %326, %cst_96 [1] : vector<8x16xf32> to vector<8xf32>
    %328 = vector.shape_cast %327 : vector<8xf32> to vector<8x1xf32>
    %329 = vector.broadcast %18 : vector<1x1xf32> to vector<8x1xf32>
    %330 = arith.addf %328, %329 : vector<8x1xf32>
    %c3_i32_97 = arith.constant 3 : i32
    %331 = arith.cmpi sle, %1, %c3_i32_97 : i32
    %cst_98 = arith.constant -1.000000e+30 : f32
    %332 = vector.broadcast %cst_98 : f32 to vector<8x1xf32>
    %333 = arith.select %331, %330, %332 : vector<8x1xf32>
    %c4_i32 = arith.constant 4 : i32
    %334 = arith.cmpi eq, %1, %c4_i32 : i32
    %cst_99 = arith.constant 0.000000e+00 : f32
    %335 = vector.broadcast %cst_99 : f32 to vector<8x16xf32>
    %336 = arith.select %334, %335, %294 : vector<8x16xf32>
    %cst_100 = arith.constant 0.000000e+00 : f32
    %337 = vector.broadcast %cst_100 : f32 to vector<8x16xf32>
    %338 = arith.select %334, %337, %324 : vector<8x16xf32>
    %cst_101 = arith.constant 0.000000e+00 : f32
    %339 = vector.broadcast %cst_101 : f32 to vector<8x16xf32>
    %340 = arith.select %334, %339, %292 : vector<8x16xf32>
    %cst_102 = arith.constant 0.000000e+00 : f32
    %341 = vector.broadcast %cst_102 : f32 to vector<8x16xf32>
    %342 = arith.select %334, %341, %322 : vector<8x16xf32>
    %343 = vector.extract_strided_slice %25 {offsets = [32, 0], sizes = [8, 64], strides = [1, 1]} : vector<120x64xf32> to vector<8x64xf32>
    %cst_103 = arith.constant dense<0.000000e+00> : vector<8x64xf32>
    %344 = tpu.matmul %336, %8, %cst_103 {dimension_numbers = #tpu.dot_dimension_numbers<[1], [0], [0], [1], [0, 0, 1, 1], [], []>} : vector<8x16xf32>, vector<16x64xf32>, vector<8x64xf32> -> vector<8x64xf32>
    %345 = arith.addf %343, %344 : vector<8x64xf32>
    %346 = vector.extract_strided_slice %345 {offsets = [0, 0], sizes = [8, 16], strides = [1, 1]} : vector<8x64xf32> to vector<8x16xf32>
    %347 = arith.negf %346 : vector<8x16xf32>
    %348 = math.exp %347 : vector<8x16xf32>
    %cst_104 = arith.constant 1.000000e+00 : f32
    %349 = vector.broadcast %cst_104 : f32 to vector<8x16xf32>
    %350 = arith.addf %349, %348 : vector<8x16xf32>
    %351 = arith.divf %349, %350 : vector<8x16xf32>
    %352 = vector.extract_strided_slice %345 {offsets = [0, 16], sizes = [8, 16], strides = [1, 1]} : vector<8x64xf32> to vector<8x16xf32>
    %353 = arith.negf %352 : vector<8x16xf32>
    %354 = math.exp %353 : vector<8x16xf32>
    %cst_105 = arith.constant 1.000000e+00 : f32
    %355 = vector.broadcast %cst_105 : f32 to vector<8x16xf32>
    %356 = arith.addf %355, %354 : vector<8x16xf32>
    %357 = arith.divf %355, %356 : vector<8x16xf32>
    %358 = vector.extract_strided_slice %345 {offsets = [0, 32], sizes = [8, 16], strides = [1, 1]} : vector<8x64xf32> to vector<8x16xf32>
    %359 = math.tanh %358 : vector<8x16xf32>
    %360 = vector.extract_strided_slice %345 {offsets = [0, 48], sizes = [8, 16], strides = [1, 1]} : vector<8x64xf32> to vector<8x16xf32>
    %361 = arith.negf %360 : vector<8x16xf32>
    %362 = math.exp %361 : vector<8x16xf32>
    %cst_106 = arith.constant 1.000000e+00 : f32
    %363 = vector.broadcast %cst_106 : f32 to vector<8x16xf32>
    %364 = arith.addf %363, %362 : vector<8x16xf32>
    %365 = arith.divf %363, %364 : vector<8x16xf32>
    %366 = arith.mulf %357, %340 : vector<8x16xf32>
    %367 = arith.mulf %351, %359 : vector<8x16xf32>
    %368 = arith.addf %366, %367 : vector<8x16xf32>
    %369 = math.tanh %368 : vector<8x16xf32>
    %370 = arith.mulf %365, %369 : vector<8x16xf32>
    %cst_107 = arith.constant dense<0.000000e+00> : vector<8x64xf32>
    %371 = tpu.matmul %370, %6, %cst_107 {dimension_numbers = #tpu.dot_dimension_numbers<[1], [0], [0], [1], [0, 0, 1, 1], [], []>} : vector<8x16xf32>, vector<16x64xf32>, vector<8x64xf32> -> vector<8x64xf32>
    %372 = vector.broadcast %14 : vector<1x64xf32> to vector<8x64xf32>
    %373 = arith.addf %371, %372 : vector<8x64xf32>
    %cst_108 = arith.constant dense<0.000000e+00> : vector<8x64xf32>
    %374 = tpu.matmul %338, %10, %cst_108 {dimension_numbers = #tpu.dot_dimension_numbers<[1], [0], [0], [1], [0, 0, 1, 1], [], []>} : vector<8x16xf32>, vector<16x64xf32>, vector<8x64xf32> -> vector<8x64xf32>
    %375 = arith.addf %373, %374 : vector<8x64xf32>
    %376 = vector.extract_strided_slice %375 {offsets = [0, 0], sizes = [8, 16], strides = [1, 1]} : vector<8x64xf32> to vector<8x16xf32>
    %377 = arith.negf %376 : vector<8x16xf32>
    %378 = math.exp %377 : vector<8x16xf32>
    %cst_109 = arith.constant 1.000000e+00 : f32
    %379 = vector.broadcast %cst_109 : f32 to vector<8x16xf32>
    %380 = arith.addf %379, %378 : vector<8x16xf32>
    %381 = arith.divf %379, %380 : vector<8x16xf32>
    %382 = vector.extract_strided_slice %375 {offsets = [0, 16], sizes = [8, 16], strides = [1, 1]} : vector<8x64xf32> to vector<8x16xf32>
    %383 = arith.negf %382 : vector<8x16xf32>
    %384 = math.exp %383 : vector<8x16xf32>
    %cst_110 = arith.constant 1.000000e+00 : f32
    %385 = vector.broadcast %cst_110 : f32 to vector<8x16xf32>
    %386 = arith.addf %385, %384 : vector<8x16xf32>
    %387 = arith.divf %385, %386 : vector<8x16xf32>
    %388 = vector.extract_strided_slice %375 {offsets = [0, 32], sizes = [8, 16], strides = [1, 1]} : vector<8x64xf32> to vector<8x16xf32>
    %389 = math.tanh %388 : vector<8x16xf32>
    %390 = vector.extract_strided_slice %375 {offsets = [0, 48], sizes = [8, 16], strides = [1, 1]} : vector<8x64xf32> to vector<8x16xf32>
    %391 = arith.negf %390 : vector<8x16xf32>
    %392 = math.exp %391 : vector<8x16xf32>
    %cst_111 = arith.constant 1.000000e+00 : f32
    %393 = vector.broadcast %cst_111 : f32 to vector<8x16xf32>
    %394 = arith.addf %393, %392 : vector<8x16xf32>
    %395 = arith.divf %393, %394 : vector<8x16xf32>
    %396 = arith.mulf %387, %342 : vector<8x16xf32>
    %397 = arith.mulf %381, %389 : vector<8x16xf32>
    %398 = arith.addf %396, %397 : vector<8x16xf32>
    %399 = math.tanh %398 : vector<8x16xf32>
    %400 = arith.mulf %395, %399 : vector<8x16xf32>
    %401 = vector.broadcast %16 : vector<1x16xf32> to vector<8x16xf32>
    %402 = arith.mulf %400, %401 : vector<8x16xf32>
    %cst_112 = arith.constant dense<0.000000e+00> : vector<8xf32>
    %403 = vector.multi_reduction <add>, %402, %cst_112 [1] : vector<8x16xf32> to vector<8xf32>
    %404 = vector.shape_cast %403 : vector<8xf32> to vector<8x1xf32>
    %405 = vector.broadcast %18 : vector<1x1xf32> to vector<8x1xf32>
    %406 = arith.addf %404, %405 : vector<8x1xf32>
    %c4_i32_113 = arith.constant 4 : i32
    %407 = arith.cmpi sle, %1, %c4_i32_113 : i32
    %cst_114 = arith.constant -1.000000e+30 : f32
    %408 = vector.broadcast %cst_114 : f32 to vector<8x1xf32>
    %409 = arith.select %407, %406, %408 : vector<8x1xf32>
    %c5_i32 = arith.constant 5 : i32
    %410 = arith.cmpi eq, %1, %c5_i32 : i32
    %cst_115 = arith.constant 0.000000e+00 : f32
    %411 = vector.broadcast %cst_115 : f32 to vector<8x16xf32>
    %412 = arith.select %410, %411, %370 : vector<8x16xf32>
    %cst_116 = arith.constant 0.000000e+00 : f32
    %413 = vector.broadcast %cst_116 : f32 to vector<8x16xf32>
    %414 = arith.select %410, %413, %400 : vector<8x16xf32>
    %cst_117 = arith.constant 0.000000e+00 : f32
    %415 = vector.broadcast %cst_117 : f32 to vector<8x16xf32>
    %416 = arith.select %410, %415, %368 : vector<8x16xf32>
    %cst_118 = arith.constant 0.000000e+00 : f32
    %417 = vector.broadcast %cst_118 : f32 to vector<8x16xf32>
    %418 = arith.select %410, %417, %398 : vector<8x16xf32>
    %419 = vector.extract_strided_slice %25 {offsets = [40, 0], sizes = [8, 64], strides = [1, 1]} : vector<120x64xf32> to vector<8x64xf32>
    %cst_119 = arith.constant dense<0.000000e+00> : vector<8x64xf32>
    %420 = tpu.matmul %412, %8, %cst_119 {dimension_numbers = #tpu.dot_dimension_numbers<[1], [0], [0], [1], [0, 0, 1, 1], [], []>} : vector<8x16xf32>, vector<16x64xf32>, vector<8x64xf32> -> vector<8x64xf32>
    %421 = arith.addf %419, %420 : vector<8x64xf32>
    %422 = vector.extract_strided_slice %421 {offsets = [0, 0], sizes = [8, 16], strides = [1, 1]} : vector<8x64xf32> to vector<8x16xf32>
    %423 = arith.negf %422 : vector<8x16xf32>
    %424 = math.exp %423 : vector<8x16xf32>
    %cst_120 = arith.constant 1.000000e+00 : f32
    %425 = vector.broadcast %cst_120 : f32 to vector<8x16xf32>
    %426 = arith.addf %425, %424 : vector<8x16xf32>
    %427 = arith.divf %425, %426 : vector<8x16xf32>
    %428 = vector.extract_strided_slice %421 {offsets = [0, 16], sizes = [8, 16], strides = [1, 1]} : vector<8x64xf32> to vector<8x16xf32>
    %429 = arith.negf %428 : vector<8x16xf32>
    %430 = math.exp %429 : vector<8x16xf32>
    %cst_121 = arith.constant 1.000000e+00 : f32
    %431 = vector.broadcast %cst_121 : f32 to vector<8x16xf32>
    %432 = arith.addf %431, %430 : vector<8x16xf32>
    %433 = arith.divf %431, %432 : vector<8x16xf32>
    %434 = vector.extract_strided_slice %421 {offsets = [0, 32], sizes = [8, 16], strides = [1, 1]} : vector<8x64xf32> to vector<8x16xf32>
    %435 = math.tanh %434 : vector<8x16xf32>
    %436 = vector.extract_strided_slice %421 {offsets = [0, 48], sizes = [8, 16], strides = [1, 1]} : vector<8x64xf32> to vector<8x16xf32>
    %437 = arith.negf %436 : vector<8x16xf32>
    %438 = math.exp %437 : vector<8x16xf32>
    %cst_122 = arith.constant 1.000000e+00 : f32
    %439 = vector.broadcast %cst_122 : f32 to vector<8x16xf32>
    %440 = arith.addf %439, %438 : vector<8x16xf32>
    %441 = arith.divf %439, %440 : vector<8x16xf32>
    %442 = arith.mulf %433, %416 : vector<8x16xf32>
    %443 = arith.mulf %427, %435 : vector<8x16xf32>
    %444 = arith.addf %442, %443 : vector<8x16xf32>
    %445 = math.tanh %444 : vector<8x16xf32>
    %446 = arith.mulf %441, %445 : vector<8x16xf32>
    %cst_123 = arith.constant dense<0.000000e+00> : vector<8x64xf32>
    %447 = tpu.matmul %446, %6, %cst_123 {dimension_numbers = #tpu.dot_dimension_numbers<[1], [0], [0], [1], [0, 0, 1, 1], [], []>} : vector<8x16xf32>, vector<16x64xf32>, vector<8x64xf32> -> vector<8x64xf32>
    %448 = vector.broadcast %14 : vector<1x64xf32> to vector<8x64xf32>
    %449 = arith.addf %447, %448 : vector<8x64xf32>
    %cst_124 = arith.constant dense<0.000000e+00> : vector<8x64xf32>
    %450 = tpu.matmul %414, %10, %cst_124 {dimension_numbers = #tpu.dot_dimension_numbers<[1], [0], [0], [1], [0, 0, 1, 1], [], []>} : vector<8x16xf32>, vector<16x64xf32>, vector<8x64xf32> -> vector<8x64xf32>
    %451 = arith.addf %449, %450 : vector<8x64xf32>
    %452 = vector.extract_strided_slice %451 {offsets = [0, 0], sizes = [8, 16], strides = [1, 1]} : vector<8x64xf32> to vector<8x16xf32>
    %453 = arith.negf %452 : vector<8x16xf32>
    %454 = math.exp %453 : vector<8x16xf32>
    %cst_125 = arith.constant 1.000000e+00 : f32
    %455 = vector.broadcast %cst_125 : f32 to vector<8x16xf32>
    %456 = arith.addf %455, %454 : vector<8x16xf32>
    %457 = arith.divf %455, %456 : vector<8x16xf32>
    %458 = vector.extract_strided_slice %451 {offsets = [0, 16], sizes = [8, 16], strides = [1, 1]} : vector<8x64xf32> to vector<8x16xf32>
    %459 = arith.negf %458 : vector<8x16xf32>
    %460 = math.exp %459 : vector<8x16xf32>
    %cst_126 = arith.constant 1.000000e+00 : f32
    %461 = vector.broadcast %cst_126 : f32 to vector<8x16xf32>
    %462 = arith.addf %461, %460 : vector<8x16xf32>
    %463 = arith.divf %461, %462 : vector<8x16xf32>
    %464 = vector.extract_strided_slice %451 {offsets = [0, 32], sizes = [8, 16], strides = [1, 1]} : vector<8x64xf32> to vector<8x16xf32>
    %465 = math.tanh %464 : vector<8x16xf32>
    %466 = vector.extract_strided_slice %451 {offsets = [0, 48], sizes = [8, 16], strides = [1, 1]} : vector<8x64xf32> to vector<8x16xf32>
    %467 = arith.negf %466 : vector<8x16xf32>
    %468 = math.exp %467 : vector<8x16xf32>
    %cst_127 = arith.constant 1.000000e+00 : f32
    %469 = vector.broadcast %cst_127 : f32 to vector<8x16xf32>
    %470 = arith.addf %469, %468 : vector<8x16xf32>
    %471 = arith.divf %469, %470 : vector<8x16xf32>
    %472 = arith.mulf %463, %418 : vector<8x16xf32>
    %473 = arith.mulf %457, %465 : vector<8x16xf32>
    %474 = arith.addf %472, %473 : vector<8x16xf32>
    %475 = math.tanh %474 : vector<8x16xf32>
    %476 = arith.mulf %471, %475 : vector<8x16xf32>
    %477 = vector.broadcast %16 : vector<1x16xf32> to vector<8x16xf32>
    %478 = arith.mulf %476, %477 : vector<8x16xf32>
    %cst_128 = arith.constant dense<0.000000e+00> : vector<8xf32>
    %479 = vector.multi_reduction <add>, %478, %cst_128 [1] : vector<8x16xf32> to vector<8xf32>
    %480 = vector.shape_cast %479 : vector<8xf32> to vector<8x1xf32>
    %481 = vector.broadcast %18 : vector<1x1xf32> to vector<8x1xf32>
    %482 = arith.addf %480, %481 : vector<8x1xf32>
    %c5_i32_129 = arith.constant 5 : i32
    %483 = arith.cmpi sle, %1, %c5_i32_129 : i32
    %cst_130 = arith.constant -1.000000e+30 : f32
    %484 = vector.broadcast %cst_130 : f32 to vector<8x1xf32>
    %485 = arith.select %483, %482, %484 : vector<8x1xf32>
    %c6_i32 = arith.constant 6 : i32
    %486 = arith.cmpi eq, %1, %c6_i32 : i32
    %cst_131 = arith.constant 0.000000e+00 : f32
    %487 = vector.broadcast %cst_131 : f32 to vector<8x16xf32>
    %488 = arith.select %486, %487, %446 : vector<8x16xf32>
    %cst_132 = arith.constant 0.000000e+00 : f32
    %489 = vector.broadcast %cst_132 : f32 to vector<8x16xf32>
    %490 = arith.select %486, %489, %476 : vector<8x16xf32>
    %cst_133 = arith.constant 0.000000e+00 : f32
    %491 = vector.broadcast %cst_133 : f32 to vector<8x16xf32>
    %492 = arith.select %486, %491, %444 : vector<8x16xf32>
    %cst_134 = arith.constant 0.000000e+00 : f32
    %493 = vector.broadcast %cst_134 : f32 to vector<8x16xf32>
    %494 = arith.select %486, %493, %474 : vector<8x16xf32>
    %495 = vector.extract_strided_slice %25 {offsets = [48, 0], sizes = [8, 64], strides = [1, 1]} : vector<120x64xf32> to vector<8x64xf32>
    %cst_135 = arith.constant dense<0.000000e+00> : vector<8x64xf32>
    %496 = tpu.matmul %488, %8, %cst_135 {dimension_numbers = #tpu.dot_dimension_numbers<[1], [0], [0], [1], [0, 0, 1, 1], [], []>} : vector<8x16xf32>, vector<16x64xf32>, vector<8x64xf32> -> vector<8x64xf32>
    %497 = arith.addf %495, %496 : vector<8x64xf32>
    %498 = vector.extract_strided_slice %497 {offsets = [0, 0], sizes = [8, 16], strides = [1, 1]} : vector<8x64xf32> to vector<8x16xf32>
    %499 = arith.negf %498 : vector<8x16xf32>
    %500 = math.exp %499 : vector<8x16xf32>
    %cst_136 = arith.constant 1.000000e+00 : f32
    %501 = vector.broadcast %cst_136 : f32 to vector<8x16xf32>
    %502 = arith.addf %501, %500 : vector<8x16xf32>
    %503 = arith.divf %501, %502 : vector<8x16xf32>
    %504 = vector.extract_strided_slice %497 {offsets = [0, 16], sizes = [8, 16], strides = [1, 1]} : vector<8x64xf32> to vector<8x16xf32>
    %505 = arith.negf %504 : vector<8x16xf32>
    %506 = math.exp %505 : vector<8x16xf32>
    %cst_137 = arith.constant 1.000000e+00 : f32
    %507 = vector.broadcast %cst_137 : f32 to vector<8x16xf32>
    %508 = arith.addf %507, %506 : vector<8x16xf32>
    %509 = arith.divf %507, %508 : vector<8x16xf32>
    %510 = vector.extract_strided_slice %497 {offsets = [0, 32], sizes = [8, 16], strides = [1, 1]} : vector<8x64xf32> to vector<8x16xf32>
    %511 = math.tanh %510 : vector<8x16xf32>
    %512 = vector.extract_strided_slice %497 {offsets = [0, 48], sizes = [8, 16], strides = [1, 1]} : vector<8x64xf32> to vector<8x16xf32>
    %513 = arith.negf %512 : vector<8x16xf32>
    %514 = math.exp %513 : vector<8x16xf32>
    %cst_138 = arith.constant 1.000000e+00 : f32
    %515 = vector.broadcast %cst_138 : f32 to vector<8x16xf32>
    %516 = arith.addf %515, %514 : vector<8x16xf32>
    %517 = arith.divf %515, %516 : vector<8x16xf32>
    %518 = arith.mulf %509, %492 : vector<8x16xf32>
    %519 = arith.mulf %503, %511 : vector<8x16xf32>
    %520 = arith.addf %518, %519 : vector<8x16xf32>
    %521 = math.tanh %520 : vector<8x16xf32>
    %522 = arith.mulf %517, %521 : vector<8x16xf32>
    %cst_139 = arith.constant dense<0.000000e+00> : vector<8x64xf32>
    %523 = tpu.matmul %522, %6, %cst_139 {dimension_numbers = #tpu.dot_dimension_numbers<[1], [0], [0], [1], [0, 0, 1, 1], [], []>} : vector<8x16xf32>, vector<16x64xf32>, vector<8x64xf32> -> vector<8x64xf32>
    %524 = vector.broadcast %14 : vector<1x64xf32> to vector<8x64xf32>
    %525 = arith.addf %523, %524 : vector<8x64xf32>
    %cst_140 = arith.constant dense<0.000000e+00> : vector<8x64xf32>
    %526 = tpu.matmul %490, %10, %cst_140 {dimension_numbers = #tpu.dot_dimension_numbers<[1], [0], [0], [1], [0, 0, 1, 1], [], []>} : vector<8x16xf32>, vector<16x64xf32>, vector<8x64xf32> -> vector<8x64xf32>
    %527 = arith.addf %525, %526 : vector<8x64xf32>
    %528 = vector.extract_strided_slice %527 {offsets = [0, 0], sizes = [8, 16], strides = [1, 1]} : vector<8x64xf32> to vector<8x16xf32>
    %529 = arith.negf %528 : vector<8x16xf32>
    %530 = math.exp %529 : vector<8x16xf32>
    %cst_141 = arith.constant 1.000000e+00 : f32
    %531 = vector.broadcast %cst_141 : f32 to vector<8x16xf32>
    %532 = arith.addf %531, %530 : vector<8x16xf32>
    %533 = arith.divf %531, %532 : vector<8x16xf32>
    %534 = vector.extract_strided_slice %527 {offsets = [0, 16], sizes = [8, 16], strides = [1, 1]} : vector<8x64xf32> to vector<8x16xf32>
    %535 = arith.negf %534 : vector<8x16xf32>
    %536 = math.exp %535 : vector<8x16xf32>
    %cst_142 = arith.constant 1.000000e+00 : f32
    %537 = vector.broadcast %cst_142 : f32 to vector<8x16xf32>
    %538 = arith.addf %537, %536 : vector<8x16xf32>
    %539 = arith.divf %537, %538 : vector<8x16xf32>
    %540 = vector.extract_strided_slice %527 {offsets = [0, 32], sizes = [8, 16], strides = [1, 1]} : vector<8x64xf32> to vector<8x16xf32>
    %541 = math.tanh %540 : vector<8x16xf32>
    %542 = vector.extract_strided_slice %527 {offsets = [0, 48], sizes = [8, 16], strides = [1, 1]} : vector<8x64xf32> to vector<8x16xf32>
    %543 = arith.negf %542 : vector<8x16xf32>
    %544 = math.exp %543 : vector<8x16xf32>
    %cst_143 = arith.constant 1.000000e+00 : f32
    %545 = vector.broadcast %cst_143 : f32 to vector<8x16xf32>
    %546 = arith.addf %545, %544 : vector<8x16xf32>
    %547 = arith.divf %545, %546 : vector<8x16xf32>
    %548 = arith.mulf %539, %494 : vector<8x16xf32>
    %549 = arith.mulf %533, %541 : vector<8x16xf32>
    %550 = arith.addf %548, %549 : vector<8x16xf32>
    %551 = math.tanh %550 : vector<8x16xf32>
    %552 = arith.mulf %547, %551 : vector<8x16xf32>
    %553 = vector.broadcast %16 : vector<1x16xf32> to vector<8x16xf32>
    %554 = arith.mulf %552, %553 : vector<8x16xf32>
    %cst_144 = arith.constant dense<0.000000e+00> : vector<8xf32>
    %555 = vector.multi_reduction <add>, %554, %cst_144 [1] : vector<8x16xf32> to vector<8xf32>
    %556 = vector.shape_cast %555 : vector<8xf32> to vector<8x1xf32>
    %557 = vector.broadcast %18 : vector<1x1xf32> to vector<8x1xf32>
    %558 = arith.addf %556, %557 : vector<8x1xf32>
    %c6_i32_145 = arith.constant 6 : i32
    %559 = arith.cmpi sle, %1, %c6_i32_145 : i32
    %cst_146 = arith.constant -1.000000e+30 : f32
    %560 = vector.broadcast %cst_146 : f32 to vector<8x1xf32>
    %561 = arith.select %559, %558, %560 : vector<8x1xf32>
    %c7_i32 = arith.constant 7 : i32
    %562 = arith.cmpi eq, %1, %c7_i32 : i32
    %cst_147 = arith.constant 0.000000e+00 : f32
    %563 = vector.broadcast %cst_147 : f32 to vector<8x16xf32>
    %564 = arith.select %562, %563, %522 : vector<8x16xf32>
    %cst_148 = arith.constant 0.000000e+00 : f32
    %565 = vector.broadcast %cst_148 : f32 to vector<8x16xf32>
    %566 = arith.select %562, %565, %552 : vector<8x16xf32>
    %cst_149 = arith.constant 0.000000e+00 : f32
    %567 = vector.broadcast %cst_149 : f32 to vector<8x16xf32>
    %568 = arith.select %562, %567, %520 : vector<8x16xf32>
    %cst_150 = arith.constant 0.000000e+00 : f32
    %569 = vector.broadcast %cst_150 : f32 to vector<8x16xf32>
    %570 = arith.select %562, %569, %550 : vector<8x16xf32>
    %571 = vector.extract_strided_slice %25 {offsets = [56, 0], sizes = [8, 64], strides = [1, 1]} : vector<120x64xf32> to vector<8x64xf32>
    %cst_151 = arith.constant dense<0.000000e+00> : vector<8x64xf32>
    %572 = tpu.matmul %564, %8, %cst_151 {dimension_numbers = #tpu.dot_dimension_numbers<[1], [0], [0], [1], [0, 0, 1, 1], [], []>} : vector<8x16xf32>, vector<16x64xf32>, vector<8x64xf32> -> vector<8x64xf32>
    %573 = arith.addf %571, %572 : vector<8x64xf32>
    %574 = vector.extract_strided_slice %573 {offsets = [0, 0], sizes = [8, 16], strides = [1, 1]} : vector<8x64xf32> to vector<8x16xf32>
    %575 = arith.negf %574 : vector<8x16xf32>
    %576 = math.exp %575 : vector<8x16xf32>
    %cst_152 = arith.constant 1.000000e+00 : f32
    %577 = vector.broadcast %cst_152 : f32 to vector<8x16xf32>
    %578 = arith.addf %577, %576 : vector<8x16xf32>
    %579 = arith.divf %577, %578 : vector<8x16xf32>
    %580 = vector.extract_strided_slice %573 {offsets = [0, 16], sizes = [8, 16], strides = [1, 1]} : vector<8x64xf32> to vector<8x16xf32>
    %581 = arith.negf %580 : vector<8x16xf32>
    %582 = math.exp %581 : vector<8x16xf32>
    %cst_153 = arith.constant 1.000000e+00 : f32
    %583 = vector.broadcast %cst_153 : f32 to vector<8x16xf32>
    %584 = arith.addf %583, %582 : vector<8x16xf32>
    %585 = arith.divf %583, %584 : vector<8x16xf32>
    %586 = vector.extract_strided_slice %573 {offsets = [0, 32], sizes = [8, 16], strides = [1, 1]} : vector<8x64xf32> to vector<8x16xf32>
    %587 = math.tanh %586 : vector<8x16xf32>
    %588 = vector.extract_strided_slice %573 {offsets = [0, 48], sizes = [8, 16], strides = [1, 1]} : vector<8x64xf32> to vector<8x16xf32>
    %589 = arith.negf %588 : vector<8x16xf32>
    %590 = math.exp %589 : vector<8x16xf32>
    %cst_154 = arith.constant 1.000000e+00 : f32
    %591 = vector.broadcast %cst_154 : f32 to vector<8x16xf32>
    %592 = arith.addf %591, %590 : vector<8x16xf32>
    %593 = arith.divf %591, %592 : vector<8x16xf32>
    %594 = arith.mulf %585, %568 : vector<8x16xf32>
    %595 = arith.mulf %579, %587 : vector<8x16xf32>
    %596 = arith.addf %594, %595 : vector<8x16xf32>
    %597 = math.tanh %596 : vector<8x16xf32>
    %598 = arith.mulf %593, %597 : vector<8x16xf32>
    %cst_155 = arith.constant dense<0.000000e+00> : vector<8x64xf32>
    %599 = tpu.matmul %598, %6, %cst_155 {dimension_numbers = #tpu.dot_dimension_numbers<[1], [0], [0], [1], [0, 0, 1, 1], [], []>} : vector<8x16xf32>, vector<16x64xf32>, vector<8x64xf32> -> vector<8x64xf32>
    %600 = vector.broadcast %14 : vector<1x64xf32> to vector<8x64xf32>
    %601 = arith.addf %599, %600 : vector<8x64xf32>
    %cst_156 = arith.constant dense<0.000000e+00> : vector<8x64xf32>
    %602 = tpu.matmul %566, %10, %cst_156 {dimension_numbers = #tpu.dot_dimension_numbers<[1], [0], [0], [1], [0, 0, 1, 1], [], []>} : vector<8x16xf32>, vector<16x64xf32>, vector<8x64xf32> -> vector<8x64xf32>
    %603 = arith.addf %601, %602 : vector<8x64xf32>
    %604 = vector.extract_strided_slice %603 {offsets = [0, 0], sizes = [8, 16], strides = [1, 1]} : vector<8x64xf32> to vector<8x16xf32>
    %605 = arith.negf %604 : vector<8x16xf32>
    %606 = math.exp %605 : vector<8x16xf32>
    %cst_157 = arith.constant 1.000000e+00 : f32
    %607 = vector.broadcast %cst_157 : f32 to vector<8x16xf32>
    %608 = arith.addf %607, %606 : vector<8x16xf32>
    %609 = arith.divf %607, %608 : vector<8x16xf32>
    %610 = vector.extract_strided_slice %603 {offsets = [0, 16], sizes = [8, 16], strides = [1, 1]} : vector<8x64xf32> to vector<8x16xf32>
    %611 = arith.negf %610 : vector<8x16xf32>
    %612 = math.exp %611 : vector<8x16xf32>
    %cst_158 = arith.constant 1.000000e+00 : f32
    %613 = vector.broadcast %cst_158 : f32 to vector<8x16xf32>
    %614 = arith.addf %613, %612 : vector<8x16xf32>
    %615 = arith.divf %613, %614 : vector<8x16xf32>
    %616 = vector.extract_strided_slice %603 {offsets = [0, 32], sizes = [8, 16], strides = [1, 1]} : vector<8x64xf32> to vector<8x16xf32>
    %617 = math.tanh %616 : vector<8x16xf32>
    %618 = vector.extract_strided_slice %603 {offsets = [0, 48], sizes = [8, 16], strides = [1, 1]} : vector<8x64xf32> to vector<8x16xf32>
    %619 = arith.negf %618 : vector<8x16xf32>
    %620 = math.exp %619 : vector<8x16xf32>
    %cst_159 = arith.constant 1.000000e+00 : f32
    %621 = vector.broadcast %cst_159 : f32 to vector<8x16xf32>
    %622 = arith.addf %621, %620 : vector<8x16xf32>
    %623 = arith.divf %621, %622 : vector<8x16xf32>
    %624 = arith.mulf %615, %570 : vector<8x16xf32>
    %625 = arith.mulf %609, %617 : vector<8x16xf32>
    %626 = arith.addf %624, %625 : vector<8x16xf32>
    %627 = math.tanh %626 : vector<8x16xf32>
    %628 = arith.mulf %623, %627 : vector<8x16xf32>
    %629 = vector.broadcast %16 : vector<1x16xf32> to vector<8x16xf32>
    %630 = arith.mulf %628, %629 : vector<8x16xf32>
    %cst_160 = arith.constant dense<0.000000e+00> : vector<8xf32>
    %631 = vector.multi_reduction <add>, %630, %cst_160 [1] : vector<8x16xf32> to vector<8xf32>
    %632 = vector.shape_cast %631 : vector<8xf32> to vector<8x1xf32>
    %633 = vector.broadcast %18 : vector<1x1xf32> to vector<8x1xf32>
    %634 = arith.addf %632, %633 : vector<8x1xf32>
    %c7_i32_161 = arith.constant 7 : i32
    %635 = arith.cmpi sle, %1, %c7_i32_161 : i32
    %cst_162 = arith.constant -1.000000e+30 : f32
    %636 = vector.broadcast %cst_162 : f32 to vector<8x1xf32>
    %637 = arith.select %635, %634, %636 : vector<8x1xf32>
    %c8_i32 = arith.constant 8 : i32
    %638 = arith.cmpi eq, %1, %c8_i32 : i32
    %cst_163 = arith.constant 0.000000e+00 : f32
    %639 = vector.broadcast %cst_163 : f32 to vector<8x16xf32>
    %640 = arith.select %638, %639, %598 : vector<8x16xf32>
    %cst_164 = arith.constant 0.000000e+00 : f32
    %641 = vector.broadcast %cst_164 : f32 to vector<8x16xf32>
    %642 = arith.select %638, %641, %628 : vector<8x16xf32>
    %cst_165 = arith.constant 0.000000e+00 : f32
    %643 = vector.broadcast %cst_165 : f32 to vector<8x16xf32>
    %644 = arith.select %638, %643, %596 : vector<8x16xf32>
    %cst_166 = arith.constant 0.000000e+00 : f32
    %645 = vector.broadcast %cst_166 : f32 to vector<8x16xf32>
    %646 = arith.select %638, %645, %626 : vector<8x16xf32>
    %647 = vector.extract_strided_slice %25 {offsets = [64, 0], sizes = [8, 64], strides = [1, 1]} : vector<120x64xf32> to vector<8x64xf32>
    %cst_167 = arith.constant dense<0.000000e+00> : vector<8x64xf32>
    %648 = tpu.matmul %640, %8, %cst_167 {dimension_numbers = #tpu.dot_dimension_numbers<[1], [0], [0], [1], [0, 0, 1, 1], [], []>} : vector<8x16xf32>, vector<16x64xf32>, vector<8x64xf32> -> vector<8x64xf32>
    %649 = arith.addf %647, %648 : vector<8x64xf32>
    %650 = vector.extract_strided_slice %649 {offsets = [0, 0], sizes = [8, 16], strides = [1, 1]} : vector<8x64xf32> to vector<8x16xf32>
    %651 = arith.negf %650 : vector<8x16xf32>
    %652 = math.exp %651 : vector<8x16xf32>
    %cst_168 = arith.constant 1.000000e+00 : f32
    %653 = vector.broadcast %cst_168 : f32 to vector<8x16xf32>
    %654 = arith.addf %653, %652 : vector<8x16xf32>
    %655 = arith.divf %653, %654 : vector<8x16xf32>
    %656 = vector.extract_strided_slice %649 {offsets = [0, 16], sizes = [8, 16], strides = [1, 1]} : vector<8x64xf32> to vector<8x16xf32>
    %657 = arith.negf %656 : vector<8x16xf32>
    %658 = math.exp %657 : vector<8x16xf32>
    %cst_169 = arith.constant 1.000000e+00 : f32
    %659 = vector.broadcast %cst_169 : f32 to vector<8x16xf32>
    %660 = arith.addf %659, %658 : vector<8x16xf32>
    %661 = arith.divf %659, %660 : vector<8x16xf32>
    %662 = vector.extract_strided_slice %649 {offsets = [0, 32], sizes = [8, 16], strides = [1, 1]} : vector<8x64xf32> to vector<8x16xf32>
    %663 = math.tanh %662 : vector<8x16xf32>
    %664 = vector.extract_strided_slice %649 {offsets = [0, 48], sizes = [8, 16], strides = [1, 1]} : vector<8x64xf32> to vector<8x16xf32>
    %665 = arith.negf %664 : vector<8x16xf32>
    %666 = math.exp %665 : vector<8x16xf32>
    %cst_170 = arith.constant 1.000000e+00 : f32
    %667 = vector.broadcast %cst_170 : f32 to vector<8x16xf32>
    %668 = arith.addf %667, %666 : vector<8x16xf32>
    %669 = arith.divf %667, %668 : vector<8x16xf32>
    %670 = arith.mulf %661, %644 : vector<8x16xf32>
    %671 = arith.mulf %655, %663 : vector<8x16xf32>
    %672 = arith.addf %670, %671 : vector<8x16xf32>
    %673 = math.tanh %672 : vector<8x16xf32>
    %674 = arith.mulf %669, %673 : vector<8x16xf32>
    %cst_171 = arith.constant dense<0.000000e+00> : vector<8x64xf32>
    %675 = tpu.matmul %674, %6, %cst_171 {dimension_numbers = #tpu.dot_dimension_numbers<[1], [0], [0], [1], [0, 0, 1, 1], [], []>} : vector<8x16xf32>, vector<16x64xf32>, vector<8x64xf32> -> vector<8x64xf32>
    %676 = vector.broadcast %14 : vector<1x64xf32> to vector<8x64xf32>
    %677 = arith.addf %675, %676 : vector<8x64xf32>
    %cst_172 = arith.constant dense<0.000000e+00> : vector<8x64xf32>
    %678 = tpu.matmul %642, %10, %cst_172 {dimension_numbers = #tpu.dot_dimension_numbers<[1], [0], [0], [1], [0, 0, 1, 1], [], []>} : vector<8x16xf32>, vector<16x64xf32>, vector<8x64xf32> -> vector<8x64xf32>
    %679 = arith.addf %677, %678 : vector<8x64xf32>
    %680 = vector.extract_strided_slice %679 {offsets = [0, 0], sizes = [8, 16], strides = [1, 1]} : vector<8x64xf32> to vector<8x16xf32>
    %681 = arith.negf %680 : vector<8x16xf32>
    %682 = math.exp %681 : vector<8x16xf32>
    %cst_173 = arith.constant 1.000000e+00 : f32
    %683 = vector.broadcast %cst_173 : f32 to vector<8x16xf32>
    %684 = arith.addf %683, %682 : vector<8x16xf32>
    %685 = arith.divf %683, %684 : vector<8x16xf32>
    %686 = vector.extract_strided_slice %679 {offsets = [0, 16], sizes = [8, 16], strides = [1, 1]} : vector<8x64xf32> to vector<8x16xf32>
    %687 = arith.negf %686 : vector<8x16xf32>
    %688 = math.exp %687 : vector<8x16xf32>
    %cst_174 = arith.constant 1.000000e+00 : f32
    %689 = vector.broadcast %cst_174 : f32 to vector<8x16xf32>
    %690 = arith.addf %689, %688 : vector<8x16xf32>
    %691 = arith.divf %689, %690 : vector<8x16xf32>
    %692 = vector.extract_strided_slice %679 {offsets = [0, 32], sizes = [8, 16], strides = [1, 1]} : vector<8x64xf32> to vector<8x16xf32>
    %693 = math.tanh %692 : vector<8x16xf32>
    %694 = vector.extract_strided_slice %679 {offsets = [0, 48], sizes = [8, 16], strides = [1, 1]} : vector<8x64xf32> to vector<8x16xf32>
    %695 = arith.negf %694 : vector<8x16xf32>
    %696 = math.exp %695 : vector<8x16xf32>
    %cst_175 = arith.constant 1.000000e+00 : f32
    %697 = vector.broadcast %cst_175 : f32 to vector<8x16xf32>
    %698 = arith.addf %697, %696 : vector<8x16xf32>
    %699 = arith.divf %697, %698 : vector<8x16xf32>
    %700 = arith.mulf %691, %646 : vector<8x16xf32>
    %701 = arith.mulf %685, %693 : vector<8x16xf32>
    %702 = arith.addf %700, %701 : vector<8x16xf32>
    %703 = math.tanh %702 : vector<8x16xf32>
    %704 = arith.mulf %699, %703 : vector<8x16xf32>
    %705 = vector.broadcast %16 : vector<1x16xf32> to vector<8x16xf32>
    %706 = arith.mulf %704, %705 : vector<8x16xf32>
    %cst_176 = arith.constant dense<0.000000e+00> : vector<8xf32>
    %707 = vector.multi_reduction <add>, %706, %cst_176 [1] : vector<8x16xf32> to vector<8xf32>
    %708 = vector.shape_cast %707 : vector<8xf32> to vector<8x1xf32>
    %709 = vector.broadcast %18 : vector<1x1xf32> to vector<8x1xf32>
    %710 = arith.addf %708, %709 : vector<8x1xf32>
    %c8_i32_177 = arith.constant 8 : i32
    %711 = arith.cmpi sle, %1, %c8_i32_177 : i32
    %cst_178 = arith.constant -1.000000e+30 : f32
    %712 = vector.broadcast %cst_178 : f32 to vector<8x1xf32>
    %713 = arith.select %711, %710, %712 : vector<8x1xf32>
    %c9_i32 = arith.constant 9 : i32
    %714 = arith.cmpi eq, %1, %c9_i32 : i32
    %cst_179 = arith.constant 0.000000e+00 : f32
    %715 = vector.broadcast %cst_179 : f32 to vector<8x16xf32>
    %716 = arith.select %714, %715, %674 : vector<8x16xf32>
    %cst_180 = arith.constant 0.000000e+00 : f32
    %717 = vector.broadcast %cst_180 : f32 to vector<8x16xf32>
    %718 = arith.select %714, %717, %704 : vector<8x16xf32>
    %cst_181 = arith.constant 0.000000e+00 : f32
    %719 = vector.broadcast %cst_181 : f32 to vector<8x16xf32>
    %720 = arith.select %714, %719, %672 : vector<8x16xf32>
    %cst_182 = arith.constant 0.000000e+00 : f32
    %721 = vector.broadcast %cst_182 : f32 to vector<8x16xf32>
    %722 = arith.select %714, %721, %702 : vector<8x16xf32>
    %723 = vector.extract_strided_slice %25 {offsets = [72, 0], sizes = [8, 64], strides = [1, 1]} : vector<120x64xf32> to vector<8x64xf32>
    %cst_183 = arith.constant dense<0.000000e+00> : vector<8x64xf32>
    %724 = tpu.matmul %716, %8, %cst_183 {dimension_numbers = #tpu.dot_dimension_numbers<[1], [0], [0], [1], [0, 0, 1, 1], [], []>} : vector<8x16xf32>, vector<16x64xf32>, vector<8x64xf32> -> vector<8x64xf32>
    %725 = arith.addf %723, %724 : vector<8x64xf32>
    %726 = vector.extract_strided_slice %725 {offsets = [0, 0], sizes = [8, 16], strides = [1, 1]} : vector<8x64xf32> to vector<8x16xf32>
    %727 = arith.negf %726 : vector<8x16xf32>
    %728 = math.exp %727 : vector<8x16xf32>
    %cst_184 = arith.constant 1.000000e+00 : f32
    %729 = vector.broadcast %cst_184 : f32 to vector<8x16xf32>
    %730 = arith.addf %729, %728 : vector<8x16xf32>
    %731 = arith.divf %729, %730 : vector<8x16xf32>
    %732 = vector.extract_strided_slice %725 {offsets = [0, 16], sizes = [8, 16], strides = [1, 1]} : vector<8x64xf32> to vector<8x16xf32>
    %733 = arith.negf %732 : vector<8x16xf32>
    %734 = math.exp %733 : vector<8x16xf32>
    %cst_185 = arith.constant 1.000000e+00 : f32
    %735 = vector.broadcast %cst_185 : f32 to vector<8x16xf32>
    %736 = arith.addf %735, %734 : vector<8x16xf32>
    %737 = arith.divf %735, %736 : vector<8x16xf32>
    %738 = vector.extract_strided_slice %725 {offsets = [0, 32], sizes = [8, 16], strides = [1, 1]} : vector<8x64xf32> to vector<8x16xf32>
    %739 = math.tanh %738 : vector<8x16xf32>
    %740 = vector.extract_strided_slice %725 {offsets = [0, 48], sizes = [8, 16], strides = [1, 1]} : vector<8x64xf32> to vector<8x16xf32>
    %741 = arith.negf %740 : vector<8x16xf32>
    %742 = math.exp %741 : vector<8x16xf32>
    %cst_186 = arith.constant 1.000000e+00 : f32
    %743 = vector.broadcast %cst_186 : f32 to vector<8x16xf32>
    %744 = arith.addf %743, %742 : vector<8x16xf32>
    %745 = arith.divf %743, %744 : vector<8x16xf32>
    %746 = arith.mulf %737, %720 : vector<8x16xf32>
    %747 = arith.mulf %731, %739 : vector<8x16xf32>
    %748 = arith.addf %746, %747 : vector<8x16xf32>
    %749 = math.tanh %748 : vector<8x16xf32>
    %750 = arith.mulf %745, %749 : vector<8x16xf32>
    %cst_187 = arith.constant dense<0.000000e+00> : vector<8x64xf32>
    %751 = tpu.matmul %750, %6, %cst_187 {dimension_numbers = #tpu.dot_dimension_numbers<[1], [0], [0], [1], [0, 0, 1, 1], [], []>} : vector<8x16xf32>, vector<16x64xf32>, vector<8x64xf32> -> vector<8x64xf32>
    %752 = vector.broadcast %14 : vector<1x64xf32> to vector<8x64xf32>
    %753 = arith.addf %751, %752 : vector<8x64xf32>
    %cst_188 = arith.constant dense<0.000000e+00> : vector<8x64xf32>
    %754 = tpu.matmul %718, %10, %cst_188 {dimension_numbers = #tpu.dot_dimension_numbers<[1], [0], [0], [1], [0, 0, 1, 1], [], []>} : vector<8x16xf32>, vector<16x64xf32>, vector<8x64xf32> -> vector<8x64xf32>
    %755 = arith.addf %753, %754 : vector<8x64xf32>
    %756 = vector.extract_strided_slice %755 {offsets = [0, 0], sizes = [8, 16], strides = [1, 1]} : vector<8x64xf32> to vector<8x16xf32>
    %757 = arith.negf %756 : vector<8x16xf32>
    %758 = math.exp %757 : vector<8x16xf32>
    %cst_189 = arith.constant 1.000000e+00 : f32
    %759 = vector.broadcast %cst_189 : f32 to vector<8x16xf32>
    %760 = arith.addf %759, %758 : vector<8x16xf32>
    %761 = arith.divf %759, %760 : vector<8x16xf32>
    %762 = vector.extract_strided_slice %755 {offsets = [0, 16], sizes = [8, 16], strides = [1, 1]} : vector<8x64xf32> to vector<8x16xf32>
    %763 = arith.negf %762 : vector<8x16xf32>
    %764 = math.exp %763 : vector<8x16xf32>
    %cst_190 = arith.constant 1.000000e+00 : f32
    %765 = vector.broadcast %cst_190 : f32 to vector<8x16xf32>
    %766 = arith.addf %765, %764 : vector<8x16xf32>
    %767 = arith.divf %765, %766 : vector<8x16xf32>
    %768 = vector.extract_strided_slice %755 {offsets = [0, 32], sizes = [8, 16], strides = [1, 1]} : vector<8x64xf32> to vector<8x16xf32>
    %769 = math.tanh %768 : vector<8x16xf32>
    %770 = vector.extract_strided_slice %755 {offsets = [0, 48], sizes = [8, 16], strides = [1, 1]} : vector<8x64xf32> to vector<8x16xf32>
    %771 = arith.negf %770 : vector<8x16xf32>
    %772 = math.exp %771 : vector<8x16xf32>
    %cst_191 = arith.constant 1.000000e+00 : f32
    %773 = vector.broadcast %cst_191 : f32 to vector<8x16xf32>
    %774 = arith.addf %773, %772 : vector<8x16xf32>
    %775 = arith.divf %773, %774 : vector<8x16xf32>
    %776 = arith.mulf %767, %722 : vector<8x16xf32>
    %777 = arith.mulf %761, %769 : vector<8x16xf32>
    %778 = arith.addf %776, %777 : vector<8x16xf32>
    %779 = math.tanh %778 : vector<8x16xf32>
    %780 = arith.mulf %775, %779 : vector<8x16xf32>
    %781 = vector.broadcast %16 : vector<1x16xf32> to vector<8x16xf32>
    %782 = arith.mulf %780, %781 : vector<8x16xf32>
    %cst_192 = arith.constant dense<0.000000e+00> : vector<8xf32>
    %783 = vector.multi_reduction <add>, %782, %cst_192 [1] : vector<8x16xf32> to vector<8xf32>
    %784 = vector.shape_cast %783 : vector<8xf32> to vector<8x1xf32>
    %785 = vector.broadcast %18 : vector<1x1xf32> to vector<8x1xf32>
    %786 = arith.addf %784, %785 : vector<8x1xf32>
    %c9_i32_193 = arith.constant 9 : i32
    %787 = arith.cmpi sle, %1, %c9_i32_193 : i32
    %cst_194 = arith.constant -1.000000e+30 : f32
    %788 = vector.broadcast %cst_194 : f32 to vector<8x1xf32>
    %789 = arith.select %787, %786, %788 : vector<8x1xf32>
    %c10_i32 = arith.constant 10 : i32
    %790 = arith.cmpi eq, %1, %c10_i32 : i32
    %cst_195 = arith.constant 0.000000e+00 : f32
    %791 = vector.broadcast %cst_195 : f32 to vector<8x16xf32>
    %792 = arith.select %790, %791, %750 : vector<8x16xf32>
    %cst_196 = arith.constant 0.000000e+00 : f32
    %793 = vector.broadcast %cst_196 : f32 to vector<8x16xf32>
    %794 = arith.select %790, %793, %780 : vector<8x16xf32>
    %cst_197 = arith.constant 0.000000e+00 : f32
    %795 = vector.broadcast %cst_197 : f32 to vector<8x16xf32>
    %796 = arith.select %790, %795, %748 : vector<8x16xf32>
    %cst_198 = arith.constant 0.000000e+00 : f32
    %797 = vector.broadcast %cst_198 : f32 to vector<8x16xf32>
    %798 = arith.select %790, %797, %778 : vector<8x16xf32>
    %799 = vector.extract_strided_slice %25 {offsets = [80, 0], sizes = [8, 64], strides = [1, 1]} : vector<120x64xf32> to vector<8x64xf32>
    %cst_199 = arith.constant dense<0.000000e+00> : vector<8x64xf32>
    %800 = tpu.matmul %792, %8, %cst_199 {dimension_numbers = #tpu.dot_dimension_numbers<[1], [0], [0], [1], [0, 0, 1, 1], [], []>} : vector<8x16xf32>, vector<16x64xf32>, vector<8x64xf32> -> vector<8x64xf32>
    %801 = arith.addf %799, %800 : vector<8x64xf32>
    %802 = vector.extract_strided_slice %801 {offsets = [0, 0], sizes = [8, 16], strides = [1, 1]} : vector<8x64xf32> to vector<8x16xf32>
    %803 = arith.negf %802 : vector<8x16xf32>
    %804 = math.exp %803 : vector<8x16xf32>
    %cst_200 = arith.constant 1.000000e+00 : f32
    %805 = vector.broadcast %cst_200 : f32 to vector<8x16xf32>
    %806 = arith.addf %805, %804 : vector<8x16xf32>
    %807 = arith.divf %805, %806 : vector<8x16xf32>
    %808 = vector.extract_strided_slice %801 {offsets = [0, 16], sizes = [8, 16], strides = [1, 1]} : vector<8x64xf32> to vector<8x16xf32>
    %809 = arith.negf %808 : vector<8x16xf32>
    %810 = math.exp %809 : vector<8x16xf32>
    %cst_201 = arith.constant 1.000000e+00 : f32
    %811 = vector.broadcast %cst_201 : f32 to vector<8x16xf32>
    %812 = arith.addf %811, %810 : vector<8x16xf32>
    %813 = arith.divf %811, %812 : vector<8x16xf32>
    %814 = vector.extract_strided_slice %801 {offsets = [0, 32], sizes = [8, 16], strides = [1, 1]} : vector<8x64xf32> to vector<8x16xf32>
    %815 = math.tanh %814 : vector<8x16xf32>
    %816 = vector.extract_strided_slice %801 {offsets = [0, 48], sizes = [8, 16], strides = [1, 1]} : vector<8x64xf32> to vector<8x16xf32>
    %817 = arith.negf %816 : vector<8x16xf32>
    %818 = math.exp %817 : vector<8x16xf32>
    %cst_202 = arith.constant 1.000000e+00 : f32
    %819 = vector.broadcast %cst_202 : f32 to vector<8x16xf32>
    %820 = arith.addf %819, %818 : vector<8x16xf32>
    %821 = arith.divf %819, %820 : vector<8x16xf32>
    %822 = arith.mulf %813, %796 : vector<8x16xf32>
    %823 = arith.mulf %807, %815 : vector<8x16xf32>
    %824 = arith.addf %822, %823 : vector<8x16xf32>
    %825 = math.tanh %824 : vector<8x16xf32>
    %826 = arith.mulf %821, %825 : vector<8x16xf32>
    %cst_203 = arith.constant dense<0.000000e+00> : vector<8x64xf32>
    %827 = tpu.matmul %826, %6, %cst_203 {dimension_numbers = #tpu.dot_dimension_numbers<[1], [0], [0], [1], [0, 0, 1, 1], [], []>} : vector<8x16xf32>, vector<16x64xf32>, vector<8x64xf32> -> vector<8x64xf32>
    %828 = vector.broadcast %14 : vector<1x64xf32> to vector<8x64xf32>
    %829 = arith.addf %827, %828 : vector<8x64xf32>
    %cst_204 = arith.constant dense<0.000000e+00> : vector<8x64xf32>
    %830 = tpu.matmul %794, %10, %cst_204 {dimension_numbers = #tpu.dot_dimension_numbers<[1], [0], [0], [1], [0, 0, 1, 1], [], []>} : vector<8x16xf32>, vector<16x64xf32>, vector<8x64xf32> -> vector<8x64xf32>
    %831 = arith.addf %829, %830 : vector<8x64xf32>
    %832 = vector.extract_strided_slice %831 {offsets = [0, 0], sizes = [8, 16], strides = [1, 1]} : vector<8x64xf32> to vector<8x16xf32>
    %833 = arith.negf %832 : vector<8x16xf32>
    %834 = math.exp %833 : vector<8x16xf32>
    %cst_205 = arith.constant 1.000000e+00 : f32
    %835 = vector.broadcast %cst_205 : f32 to vector<8x16xf32>
    %836 = arith.addf %835, %834 : vector<8x16xf32>
    %837 = arith.divf %835, %836 : vector<8x16xf32>
    %838 = vector.extract_strided_slice %831 {offsets = [0, 16], sizes = [8, 16], strides = [1, 1]} : vector<8x64xf32> to vector<8x16xf32>
    %839 = arith.negf %838 : vector<8x16xf32>
    %840 = math.exp %839 : vector<8x16xf32>
    %cst_206 = arith.constant 1.000000e+00 : f32
    %841 = vector.broadcast %cst_206 : f32 to vector<8x16xf32>
    %842 = arith.addf %841, %840 : vector<8x16xf32>
    %843 = arith.divf %841, %842 : vector<8x16xf32>
    %844 = vector.extract_strided_slice %831 {offsets = [0, 32], sizes = [8, 16], strides = [1, 1]} : vector<8x64xf32> to vector<8x16xf32>
    %845 = math.tanh %844 : vector<8x16xf32>
    %846 = vector.extract_strided_slice %831 {offsets = [0, 48], sizes = [8, 16], strides = [1, 1]} : vector<8x64xf32> to vector<8x16xf32>
    %847 = arith.negf %846 : vector<8x16xf32>
    %848 = math.exp %847 : vector<8x16xf32>
    %cst_207 = arith.constant 1.000000e+00 : f32
    %849 = vector.broadcast %cst_207 : f32 to vector<8x16xf32>
    %850 = arith.addf %849, %848 : vector<8x16xf32>
    %851 = arith.divf %849, %850 : vector<8x16xf32>
    %852 = arith.mulf %843, %798 : vector<8x16xf32>
    %853 = arith.mulf %837, %845 : vector<8x16xf32>
    %854 = arith.addf %852, %853 : vector<8x16xf32>
    %855 = math.tanh %854 : vector<8x16xf32>
    %856 = arith.mulf %851, %855 : vector<8x16xf32>
    %857 = vector.broadcast %16 : vector<1x16xf32> to vector<8x16xf32>
    %858 = arith.mulf %856, %857 : vector<8x16xf32>
    %cst_208 = arith.constant dense<0.000000e+00> : vector<8xf32>
    %859 = vector.multi_reduction <add>, %858, %cst_208 [1] : vector<8x16xf32> to vector<8xf32>
    %860 = vector.shape_cast %859 : vector<8xf32> to vector<8x1xf32>
    %861 = vector.broadcast %18 : vector<1x1xf32> to vector<8x1xf32>
    %862 = arith.addf %860, %861 : vector<8x1xf32>
    %c10_i32_209 = arith.constant 10 : i32
    %863 = arith.cmpi sle, %1, %c10_i32_209 : i32
    %cst_210 = arith.constant -1.000000e+30 : f32
    %864 = vector.broadcast %cst_210 : f32 to vector<8x1xf32>
    %865 = arith.select %863, %862, %864 : vector<8x1xf32>
    %c11_i32 = arith.constant 11 : i32
    %866 = arith.cmpi eq, %1, %c11_i32 : i32
    %cst_211 = arith.constant 0.000000e+00 : f32
    %867 = vector.broadcast %cst_211 : f32 to vector<8x16xf32>
    %868 = arith.select %866, %867, %826 : vector<8x16xf32>
    %cst_212 = arith.constant 0.000000e+00 : f32
    %869 = vector.broadcast %cst_212 : f32 to vector<8x16xf32>
    %870 = arith.select %866, %869, %856 : vector<8x16xf32>
    %cst_213 = arith.constant 0.000000e+00 : f32
    %871 = vector.broadcast %cst_213 : f32 to vector<8x16xf32>
    %872 = arith.select %866, %871, %824 : vector<8x16xf32>
    %cst_214 = arith.constant 0.000000e+00 : f32
    %873 = vector.broadcast %cst_214 : f32 to vector<8x16xf32>
    %874 = arith.select %866, %873, %854 : vector<8x16xf32>
    %875 = vector.extract_strided_slice %25 {offsets = [88, 0], sizes = [8, 64], strides = [1, 1]} : vector<120x64xf32> to vector<8x64xf32>
    %cst_215 = arith.constant dense<0.000000e+00> : vector<8x64xf32>
    %876 = tpu.matmul %868, %8, %cst_215 {dimension_numbers = #tpu.dot_dimension_numbers<[1], [0], [0], [1], [0, 0, 1, 1], [], []>} : vector<8x16xf32>, vector<16x64xf32>, vector<8x64xf32> -> vector<8x64xf32>
    %877 = arith.addf %875, %876 : vector<8x64xf32>
    %878 = vector.extract_strided_slice %877 {offsets = [0, 0], sizes = [8, 16], strides = [1, 1]} : vector<8x64xf32> to vector<8x16xf32>
    %879 = arith.negf %878 : vector<8x16xf32>
    %880 = math.exp %879 : vector<8x16xf32>
    %cst_216 = arith.constant 1.000000e+00 : f32
    %881 = vector.broadcast %cst_216 : f32 to vector<8x16xf32>
    %882 = arith.addf %881, %880 : vector<8x16xf32>
    %883 = arith.divf %881, %882 : vector<8x16xf32>
    %884 = vector.extract_strided_slice %877 {offsets = [0, 16], sizes = [8, 16], strides = [1, 1]} : vector<8x64xf32> to vector<8x16xf32>
    %885 = arith.negf %884 : vector<8x16xf32>
    %886 = math.exp %885 : vector<8x16xf32>
    %cst_217 = arith.constant 1.000000e+00 : f32
    %887 = vector.broadcast %cst_217 : f32 to vector<8x16xf32>
    %888 = arith.addf %887, %886 : vector<8x16xf32>
    %889 = arith.divf %887, %888 : vector<8x16xf32>
    %890 = vector.extract_strided_slice %877 {offsets = [0, 32], sizes = [8, 16], strides = [1, 1]} : vector<8x64xf32> to vector<8x16xf32>
    %891 = math.tanh %890 : vector<8x16xf32>
    %892 = vector.extract_strided_slice %877 {offsets = [0, 48], sizes = [8, 16], strides = [1, 1]} : vector<8x64xf32> to vector<8x16xf32>
    %893 = arith.negf %892 : vector<8x16xf32>
    %894 = math.exp %893 : vector<8x16xf32>
    %cst_218 = arith.constant 1.000000e+00 : f32
    %895 = vector.broadcast %cst_218 : f32 to vector<8x16xf32>
    %896 = arith.addf %895, %894 : vector<8x16xf32>
    %897 = arith.divf %895, %896 : vector<8x16xf32>
    %898 = arith.mulf %889, %872 : vector<8x16xf32>
    %899 = arith.mulf %883, %891 : vector<8x16xf32>
    %900 = arith.addf %898, %899 : vector<8x16xf32>
    %901 = math.tanh %900 : vector<8x16xf32>
    %902 = arith.mulf %897, %901 : vector<8x16xf32>
    %cst_219 = arith.constant dense<0.000000e+00> : vector<8x64xf32>
    %903 = tpu.matmul %902, %6, %cst_219 {dimension_numbers = #tpu.dot_dimension_numbers<[1], [0], [0], [1], [0, 0, 1, 1], [], []>} : vector<8x16xf32>, vector<16x64xf32>, vector<8x64xf32> -> vector<8x64xf32>
    %904 = vector.broadcast %14 : vector<1x64xf32> to vector<8x64xf32>
    %905 = arith.addf %903, %904 : vector<8x64xf32>
    %cst_220 = arith.constant dense<0.000000e+00> : vector<8x64xf32>
    %906 = tpu.matmul %870, %10, %cst_220 {dimension_numbers = #tpu.dot_dimension_numbers<[1], [0], [0], [1], [0, 0, 1, 1], [], []>} : vector<8x16xf32>, vector<16x64xf32>, vector<8x64xf32> -> vector<8x64xf32>
    %907 = arith.addf %905, %906 : vector<8x64xf32>
    %908 = vector.extract_strided_slice %907 {offsets = [0, 0], sizes = [8, 16], strides = [1, 1]} : vector<8x64xf32> to vector<8x16xf32>
    %909 = arith.negf %908 : vector<8x16xf32>
    %910 = math.exp %909 : vector<8x16xf32>
    %cst_221 = arith.constant 1.000000e+00 : f32
    %911 = vector.broadcast %cst_221 : f32 to vector<8x16xf32>
    %912 = arith.addf %911, %910 : vector<8x16xf32>
    %913 = arith.divf %911, %912 : vector<8x16xf32>
    %914 = vector.extract_strided_slice %907 {offsets = [0, 16], sizes = [8, 16], strides = [1, 1]} : vector<8x64xf32> to vector<8x16xf32>
    %915 = arith.negf %914 : vector<8x16xf32>
    %916 = math.exp %915 : vector<8x16xf32>
    %cst_222 = arith.constant 1.000000e+00 : f32
    %917 = vector.broadcast %cst_222 : f32 to vector<8x16xf32>
    %918 = arith.addf %917, %916 : vector<8x16xf32>
    %919 = arith.divf %917, %918 : vector<8x16xf32>
    %920 = vector.extract_strided_slice %907 {offsets = [0, 32], sizes = [8, 16], strides = [1, 1]} : vector<8x64xf32> to vector<8x16xf32>
    %921 = math.tanh %920 : vector<8x16xf32>
    %922 = vector.extract_strided_slice %907 {offsets = [0, 48], sizes = [8, 16], strides = [1, 1]} : vector<8x64xf32> to vector<8x16xf32>
    %923 = arith.negf %922 : vector<8x16xf32>
    %924 = math.exp %923 : vector<8x16xf32>
    %cst_223 = arith.constant 1.000000e+00 : f32
    %925 = vector.broadcast %cst_223 : f32 to vector<8x16xf32>
    %926 = arith.addf %925, %924 : vector<8x16xf32>
    %927 = arith.divf %925, %926 : vector<8x16xf32>
    %928 = arith.mulf %919, %874 : vector<8x16xf32>
    %929 = arith.mulf %913, %921 : vector<8x16xf32>
    %930 = arith.addf %928, %929 : vector<8x16xf32>
    %931 = math.tanh %930 : vector<8x16xf32>
    %932 = arith.mulf %927, %931 : vector<8x16xf32>
    %933 = vector.broadcast %16 : vector<1x16xf32> to vector<8x16xf32>
    %934 = arith.mulf %932, %933 : vector<8x16xf32>
    %cst_224 = arith.constant dense<0.000000e+00> : vector<8xf32>
    %935 = vector.multi_reduction <add>, %934, %cst_224 [1] : vector<8x16xf32> to vector<8xf32>
    %936 = vector.shape_cast %935 : vector<8xf32> to vector<8x1xf32>
    %937 = vector.broadcast %18 : vector<1x1xf32> to vector<8x1xf32>
    %938 = arith.addf %936, %937 : vector<8x1xf32>
    %c11_i32_225 = arith.constant 11 : i32
    %939 = arith.cmpi sle, %1, %c11_i32_225 : i32
    %cst_226 = arith.constant -1.000000e+30 : f32
    %940 = vector.broadcast %cst_226 : f32 to vector<8x1xf32>
    %941 = arith.select %939, %938, %940 : vector<8x1xf32>
    %c12_i32 = arith.constant 12 : i32
    %942 = arith.cmpi eq, %1, %c12_i32 : i32
    %cst_227 = arith.constant 0.000000e+00 : f32
    %943 = vector.broadcast %cst_227 : f32 to vector<8x16xf32>
    %944 = arith.select %942, %943, %902 : vector<8x16xf32>
    %cst_228 = arith.constant 0.000000e+00 : f32
    %945 = vector.broadcast %cst_228 : f32 to vector<8x16xf32>
    %946 = arith.select %942, %945, %932 : vector<8x16xf32>
    %cst_229 = arith.constant 0.000000e+00 : f32
    %947 = vector.broadcast %cst_229 : f32 to vector<8x16xf32>
    %948 = arith.select %942, %947, %900 : vector<8x16xf32>
    %cst_230 = arith.constant 0.000000e+00 : f32
    %949 = vector.broadcast %cst_230 : f32 to vector<8x16xf32>
    %950 = arith.select %942, %949, %930 : vector<8x16xf32>
    %951 = vector.extract_strided_slice %25 {offsets = [96, 0], sizes = [8, 64], strides = [1, 1]} : vector<120x64xf32> to vector<8x64xf32>
    %cst_231 = arith.constant dense<0.000000e+00> : vector<8x64xf32>
    %952 = tpu.matmul %944, %8, %cst_231 {dimension_numbers = #tpu.dot_dimension_numbers<[1], [0], [0], [1], [0, 0, 1, 1], [], []>} : vector<8x16xf32>, vector<16x64xf32>, vector<8x64xf32> -> vector<8x64xf32>
    %953 = arith.addf %951, %952 : vector<8x64xf32>
    %954 = vector.extract_strided_slice %953 {offsets = [0, 0], sizes = [8, 16], strides = [1, 1]} : vector<8x64xf32> to vector<8x16xf32>
    %955 = arith.negf %954 : vector<8x16xf32>
    %956 = math.exp %955 : vector<8x16xf32>
    %cst_232 = arith.constant 1.000000e+00 : f32
    %957 = vector.broadcast %cst_232 : f32 to vector<8x16xf32>
    %958 = arith.addf %957, %956 : vector<8x16xf32>
    %959 = arith.divf %957, %958 : vector<8x16xf32>
    %960 = vector.extract_strided_slice %953 {offsets = [0, 16], sizes = [8, 16], strides = [1, 1]} : vector<8x64xf32> to vector<8x16xf32>
    %961 = arith.negf %960 : vector<8x16xf32>
    %962 = math.exp %961 : vector<8x16xf32>
    %cst_233 = arith.constant 1.000000e+00 : f32
    %963 = vector.broadcast %cst_233 : f32 to vector<8x16xf32>
    %964 = arith.addf %963, %962 : vector<8x16xf32>
    %965 = arith.divf %963, %964 : vector<8x16xf32>
    %966 = vector.extract_strided_slice %953 {offsets = [0, 32], sizes = [8, 16], strides = [1, 1]} : vector<8x64xf32> to vector<8x16xf32>
    %967 = math.tanh %966 : vector<8x16xf32>
    %968 = vector.extract_strided_slice %953 {offsets = [0, 48], sizes = [8, 16], strides = [1, 1]} : vector<8x64xf32> to vector<8x16xf32>
    %969 = arith.negf %968 : vector<8x16xf32>
    %970 = math.exp %969 : vector<8x16xf32>
    %cst_234 = arith.constant 1.000000e+00 : f32
    %971 = vector.broadcast %cst_234 : f32 to vector<8x16xf32>
    %972 = arith.addf %971, %970 : vector<8x16xf32>
    %973 = arith.divf %971, %972 : vector<8x16xf32>
    %974 = arith.mulf %965, %948 : vector<8x16xf32>
    %975 = arith.mulf %959, %967 : vector<8x16xf32>
    %976 = arith.addf %974, %975 : vector<8x16xf32>
    %977 = math.tanh %976 : vector<8x16xf32>
    %978 = arith.mulf %973, %977 : vector<8x16xf32>
    %cst_235 = arith.constant dense<0.000000e+00> : vector<8x64xf32>
    %979 = tpu.matmul %978, %6, %cst_235 {dimension_numbers = #tpu.dot_dimension_numbers<[1], [0], [0], [1], [0, 0, 1, 1], [], []>} : vector<8x16xf32>, vector<16x64xf32>, vector<8x64xf32> -> vector<8x64xf32>
    %980 = vector.broadcast %14 : vector<1x64xf32> to vector<8x64xf32>
    %981 = arith.addf %979, %980 : vector<8x64xf32>
    %cst_236 = arith.constant dense<0.000000e+00> : vector<8x64xf32>
    %982 = tpu.matmul %946, %10, %cst_236 {dimension_numbers = #tpu.dot_dimension_numbers<[1], [0], [0], [1], [0, 0, 1, 1], [], []>} : vector<8x16xf32>, vector<16x64xf32>, vector<8x64xf32> -> vector<8x64xf32>
    %983 = arith.addf %981, %982 : vector<8x64xf32>
    %984 = vector.extract_strided_slice %983 {offsets = [0, 0], sizes = [8, 16], strides = [1, 1]} : vector<8x64xf32> to vector<8x16xf32>
    %985 = arith.negf %984 : vector<8x16xf32>
    %986 = math.exp %985 : vector<8x16xf32>
    %cst_237 = arith.constant 1.000000e+00 : f32
    %987 = vector.broadcast %cst_237 : f32 to vector<8x16xf32>
    %988 = arith.addf %987, %986 : vector<8x16xf32>
    %989 = arith.divf %987, %988 : vector<8x16xf32>
    %990 = vector.extract_strided_slice %983 {offsets = [0, 16], sizes = [8, 16], strides = [1, 1]} : vector<8x64xf32> to vector<8x16xf32>
    %991 = arith.negf %990 : vector<8x16xf32>
    %992 = math.exp %991 : vector<8x16xf32>
    %cst_238 = arith.constant 1.000000e+00 : f32
    %993 = vector.broadcast %cst_238 : f32 to vector<8x16xf32>
    %994 = arith.addf %993, %992 : vector<8x16xf32>
    %995 = arith.divf %993, %994 : vector<8x16xf32>
    %996 = vector.extract_strided_slice %983 {offsets = [0, 32], sizes = [8, 16], strides = [1, 1]} : vector<8x64xf32> to vector<8x16xf32>
    %997 = math.tanh %996 : vector<8x16xf32>
    %998 = vector.extract_strided_slice %983 {offsets = [0, 48], sizes = [8, 16], strides = [1, 1]} : vector<8x64xf32> to vector<8x16xf32>
    %999 = arith.negf %998 : vector<8x16xf32>
    %1000 = math.exp %999 : vector<8x16xf32>
    %cst_239 = arith.constant 1.000000e+00 : f32
    %1001 = vector.broadcast %cst_239 : f32 to vector<8x16xf32>
    %1002 = arith.addf %1001, %1000 : vector<8x16xf32>
    %1003 = arith.divf %1001, %1002 : vector<8x16xf32>
    %1004 = arith.mulf %995, %950 : vector<8x16xf32>
    %1005 = arith.mulf %989, %997 : vector<8x16xf32>
    %1006 = arith.addf %1004, %1005 : vector<8x16xf32>
    %1007 = math.tanh %1006 : vector<8x16xf32>
    %1008 = arith.mulf %1003, %1007 : vector<8x16xf32>
    %1009 = vector.broadcast %16 : vector<1x16xf32> to vector<8x16xf32>
    %1010 = arith.mulf %1008, %1009 : vector<8x16xf32>
    %cst_240 = arith.constant dense<0.000000e+00> : vector<8xf32>
    %1011 = vector.multi_reduction <add>, %1010, %cst_240 [1] : vector<8x16xf32> to vector<8xf32>
    %1012 = vector.shape_cast %1011 : vector<8xf32> to vector<8x1xf32>
    %1013 = vector.broadcast %18 : vector<1x1xf32> to vector<8x1xf32>
    %1014 = arith.addf %1012, %1013 : vector<8x1xf32>
    %c12_i32_241 = arith.constant 12 : i32
    %1015 = arith.cmpi sle, %1, %c12_i32_241 : i32
    %cst_242 = arith.constant -1.000000e+30 : f32
    %1016 = vector.broadcast %cst_242 : f32 to vector<8x1xf32>
    %1017 = arith.select %1015, %1014, %1016 : vector<8x1xf32>
    %c13_i32 = arith.constant 13 : i32
    %1018 = arith.cmpi eq, %1, %c13_i32 : i32
    %cst_243 = arith.constant 0.000000e+00 : f32
    %1019 = vector.broadcast %cst_243 : f32 to vector<8x16xf32>
    %1020 = arith.select %1018, %1019, %978 : vector<8x16xf32>
    %cst_244 = arith.constant 0.000000e+00 : f32
    %1021 = vector.broadcast %cst_244 : f32 to vector<8x16xf32>
    %1022 = arith.select %1018, %1021, %1008 : vector<8x16xf32>
    %cst_245 = arith.constant 0.000000e+00 : f32
    %1023 = vector.broadcast %cst_245 : f32 to vector<8x16xf32>
    %1024 = arith.select %1018, %1023, %976 : vector<8x16xf32>
    %cst_246 = arith.constant 0.000000e+00 : f32
    %1025 = vector.broadcast %cst_246 : f32 to vector<8x16xf32>
    %1026 = arith.select %1018, %1025, %1006 : vector<8x16xf32>
    %1027 = vector.extract_strided_slice %25 {offsets = [104, 0], sizes = [8, 64], strides = [1, 1]} : vector<120x64xf32> to vector<8x64xf32>
    %cst_247 = arith.constant dense<0.000000e+00> : vector<8x64xf32>
    %1028 = tpu.matmul %1020, %8, %cst_247 {dimension_numbers = #tpu.dot_dimension_numbers<[1], [0], [0], [1], [0, 0, 1, 1], [], []>} : vector<8x16xf32>, vector<16x64xf32>, vector<8x64xf32> -> vector<8x64xf32>
    %1029 = arith.addf %1027, %1028 : vector<8x64xf32>
    %1030 = vector.extract_strided_slice %1029 {offsets = [0, 0], sizes = [8, 16], strides = [1, 1]} : vector<8x64xf32> to vector<8x16xf32>
    %1031 = arith.negf %1030 : vector<8x16xf32>
    %1032 = math.exp %1031 : vector<8x16xf32>
    %cst_248 = arith.constant 1.000000e+00 : f32
    %1033 = vector.broadcast %cst_248 : f32 to vector<8x16xf32>
    %1034 = arith.addf %1033, %1032 : vector<8x16xf32>
    %1035 = arith.divf %1033, %1034 : vector<8x16xf32>
    %1036 = vector.extract_strided_slice %1029 {offsets = [0, 16], sizes = [8, 16], strides = [1, 1]} : vector<8x64xf32> to vector<8x16xf32>
    %1037 = arith.negf %1036 : vector<8x16xf32>
    %1038 = math.exp %1037 : vector<8x16xf32>
    %cst_249 = arith.constant 1.000000e+00 : f32
    %1039 = vector.broadcast %cst_249 : f32 to vector<8x16xf32>
    %1040 = arith.addf %1039, %1038 : vector<8x16xf32>
    %1041 = arith.divf %1039, %1040 : vector<8x16xf32>
    %1042 = vector.extract_strided_slice %1029 {offsets = [0, 32], sizes = [8, 16], strides = [1, 1]} : vector<8x64xf32> to vector<8x16xf32>
    %1043 = math.tanh %1042 : vector<8x16xf32>
    %1044 = vector.extract_strided_slice %1029 {offsets = [0, 48], sizes = [8, 16], strides = [1, 1]} : vector<8x64xf32> to vector<8x16xf32>
    %1045 = arith.negf %1044 : vector<8x16xf32>
    %1046 = math.exp %1045 : vector<8x16xf32>
    %cst_250 = arith.constant 1.000000e+00 : f32
    %1047 = vector.broadcast %cst_250 : f32 to vector<8x16xf32>
    %1048 = arith.addf %1047, %1046 : vector<8x16xf32>
    %1049 = arith.divf %1047, %1048 : vector<8x16xf32>
    %1050 = arith.mulf %1041, %1024 : vector<8x16xf32>
    %1051 = arith.mulf %1035, %1043 : vector<8x16xf32>
    %1052 = arith.addf %1050, %1051 : vector<8x16xf32>
    %1053 = math.tanh %1052 : vector<8x16xf32>
    %1054 = arith.mulf %1049, %1053 : vector<8x16xf32>
    %cst_251 = arith.constant dense<0.000000e+00> : vector<8x64xf32>
    %1055 = tpu.matmul %1054, %6, %cst_251 {dimension_numbers = #tpu.dot_dimension_numbers<[1], [0], [0], [1], [0, 0, 1, 1], [], []>} : vector<8x16xf32>, vector<16x64xf32>, vector<8x64xf32> -> vector<8x64xf32>
    %1056 = vector.broadcast %14 : vector<1x64xf32> to vector<8x64xf32>
    %1057 = arith.addf %1055, %1056 : vector<8x64xf32>
    %cst_252 = arith.constant dense<0.000000e+00> : vector<8x64xf32>
    %1058 = tpu.matmul %1022, %10, %cst_252 {dimension_numbers = #tpu.dot_dimension_numbers<[1], [0], [0], [1], [0, 0, 1, 1], [], []>} : vector<8x16xf32>, vector<16x64xf32>, vector<8x64xf32> -> vector<8x64xf32>
    %1059 = arith.addf %1057, %1058 : vector<8x64xf32>
    %1060 = vector.extract_strided_slice %1059 {offsets = [0, 0], sizes = [8, 16], strides = [1, 1]} : vector<8x64xf32> to vector<8x16xf32>
    %1061 = arith.negf %1060 : vector<8x16xf32>
    %1062 = math.exp %1061 : vector<8x16xf32>
    %cst_253 = arith.constant 1.000000e+00 : f32
    %1063 = vector.broadcast %cst_253 : f32 to vector<8x16xf32>
    %1064 = arith.addf %1063, %1062 : vector<8x16xf32>
    %1065 = arith.divf %1063, %1064 : vector<8x16xf32>
    %1066 = vector.extract_strided_slice %1059 {offsets = [0, 16], sizes = [8, 16], strides = [1, 1]} : vector<8x64xf32> to vector<8x16xf32>
    %1067 = arith.negf %1066 : vector<8x16xf32>
    %1068 = math.exp %1067 : vector<8x16xf32>
    %cst_254 = arith.constant 1.000000e+00 : f32
    %1069 = vector.broadcast %cst_254 : f32 to vector<8x16xf32>
    %1070 = arith.addf %1069, %1068 : vector<8x16xf32>
    %1071 = arith.divf %1069, %1070 : vector<8x16xf32>
    %1072 = vector.extract_strided_slice %1059 {offsets = [0, 32], sizes = [8, 16], strides = [1, 1]} : vector<8x64xf32> to vector<8x16xf32>
    %1073 = math.tanh %1072 : vector<8x16xf32>
    %1074 = vector.extract_strided_slice %1059 {offsets = [0, 48], sizes = [8, 16], strides = [1, 1]} : vector<8x64xf32> to vector<8x16xf32>
    %1075 = arith.negf %1074 : vector<8x16xf32>
    %1076 = math.exp %1075 : vector<8x16xf32>
    %cst_255 = arith.constant 1.000000e+00 : f32
    %1077 = vector.broadcast %cst_255 : f32 to vector<8x16xf32>
    %1078 = arith.addf %1077, %1076 : vector<8x16xf32>
    %1079 = arith.divf %1077, %1078 : vector<8x16xf32>
    %1080 = arith.mulf %1071, %1026 : vector<8x16xf32>
    %1081 = arith.mulf %1065, %1073 : vector<8x16xf32>
    %1082 = arith.addf %1080, %1081 : vector<8x16xf32>
    %1083 = math.tanh %1082 : vector<8x16xf32>
    %1084 = arith.mulf %1079, %1083 : vector<8x16xf32>
    %1085 = vector.broadcast %16 : vector<1x16xf32> to vector<8x16xf32>
    %1086 = arith.mulf %1084, %1085 : vector<8x16xf32>
    %cst_256 = arith.constant dense<0.000000e+00> : vector<8xf32>
    %1087 = vector.multi_reduction <add>, %1086, %cst_256 [1] : vector<8x16xf32> to vector<8xf32>
    %1088 = vector.shape_cast %1087 : vector<8xf32> to vector<8x1xf32>
    %1089 = vector.broadcast %18 : vector<1x1xf32> to vector<8x1xf32>
    %1090 = arith.addf %1088, %1089 : vector<8x1xf32>
    %c13_i32_257 = arith.constant 13 : i32
    %1091 = arith.cmpi sle, %1, %c13_i32_257 : i32
    %cst_258 = arith.constant -1.000000e+30 : f32
    %1092 = vector.broadcast %cst_258 : f32 to vector<8x1xf32>
    %1093 = arith.select %1091, %1090, %1092 : vector<8x1xf32>
    %c14_i32 = arith.constant 14 : i32
    %1094 = arith.cmpi eq, %1, %c14_i32 : i32
    %cst_259 = arith.constant 0.000000e+00 : f32
    %1095 = vector.broadcast %cst_259 : f32 to vector<8x16xf32>
    %1096 = arith.select %1094, %1095, %1054 : vector<8x16xf32>
    %cst_260 = arith.constant 0.000000e+00 : f32
    %1097 = vector.broadcast %cst_260 : f32 to vector<8x16xf32>
    %1098 = arith.select %1094, %1097, %1084 : vector<8x16xf32>
    %cst_261 = arith.constant 0.000000e+00 : f32
    %1099 = vector.broadcast %cst_261 : f32 to vector<8x16xf32>
    %1100 = arith.select %1094, %1099, %1052 : vector<8x16xf32>
    %cst_262 = arith.constant 0.000000e+00 : f32
    %1101 = vector.broadcast %cst_262 : f32 to vector<8x16xf32>
    %1102 = arith.select %1094, %1101, %1082 : vector<8x16xf32>
    %1103 = vector.extract_strided_slice %25 {offsets = [112, 0], sizes = [8, 64], strides = [1, 1]} : vector<120x64xf32> to vector<8x64xf32>
    %cst_263 = arith.constant dense<0.000000e+00> : vector<8x64xf32>
    %1104 = tpu.matmul %1096, %8, %cst_263 {dimension_numbers = #tpu.dot_dimension_numbers<[1], [0], [0], [1], [0, 0, 1, 1], [], []>} : vector<8x16xf32>, vector<16x64xf32>, vector<8x64xf32> -> vector<8x64xf32>
    %1105 = arith.addf %1103, %1104 : vector<8x64xf32>
    %1106 = vector.extract_strided_slice %1105 {offsets = [0, 0], sizes = [8, 16], strides = [1, 1]} : vector<8x64xf32> to vector<8x16xf32>
    %1107 = arith.negf %1106 : vector<8x16xf32>
    %1108 = math.exp %1107 : vector<8x16xf32>
    %cst_264 = arith.constant 1.000000e+00 : f32
    %1109 = vector.broadcast %cst_264 : f32 to vector<8x16xf32>
    %1110 = arith.addf %1109, %1108 : vector<8x16xf32>
    %1111 = arith.divf %1109, %1110 : vector<8x16xf32>
    %1112 = vector.extract_strided_slice %1105 {offsets = [0, 16], sizes = [8, 16], strides = [1, 1]} : vector<8x64xf32> to vector<8x16xf32>
    %1113 = arith.negf %1112 : vector<8x16xf32>
    %1114 = math.exp %1113 : vector<8x16xf32>
    %cst_265 = arith.constant 1.000000e+00 : f32
    %1115 = vector.broadcast %cst_265 : f32 to vector<8x16xf32>
    %1116 = arith.addf %1115, %1114 : vector<8x16xf32>
    %1117 = arith.divf %1115, %1116 : vector<8x16xf32>
    %1118 = vector.extract_strided_slice %1105 {offsets = [0, 32], sizes = [8, 16], strides = [1, 1]} : vector<8x64xf32> to vector<8x16xf32>
    %1119 = math.tanh %1118 : vector<8x16xf32>
    %1120 = vector.extract_strided_slice %1105 {offsets = [0, 48], sizes = [8, 16], strides = [1, 1]} : vector<8x64xf32> to vector<8x16xf32>
    %1121 = arith.negf %1120 : vector<8x16xf32>
    %1122 = math.exp %1121 : vector<8x16xf32>
    %cst_266 = arith.constant 1.000000e+00 : f32
    %1123 = vector.broadcast %cst_266 : f32 to vector<8x16xf32>
    %1124 = arith.addf %1123, %1122 : vector<8x16xf32>
    %1125 = arith.divf %1123, %1124 : vector<8x16xf32>
    %1126 = arith.mulf %1117, %1100 : vector<8x16xf32>
    %1127 = arith.mulf %1111, %1119 : vector<8x16xf32>
    %1128 = arith.addf %1126, %1127 : vector<8x16xf32>
    %1129 = math.tanh %1128 : vector<8x16xf32>
    %1130 = arith.mulf %1125, %1129 : vector<8x16xf32>
    %cst_267 = arith.constant dense<0.000000e+00> : vector<8x64xf32>
    %1131 = tpu.matmul %1130, %6, %cst_267 {dimension_numbers = #tpu.dot_dimension_numbers<[1], [0], [0], [1], [0, 0, 1, 1], [], []>} : vector<8x16xf32>, vector<16x64xf32>, vector<8x64xf32> -> vector<8x64xf32>
    %1132 = vector.broadcast %14 : vector<1x64xf32> to vector<8x64xf32>
    %1133 = arith.addf %1131, %1132 : vector<8x64xf32>
    %cst_268 = arith.constant dense<0.000000e+00> : vector<8x64xf32>
    %1134 = tpu.matmul %1098, %10, %cst_268 {dimension_numbers = #tpu.dot_dimension_numbers<[1], [0], [0], [1], [0, 0, 1, 1], [], []>} : vector<8x16xf32>, vector<16x64xf32>, vector<8x64xf32> -> vector<8x64xf32>
    %1135 = arith.addf %1133, %1134 : vector<8x64xf32>
    %1136 = vector.extract_strided_slice %1135 {offsets = [0, 0], sizes = [8, 16], strides = [1, 1]} : vector<8x64xf32> to vector<8x16xf32>
    %1137 = arith.negf %1136 : vector<8x16xf32>
    %1138 = math.exp %1137 : vector<8x16xf32>
    %cst_269 = arith.constant 1.000000e+00 : f32
    %1139 = vector.broadcast %cst_269 : f32 to vector<8x16xf32>
    %1140 = arith.addf %1139, %1138 : vector<8x16xf32>
    %1141 = arith.divf %1139, %1140 : vector<8x16xf32>
    %1142 = vector.extract_strided_slice %1135 {offsets = [0, 16], sizes = [8, 16], strides = [1, 1]} : vector<8x64xf32> to vector<8x16xf32>
    %1143 = arith.negf %1142 : vector<8x16xf32>
    %1144 = math.exp %1143 : vector<8x16xf32>
    %cst_270 = arith.constant 1.000000e+00 : f32
    %1145 = vector.broadcast %cst_270 : f32 to vector<8x16xf32>
    %1146 = arith.addf %1145, %1144 : vector<8x16xf32>
    %1147 = arith.divf %1145, %1146 : vector<8x16xf32>
    %1148 = vector.extract_strided_slice %1135 {offsets = [0, 32], sizes = [8, 16], strides = [1, 1]} : vector<8x64xf32> to vector<8x16xf32>
    %1149 = math.tanh %1148 : vector<8x16xf32>
    %1150 = vector.extract_strided_slice %1135 {offsets = [0, 48], sizes = [8, 16], strides = [1, 1]} : vector<8x64xf32> to vector<8x16xf32>
    %1151 = arith.negf %1150 : vector<8x16xf32>
    %1152 = math.exp %1151 : vector<8x16xf32>
    %cst_271 = arith.constant 1.000000e+00 : f32
    %1153 = vector.broadcast %cst_271 : f32 to vector<8x16xf32>
    %1154 = arith.addf %1153, %1152 : vector<8x16xf32>
    %1155 = arith.divf %1153, %1154 : vector<8x16xf32>
    %1156 = arith.mulf %1147, %1102 : vector<8x16xf32>
    %1157 = arith.mulf %1141, %1149 : vector<8x16xf32>
    %1158 = arith.addf %1156, %1157 : vector<8x16xf32>
    %1159 = math.tanh %1158 : vector<8x16xf32>
    %1160 = arith.mulf %1155, %1159 : vector<8x16xf32>
    %1161 = vector.broadcast %16 : vector<1x16xf32> to vector<8x16xf32>
    %1162 = arith.mulf %1160, %1161 : vector<8x16xf32>
    %cst_272 = arith.constant dense<0.000000e+00> : vector<8xf32>
    %1163 = vector.multi_reduction <add>, %1162, %cst_272 [1] : vector<8x16xf32> to vector<8xf32>
    %1164 = vector.shape_cast %1163 : vector<8xf32> to vector<8x1xf32>
    %1165 = vector.broadcast %18 : vector<1x1xf32> to vector<8x1xf32>
    %1166 = arith.addf %1164, %1165 : vector<8x1xf32>
    %c14_i32_273 = arith.constant 14 : i32
    %1167 = arith.cmpi sle, %1, %c14_i32_273 : i32
    %cst_274 = arith.constant -1.000000e+30 : f32
    %1168 = vector.broadcast %cst_274 : f32 to vector<8x1xf32>
    %1169 = arith.select %1167, %1166, %1168 : vector<8x1xf32>
    %1170 = arith.maximumf %105, %181 : vector<8x1xf32>
    %1171 = arith.maximumf %1170, %257 : vector<8x1xf32>
    %1172 = arith.maximumf %1171, %333 : vector<8x1xf32>
    %1173 = arith.maximumf %1172, %409 : vector<8x1xf32>
    %1174 = arith.maximumf %1173, %485 : vector<8x1xf32>
    %1175 = arith.maximumf %1174, %561 : vector<8x1xf32>
    %1176 = arith.maximumf %1175, %637 : vector<8x1xf32>
    %1177 = arith.maximumf %1176, %713 : vector<8x1xf32>
    %1178 = arith.maximumf %1177, %789 : vector<8x1xf32>
    %1179 = arith.maximumf %1178, %865 : vector<8x1xf32>
    %1180 = arith.maximumf %1179, %941 : vector<8x1xf32>
    %1181 = arith.maximumf %1180, %1017 : vector<8x1xf32>
    %1182 = arith.maximumf %1181, %1093 : vector<8x1xf32>
    %1183 = arith.maximumf %1182, %1169 : vector<8x1xf32>
    %cst_275 = arith.constant 0.000000e+00 : f32
    %1184 = vector.broadcast %cst_275 : f32 to vector<8x16xf32>
    %cst_276 = arith.constant 0.000000e+00 : f32
    %1185 = vector.broadcast %cst_276 : f32 to vector<8x1xf32>
    %c0_i32_277 = arith.constant 0 : i32
    %1186 = arith.cmpi sle, %1, %c0_i32_277 : i32
    %1187 = arith.subf %105, %1183 : vector<8x1xf32>
    %1188 = math.exp %1187 : vector<8x1xf32>
    %cst_278 = arith.constant 0.000000e+00 : f32
    %1189 = vector.broadcast %cst_278 : f32 to vector<8x1xf32>
    %1190 = arith.select %1186, %1188, %1189 : vector<8x1xf32>
    %1191 = vector.broadcast %1190 : vector<8x1xf32> to vector<8x16xf32>
    %1192 = arith.mulf %1191, %96 : vector<8x16xf32>
    %1193 = arith.addf %1184, %1192 : vector<8x16xf32>
    %1194 = arith.addf %1185, %1190 : vector<8x1xf32>
    %c1_i32_279 = arith.constant 1 : i32
    %1195 = arith.cmpi sle, %1, %c1_i32_279 : i32
    %1196 = arith.subf %181, %1183 : vector<8x1xf32>
    %1197 = math.exp %1196 : vector<8x1xf32>
    %cst_280 = arith.constant 0.000000e+00 : f32
    %1198 = vector.broadcast %cst_280 : f32 to vector<8x1xf32>
    %1199 = arith.select %1195, %1197, %1198 : vector<8x1xf32>
    %1200 = vector.broadcast %1199 : vector<8x1xf32> to vector<8x16xf32>
    %1201 = arith.mulf %1200, %172 : vector<8x16xf32>
    %1202 = arith.addf %1193, %1201 : vector<8x16xf32>
    %1203 = arith.addf %1194, %1199 : vector<8x1xf32>
    %c2_i32_281 = arith.constant 2 : i32
    %1204 = arith.cmpi sle, %1, %c2_i32_281 : i32
    %1205 = arith.subf %257, %1183 : vector<8x1xf32>
    %1206 = math.exp %1205 : vector<8x1xf32>
    %cst_282 = arith.constant 0.000000e+00 : f32
    %1207 = vector.broadcast %cst_282 : f32 to vector<8x1xf32>
    %1208 = arith.select %1204, %1206, %1207 : vector<8x1xf32>
    %1209 = vector.broadcast %1208 : vector<8x1xf32> to vector<8x16xf32>
    %1210 = arith.mulf %1209, %248 : vector<8x16xf32>
    %1211 = arith.addf %1202, %1210 : vector<8x16xf32>
    %1212 = arith.addf %1203, %1208 : vector<8x1xf32>
    %c3_i32_283 = arith.constant 3 : i32
    %1213 = arith.cmpi sle, %1, %c3_i32_283 : i32
    %1214 = arith.subf %333, %1183 : vector<8x1xf32>
    %1215 = math.exp %1214 : vector<8x1xf32>
    %cst_284 = arith.constant 0.000000e+00 : f32
    %1216 = vector.broadcast %cst_284 : f32 to vector<8x1xf32>
    %1217 = arith.select %1213, %1215, %1216 : vector<8x1xf32>
    %1218 = vector.broadcast %1217 : vector<8x1xf32> to vector<8x16xf32>
    %1219 = arith.mulf %1218, %324 : vector<8x16xf32>
    %1220 = arith.addf %1211, %1219 : vector<8x16xf32>
    %1221 = arith.addf %1212, %1217 : vector<8x1xf32>
    %c4_i32_285 = arith.constant 4 : i32
    %1222 = arith.cmpi sle, %1, %c4_i32_285 : i32
    %1223 = arith.subf %409, %1183 : vector<8x1xf32>
    %1224 = math.exp %1223 : vector<8x1xf32>
    %cst_286 = arith.constant 0.000000e+00 : f32
    %1225 = vector.broadcast %cst_286 : f32 to vector<8x1xf32>
    %1226 = arith.select %1222, %1224, %1225 : vector<8x1xf32>
    %1227 = vector.broadcast %1226 : vector<8x1xf32> to vector<8x16xf32>
    %1228 = arith.mulf %1227, %400 : vector<8x16xf32>
    %1229 = arith.addf %1220, %1228 : vector<8x16xf32>
    %1230 = arith.addf %1221, %1226 : vector<8x1xf32>
    %c5_i32_287 = arith.constant 5 : i32
    %1231 = arith.cmpi sle, %1, %c5_i32_287 : i32
    %1232 = arith.subf %485, %1183 : vector<8x1xf32>
    %1233 = math.exp %1232 : vector<8x1xf32>
    %cst_288 = arith.constant 0.000000e+00 : f32
    %1234 = vector.broadcast %cst_288 : f32 to vector<8x1xf32>
    %1235 = arith.select %1231, %1233, %1234 : vector<8x1xf32>
    %1236 = vector.broadcast %1235 : vector<8x1xf32> to vector<8x16xf32>
    %1237 = arith.mulf %1236, %476 : vector<8x16xf32>
    %1238 = arith.addf %1229, %1237 : vector<8x16xf32>
    %1239 = arith.addf %1230, %1235 : vector<8x1xf32>
    %c6_i32_289 = arith.constant 6 : i32
    %1240 = arith.cmpi sle, %1, %c6_i32_289 : i32
    %1241 = arith.subf %561, %1183 : vector<8x1xf32>
    %1242 = math.exp %1241 : vector<8x1xf32>
    %cst_290 = arith.constant 0.000000e+00 : f32
    %1243 = vector.broadcast %cst_290 : f32 to vector<8x1xf32>
    %1244 = arith.select %1240, %1242, %1243 : vector<8x1xf32>
    %1245 = vector.broadcast %1244 : vector<8x1xf32> to vector<8x16xf32>
    %1246 = arith.mulf %1245, %552 : vector<8x16xf32>
    %1247 = arith.addf %1238, %1246 : vector<8x16xf32>
    %1248 = arith.addf %1239, %1244 : vector<8x1xf32>
    %c7_i32_291 = arith.constant 7 : i32
    %1249 = arith.cmpi sle, %1, %c7_i32_291 : i32
    %1250 = arith.subf %637, %1183 : vector<8x1xf32>
    %1251 = math.exp %1250 : vector<8x1xf32>
    %cst_292 = arith.constant 0.000000e+00 : f32
    %1252 = vector.broadcast %cst_292 : f32 to vector<8x1xf32>
    %1253 = arith.select %1249, %1251, %1252 : vector<8x1xf32>
    %1254 = vector.broadcast %1253 : vector<8x1xf32> to vector<8x16xf32>
    %1255 = arith.mulf %1254, %628 : vector<8x16xf32>
    %1256 = arith.addf %1247, %1255 : vector<8x16xf32>
    %1257 = arith.addf %1248, %1253 : vector<8x1xf32>
    %c8_i32_293 = arith.constant 8 : i32
    %1258 = arith.cmpi sle, %1, %c8_i32_293 : i32
    %1259 = arith.subf %713, %1183 : vector<8x1xf32>
    %1260 = math.exp %1259 : vector<8x1xf32>
    %cst_294 = arith.constant 0.000000e+00 : f32
    %1261 = vector.broadcast %cst_294 : f32 to vector<8x1xf32>
    %1262 = arith.select %1258, %1260, %1261 : vector<8x1xf32>
    %1263 = vector.broadcast %1262 : vector<8x1xf32> to vector<8x16xf32>
    %1264 = arith.mulf %1263, %704 : vector<8x16xf32>
    %1265 = arith.addf %1256, %1264 : vector<8x16xf32>
    %1266 = arith.addf %1257, %1262 : vector<8x1xf32>
    %c9_i32_295 = arith.constant 9 : i32
    %1267 = arith.cmpi sle, %1, %c9_i32_295 : i32
    %1268 = arith.subf %789, %1183 : vector<8x1xf32>
    %1269 = math.exp %1268 : vector<8x1xf32>
    %cst_296 = arith.constant 0.000000e+00 : f32
    %1270 = vector.broadcast %cst_296 : f32 to vector<8x1xf32>
    %1271 = arith.select %1267, %1269, %1270 : vector<8x1xf32>
    %1272 = vector.broadcast %1271 : vector<8x1xf32> to vector<8x16xf32>
    %1273 = arith.mulf %1272, %780 : vector<8x16xf32>
    %1274 = arith.addf %1265, %1273 : vector<8x16xf32>
    %1275 = arith.addf %1266, %1271 : vector<8x1xf32>
    %c10_i32_297 = arith.constant 10 : i32
    %1276 = arith.cmpi sle, %1, %c10_i32_297 : i32
    %1277 = arith.subf %865, %1183 : vector<8x1xf32>
    %1278 = math.exp %1277 : vector<8x1xf32>
    %cst_298 = arith.constant 0.000000e+00 : f32
    %1279 = vector.broadcast %cst_298 : f32 to vector<8x1xf32>
    %1280 = arith.select %1276, %1278, %1279 : vector<8x1xf32>
    %1281 = vector.broadcast %1280 : vector<8x1xf32> to vector<8x16xf32>
    %1282 = arith.mulf %1281, %856 : vector<8x16xf32>
    %1283 = arith.addf %1274, %1282 : vector<8x16xf32>
    %1284 = arith.addf %1275, %1280 : vector<8x1xf32>
    %c11_i32_299 = arith.constant 11 : i32
    %1285 = arith.cmpi sle, %1, %c11_i32_299 : i32
    %1286 = arith.subf %941, %1183 : vector<8x1xf32>
    %1287 = math.exp %1286 : vector<8x1xf32>
    %cst_300 = arith.constant 0.000000e+00 : f32
    %1288 = vector.broadcast %cst_300 : f32 to vector<8x1xf32>
    %1289 = arith.select %1285, %1287, %1288 : vector<8x1xf32>
    %1290 = vector.broadcast %1289 : vector<8x1xf32> to vector<8x16xf32>
    %1291 = arith.mulf %1290, %932 : vector<8x16xf32>
    %1292 = arith.addf %1283, %1291 : vector<8x16xf32>
    %1293 = arith.addf %1284, %1289 : vector<8x1xf32>
    %c12_i32_301 = arith.constant 12 : i32
    %1294 = arith.cmpi sle, %1, %c12_i32_301 : i32
    %1295 = arith.subf %1017, %1183 : vector<8x1xf32>
    %1296 = math.exp %1295 : vector<8x1xf32>
    %cst_302 = arith.constant 0.000000e+00 : f32
    %1297 = vector.broadcast %cst_302 : f32 to vector<8x1xf32>
    %1298 = arith.select %1294, %1296, %1297 : vector<8x1xf32>
    %1299 = vector.broadcast %1298 : vector<8x1xf32> to vector<8x16xf32>
    %1300 = arith.mulf %1299, %1008 : vector<8x16xf32>
    %1301 = arith.addf %1292, %1300 : vector<8x16xf32>
    %1302 = arith.addf %1293, %1298 : vector<8x1xf32>
    %c13_i32_303 = arith.constant 13 : i32
    %1303 = arith.cmpi sle, %1, %c13_i32_303 : i32
    %1304 = arith.subf %1093, %1183 : vector<8x1xf32>
    %1305 = math.exp %1304 : vector<8x1xf32>
    %cst_304 = arith.constant 0.000000e+00 : f32
    %1306 = vector.broadcast %cst_304 : f32 to vector<8x1xf32>
    %1307 = arith.select %1303, %1305, %1306 : vector<8x1xf32>
    %1308 = vector.broadcast %1307 : vector<8x1xf32> to vector<8x16xf32>
    %1309 = arith.mulf %1308, %1084 : vector<8x16xf32>
    %1310 = arith.addf %1301, %1309 : vector<8x16xf32>
    %1311 = arith.addf %1302, %1307 : vector<8x1xf32>
    %c14_i32_305 = arith.constant 14 : i32
    %1312 = arith.cmpi sle, %1, %c14_i32_305 : i32
    %1313 = arith.subf %1169, %1183 : vector<8x1xf32>
    %1314 = math.exp %1313 : vector<8x1xf32>
    %cst_306 = arith.constant 0.000000e+00 : f32
    %1315 = vector.broadcast %cst_306 : f32 to vector<8x1xf32>
    %1316 = arith.select %1312, %1314, %1315 : vector<8x1xf32>
    %1317 = vector.broadcast %1316 : vector<8x1xf32> to vector<8x16xf32>
    %1318 = arith.mulf %1317, %1160 : vector<8x16xf32>
    %1319 = arith.addf %1310, %1318 : vector<8x16xf32>
    %1320 = arith.addf %1311, %1316 : vector<8x1xf32>
    %1321 = tpu.reciprocal %1320 {approx = true} : vector<8x1xf32> -> vector<8x1xf32>
    %1322 = vector.broadcast %1321 : vector<8x1xf32> to vector<8x16xf32>
    %1323 = arith.mulf %1319, %1322 : vector<8x16xf32>
    %cst_307 = arith.constant dense<0.000000e+00> : vector<8x1xf32>
    %1324 = tpu.matmul %1323, %20, %cst_307 {dimension_numbers = #tpu.dot_dimension_numbers<[1], [0], [0], [1], [0, 0, 1, 1], [], []>} : vector<8x16xf32>, vector<16x1xf32>, vector<8x1xf32> -> vector<8x1xf32>
    %1325 = vector.broadcast %22 : vector<1x1xf32> to vector<8x1xf32>
    %1326 = arith.addf %1324, %1325 : vector<8x1xf32>
    %1327 = vector.shape_cast %1326 : vector<8x1xf32> to vector<1x8x1xf32>
    %c0_308 = arith.constant 0 : index
    %c0_309 = arith.constant 0 : index
    %c0_310 = arith.constant 0 : index
    %1328 = vector.load %arg13[%c0_308, %c0_309, %c0_310] : memref<1x8x1xf32, #tpu.memory_space<vmem>>, vector<1x8x1xf32>
    tpu.vector_store %arg13[%c0_308, %c0_309, %c0_310], %1327 {strides = array<i32>} : memref<1x8x1xf32, #tpu.memory_space<vmem>>, vector<1x8x1xf32>,
    return
  }
  func.func @transform_0(%arg0: i32, %arg1: memref<3xi32, #tpu.memory_space<smem>>) -> (i32, i32) {
    %c0_i32 = arith.constant 0 : i32
    %c0_i32_0 = arith.constant 0 : i32
    %c0_i32_1 = arith.constant 0 : i32
    return %c0_i32, %c0_i32_0 : i32, i32
  }
  func.func @transform_1(%arg0: i32, %arg1: memref<3xi32, #tpu.memory_space<smem>>) -> (i32, i32, i32) {
    %c0_i32 = arith.constant 0 : i32
    %c0_i32_0 = arith.constant 0 : i32
    %c0_i32_1 = arith.constant 0 : i32
    return %arg0, %c0_i32, %c0_i32_0 : i32, i32, i32
  }
  func.func @transform_2(%arg0: i32, %arg1: memref<3xi32, #tpu.memory_space<smem>>) -> (i32, i32, i32) {
    %c0_i32 = arith.constant 0 : i32
    %c0_i32_0 = arith.constant 0 : i32
    %c0_i32_1 = arith.constant 0 : i32
    return %arg0, %c0_i32, %c0_i32_0 : i32, i32, i32
  }
  func.func @transform_3(%arg0: i32, %arg1: memref<3xi32, #tpu.memory_space<smem>>) -> (i32, i32, i32) {
    %c0_i32 = arith.constant 0 : i32
    %c0_i32_0 = arith.constant 0 : i32
    %c0_i32_1 = arith.constant 0 : i32
    return %arg0, %c0_i32, %c0_i32_0 : i32, i32, i32
  }
  func.func @transform_4(%arg0: i32, %arg1: memref<3xi32, #tpu.memory_space<smem>>) -> (i32, i32, i32) {
    %c0_i32 = arith.constant 0 : i32
    %c0_i32_0 = arith.constant 0 : i32
    %c0_i32_1 = arith.constant 0 : i32
    return %arg0, %c0_i32, %c0_i32_0 : i32, i32, i32
  }
  func.func @transform_5(%arg0: i32, %arg1: memref<3xi32, #tpu.memory_space<smem>>) -> (i32, i32, i32) {
    %c0_i32 = arith.constant 0 : i32
    %c0_i32_0 = arith.constant 0 : i32
    %c0_i32_1 = arith.constant 0 : i32
    return %arg0, %c0_i32, %c0_i32_0 : i32, i32, i32
  }
  func.func @transform_6(%arg0: i32, %arg1: memref<3xi32, #tpu.memory_space<smem>>) -> (i32, i32, i32) {
    %c0_i32 = arith.constant 0 : i32
    %c0_i32_0 = arith.constant 0 : i32
    %c0_i32_1 = arith.constant 0 : i32
    return %arg0, %c0_i32, %c0_i32_0 : i32, i32, i32
  }
  func.func @transform_7(%arg0: i32, %arg1: memref<3xi32, #tpu.memory_space<smem>>) -> (i32, i32, i32) {
    %c0_i32 = arith.constant 0 : i32
    %c0_i32_0 = arith.constant 0 : i32
    %c0_i32_1 = arith.constant 0 : i32
    return %arg0, %c0_i32, %c0_i32_0 : i32, i32, i32
  }
  func.func @transform_8(%arg0: i32, %arg1: memref<3xi32, #tpu.memory_space<smem>>) -> (i32, i32, i32) {
    %c0_i32 = arith.constant 0 : i32
    %c0_i32_0 = arith.constant 0 : i32
    %c0_i32_1 = arith.constant 0 : i32
    return %arg0, %c0_i32, %c0_i32_0 : i32, i32, i32
  }
  func.func @transform_9(%arg0: i32, %arg1: memref<3xi32, #tpu.memory_space<smem>>) -> (i32, i32, i32) {
    %c0_i32 = arith.constant 0 : i32
    %c0_i32_0 = arith.constant 0 : i32
    %c0_i32_1 = arith.constant 0 : i32
    return %arg0, %c0_i32, %c0_i32_0 : i32, i32, i32
  }
  func.func @transform_10(%arg0: i32, %arg1: memref<3xi32, #tpu.memory_space<smem>>) -> (i32, i32, i32) {
    %c0_i32 = arith.constant 0 : i32
    %c0_i32_0 = arith.constant 0 : i32
    %c0_i32_1 = arith.constant 0 : i32
    return %arg0, %c0_i32, %c0_i32_0 : i32, i32, i32
  }
  func.func @transform_11(%arg0: i32, %arg1: memref<3xi32, #tpu.memory_space<smem>>) -> (i32, i32, i32) {
    %c0_i32 = arith.constant 0 : i32
    %c0_i32_0 = arith.constant 0 : i32
    %c0_i32_1 = arith.constant 0 : i32
    return %arg0, %c0_i32, %c0_i32_0 : i32, i32, i32
  }
}

</mosaic_0001>

<bundles_post_ra>
// kernel: cograsp_forward.2
= control target key start
LH: loop header
LB: loop body
LE: loop exit
PB: predicated region body
PF: predicated region fallthrough
CT: control target
= control target key end

     0   :  { %vm34_vm0 = vcmask 64512   ;;  %vm62_vm1 = vcmask 1043456   ;;  %vm58_vm2 = vcmask 31744   ;;  %s283_s1 = inlined_call_operand.vmem [shape: f32[8,4], index: 1, kind: input, shape index: {}]   ;;  %s284_s0 = inlined_call_operand.vmem [shape: f32[8,8], index: 0, kind: input, shape index: {}]   ;;  %s285_s2 = inlined_call_operand.vmem [shape: f32[4,8], index: 2, kind: input, shape index: {}]   ;;  %s286_s3 = inlined_call_operand.vmem [shape: f32[4,8], index: 3, kind: input, shape index: {}]   ;;  %s287_s4 = inlined_call_operand.vmem [shape: f32[1,8], index: 4, kind: input, shape index: {}]   ;;  %s288_s5 = inlined_call_operand.vmem [shape: f32[8,8], index: 5, kind: input, shape index: {}]   ;;  %s289_s6 = inlined_call_operand.vmem [shape: f32[8,8], index: 6, kind: input, shape index: {}]   ;;  %s290_s7 = inlined_call_operand.vmem [shape: f32[1,8], index: 7, kind: input, shape index: {}]   ;;  %s291_s8 = inlined_call_operand.vmem [shape: f32[8,8], index: 8, kind: output, shape index: {}]  }
   0x1   :  { %v30_v0 = vld [vmem:[%s283_s1] sm:$0xff] }
   0x2   :  { %v29_v1 = vld [vmem:[%s284_s0] sm:$0xff]  ;;  %53 = vmatpush.msra.mxu0 %v30_v0 }
   0x3   :  { %v31_v2 = vld [vmem:[%s285_s2] sm:$0xf]  ;;  %196 = vmatmul.msk.f32.vlgmr.msra.gmra.mxu0 %vm34_vm0, %v29_v1 }
   0x4   :  { %199 = vmatpush.msk.msra.mxu2 %vm62_vm1, %v31_v2  ;;  %v32_v3 = vld [vmem:[%s286_s3] sm:$0xf] }
   0x5   :  { %200 = vmatmul.msk.f32.vlgmr.msra.gmra.mxu2 %vm58_vm2, %v30_v0  ;;  %197 = vmatpush.msk.msra.mxu1 %vm62_vm1, %v32_v3  ;;  %v117_v5 = vld [vmem:[%s288_s5] sm:$0xff] }
   0x6   :  { %v118_v6 = vld [vmem:[%s289_s6] sm:$0xff] }
   0x7   :  { %181 = vmatpush.msrb.mxu1 %v117_v5  ;;  %158 = vmatpush.msrb.mxu0 %v118_v6  ;;  %v204_v8 = vld [vmem:[%s287_s4] ss:$0 sm:$0xff] }
   0x8   :  { %v205_v14 = vld [vmem:[%s290_s7] ss:$0 sm:$0xff] }
  0x80   :  { %v55_v4 = vpop.f32.mrf.mxu0 }
  0x81   :  { %198 = vmatmul.msk.f32.vlgmr.msra.gmra.mxu1 %vm58_vm2, %v55_v4 }
  0x88   :  { %v109_v7 = vpop.f32.mrf.mxu2 }
  0xfe   :  { %v83_v9 = vpop.f32.mrf.mxu1 }
  0xff   :  { %v110_v10 = vadd.f32 %v109_v7, %v83_v9 }
 0x101   :  { %v115_v11 = vadd.f32 %v204_v8, %v110_v10 }
 0x103   :  { %v116_v12 = vmax.f32 %v115_v11, 0.0 }
 0x105   :  { %135 = vmatpush.msra.mxu3 %v116_v12  ;;  %203 = vmatmul.msk.f32.vlgmr.msrb.gmra.mxu1 %vm34_vm0, %v116_v12 }
 0x106   :  { %201 = vmatmul.msk.f32.vlgmr.msra.gmra.mxu3 %vm34_vm0, %v29_v1 }
 0x182   :  { %v183_v15 = vpop.f32.mrf.mxu1 }
 0x189   :  { %v137_v13 = vpop.f32.mrf.mxu3 }
 0x18a   :  { %202 = vmatmul.msk.f32.vlgmr.msrb.gmra.mxu0 %vm34_vm0, %v137_v13 }
 0x207   :  { %v160_v16 = vpop.f32.mrf.mxu0 }
 0x208   :  { %v184_v17 = vadd.f32 %v183_v15, %v160_v16 }
 0x20a   :  { %v189_v18 = vadd.f32 %v205_v14, %v184_v17 }
 0x20c   :  { %v190_v19 = vmax.f32 %v189_v18, 0.0 }
 0x20e   :  { %191 = vst.msk [vmem:[%s291_s8] sm:$0xff] %vm34_vm0, %v190_v19 }

// kernel: cograsp_forward.3
= control target key start
LH: loop header
LB: loop body
LE: loop exit
PB: predicated region body
PF: predicated region fallthrough
CT: control target
= control target key end

     0   :  { %s4106_s24 = smov [#allocation3]   ;;  %s5336_s0 = inlined_call_operand.vmem [shape: s32[3], index: 0, kind: input, shape index: {}]   ;;  %s5337_s1 = inlined_call_operand.vmem [shape: f32[120,12], index: 1, kind: input, shape index: {}]   ;;  %s5338_s2 = inlined_call_operand.vmem [shape: f32[3,12,64], index: 2, kind: input, shape index: {}]   ;;  %s5339_s3 = inlined_call_operand.vmem [shape: f32[3,16,64], index: 3, kind: input, shape index: {}]   ;;  %s5340_s4 = inlined_call_operand.vmem [shape: f32[3,1,64], index: 4, kind: input, shape index: {}]   ;;  %s5341_s5 = inlined_call_operand.vmem [shape: f32[3,16,64], index: 5, kind: input, shape index: {}]   ;;  %s5342_s6 = inlined_call_operand.vmem [shape: f32[3,16,64], index: 6, kind: input, shape index: {}]   ;;  %s5343_s7 = inlined_call_operand.vmem [shape: f32[3,1,64], index: 7, kind: input, shape index: {}]   ;;  %s5344_s8 = inlined_call_operand.vmem [shape: f32[3,1,16], index: 8, kind: input, shape index: {}]   ;;  %s5345_s9 = inlined_call_operand.vmem [shape: f32[3,1,1], index: 9, kind: input, shape index: {}]   ;;  %s5346_s10 = inlined_call_operand.vmem [shape: f32[3,16,1], index: 10, kind: input, shape index: {}]   ;;  %s5347_s11 = inlined_call_operand.vmem [shape: f32[3,1,1], index: 11, kind: input, shape index: {}]   ;;  %s5348_s12 = inlined_call_operand.vmem [shape: f32[3,8,1], index: 12, kind: output, shape index: {}]  }
   0x1   :  { %s18_s23 = sshll.u32 %s5336_s0, 4  ;;  %s19_s23 = int_to_ptr.vmem [resolvable:$true] %s18_s23 }
   0x2   :  { %21 = dma.vmem_to_smem %s19_s23, 16, %s4106_s24, [#allocation2] }
   0x3   :  { %4100 = dma.done.wait [#allocation2], 16 }
   0x4   :  { %4101 = vsyncadd [#allocation2], 4294967280 }
   0x5   :  { %24 = sfence }
   0x6   :  { %s4182_s25 = smov 0  }
   0x7 LB: > { %s4188_s26 = sadd.s32 4294967295, %s4104_s25   ;;  %p3663_p0 = scmp.ge.s32.totalorder %s4104_s25, 1  ;;  %s4104_s25 = sphi %s4182_s25, %s30_s25  }
   0x8   : > { %p426_p1 = scmp.lt.s32.totalorder %s4104_s25, 4 }
   0xa   : > { %p427_p2 = pnand %p3663_p0, %p426_p1 }
   0xb   : > { %p500_p3 = scmp.lt.s32.totalorder (!%p427_p2), %s4188_s26, 2  ;;  %s4109_s22 = smov (!%p427_p2), 16  }
   0xc   : > { %430 = sbr.rel (%p427_p2) target bundleno = 10064 (0x2750), region = 64  ;;  %s4110_s23 = smov (!%p427_p2), 32  }
   0xd   : > { %s4290_s14 = sld [smem:[#allocation3 + %s4188_s26]] (!%p427_p2)  ;;  %s4111_s19 = smov (!%p427_p2), 80  }
  0x11   : > { %s4194_s0 = scalar_select %p500_p3, %s4188_s26, 2  ;;  %vm624_vm0 = vcmask 1043456   ;;  %v545_v4 = vld [vmem:[%s5337_s1] sm:$0xff]  ;;  %vm578_vm1 = vcmask 97280   ;;  %v4107_v9 = vmov 0.0   ;;  %v546_v35 = vld [vmem:[%s5337_s1 + $0x8] sm:$0xff] }
  0x12   : > { %vm690_vm7 = vcmask 130048  }
  0x13   : > { %s4197_s27 = sshll.u32 %s4194_s0, 4  ;;  %s4203_s30 = scalar_lea.vmem %s5340_s4, %s4194_s0 }
  0x14   : > { %s504_s15 = scalar_lea.vmem %s5338_s2, %s4197_s27  ;;  %s4213_s18 = scalar_lea.vmem %s5339_s3, %s4197_s27  ;;  %v4276_v10 = vld [vmem:[%s4203_s30] ss:$0 sm:$0xff] }
  0x15   : > { %s4219_s21 = scalar_lea.vmem %s5341_s5, %s4197_s27  ;;  %s4225_s24 = scalar_lea.vmem %s5342_s6, %s4197_s27  ;;  %v561_v0 = vld [vmem:[%s504_s15 + $0x8] sm:$0xf]  ;;  %v4228_v1 = vld [vmem:[%s4213_s18] sm:$0xff] }
  0x16   : > { %v4231_v2 = vld [vmem:[%s4213_s18 + $0x8] sm:$0xff]  ;;  %s4237_s13 = scalar_lea.vmem %s5343_s7, %s4194_s0  ;;  %s531_s17 = scalar_lea.vmem %s5345_s9, %s4194_s0  ;;  %3675 = vmatpush.msk.msra.mxu0 %vm624_vm0, %v561_v0  ;;  %v4255_v6 = vld [vmem:[%s4219_s21] sm:$0xff] }
  0x17   : > { %v4244_v3 = vld [vmem:[%s4219_s21 + $0x8] sm:$0xff]  ;;  %708 = vmatpush.msra.mxu1 %v4231_v2  ;;  %v4258_v7 = vld [vmem:[%s4225_s24] sm:$0xff]  ;;  %p860_p4 = scmp.eq.s32.totalorder %s4290_s14, 1  ;;  %p1033_p5 = scmp.eq.s32.totalorder %s4290_s14, 2 }
  0x18   : > { %v4251_v5 = vld [vmem:[%s4225_s24 + $0x8] sm:$0xff]  ;;  %774 = vmatpush.msra.mxu2 %v4244_v3  ;;  %v560_v8 = vld [vmem:[%s504_s15] sm:$0xff]  ;;  %s4108_s15 = smov 96   ;;  %p1206_p6 = scmp.eq.s32.totalorder %s4290_s14, 3 }
  0x19   : > { %709 = vmatpush.msra.mxu1 %v4228_v1  ;;  %794 = vmatpush.msra.mxu3 %v4251_v5  ;;  %s861_s16 = scalar_select %p860_p4, 1, 0  ;;  %v4310_v48 = vld [vmem:[%s4237_s13] ss:$0 sm:$0xff] }
  0x1a   : > { %643 = vmatpush.msra.mxu0 %v560_v8  ;;  %710 = vmatmul.f32.vlgmr.msra.gmra.mxu1 %v4107_v9  ;;  %s1034_s26 = scalar_select %p1033_p5, 1, 0 }
  0x1b   : > { %3676 = vmatmul.msk.f32.vlgmr.msra.gmra.mxu0 %vm578_vm1, %v545_v4  ;;  %887 = vmatpush.msrb.mxu1 %v4231_v2  ;;  %v862_v36 = vstv %s861_s16  ;;  %s1207_s29 = scalar_select %p1206_p6, 1, 0 }
  0x1c   : > { %775 = vmatpush.msra.mxu2 %v4255_v6  ;;  %795 = vmatpush.msra.mxu3 %v4258_v7  ;;  %vm4293_vm6 = vcmp.eq.s32.totalorder %v862_v36, 1  ;;  %p1379_p7 = scmp.eq.s32.totalorder %s4290_s14, 4  ;;  %p1552_p8 = scmp.eq.s32.totalorder %s4290_s14, 5 }
  0x1d   : > { %888 = vmatpush.msrb.mxu1 %v4228_v1  ;;  %796 = vmatmul.f32.vlgmr.msra.gmra.mxu3 %v4107_v9  ;;  %p1725_p9 = scmp.eq.s32.totalorder %s4290_s14, 6  ;;  %p1898_p10 = scmp.eq.s32.totalorder %s4290_s14, 7 }
  0x1e   : > { %950 = vmatpush.msrb.mxu2 %v4244_v3  ;;  %975 = vmatpush.msrb.mxu3 %v4251_v5  ;;  %s1380_s20 = scalar_select %p1379_p7, 1, 0 }
  0x1f   : > { %1060 = vmatpush.msra.mxu1 %v4231_v2  ;;  %s1553_s16 = scalar_select %p1552_p8, 1, 0 }
  0x20   : > { %951 = vmatpush.msrb.mxu2 %v4255_v6  ;;  %976 = vmatpush.msrb.mxu3 %v4258_v7  ;;  %s1726_s28 = scalar_select %p1725_p9, 1, 0 }
  0x21   : > { %1061 = vmatpush.msra.mxu1 %v4228_v1  ;;  %p2071_p11 = scmp.eq.s32.totalorder %s4290_s14, 8  ;;  %p2244_p12 = scmp.eq.s32.totalorder %s4290_s14, 9 }
  0x22   : > { %1148 = vmatpush.msra.mxu3 %v4251_v5  ;;  %p2417_p13 = scmp.eq.s32.totalorder %s4290_s14, 10  ;;  %p2590_p0 = scmp.eq.s32.totalorder %s4290_s14, 11 }
  0x23   : > { %3677 = vmatmul.msk.f32.gmra.mxu0 %vm578_vm1, %v546_v35  ;;  %p2763_p1 = scmp.eq.s32.totalorder %s4290_s14, 12  ;;  %p2936_p2 = scmp.eq.s32.totalorder %s4290_s14, 13 }
  0x24   : > { %1149 = vmatpush.msra.mxu3 %v4258_v7  ;;  %p3109_p3 = scmp.eq.s32.totalorder %s4290_s14, 14  ;;  %p1028_p4 = scmp.le.s32.totalorder %s4290_s14, 1 }
  0x25   : > { %p855_p5 = scmp.le.s32.totalorder %s4290_s14, 0  ;;  %p1201_p6 = scmp.le.s32.totalorder %s4290_s14, 2 }
  0x26   : > { %p1374_p7 = scmp.le.s32.totalorder %s4290_s14, 3  ;;  %p1547_p8 = scmp.le.s32.totalorder %s4290_s14, 4 }
  0x27   : > { %p1720_p9 = scmp.le.s32.totalorder %s4290_s14, 5 }
  0x97   : > { %v711_v12 = vpop.f32.mrf.mxu1 }
  0x98   : > { %v645_v11 = vpop.f32.mrf.mxu0 }
  0x99   : > { %v646_v13 = vadd.f32 %v4276_v10, %v645_v11 }
  0x9b   : > { %v714_v14 = vadd.f32 %v711_v12, %v646_v13 }
  0x9d   : > { %3796 = vtanh.f32 %v714_v14  ;;  %v3691_v16 = vmul.f32 -1.442695, %v714_v14 }
  0x9f   : > { %3798 = vpow2.f32 %v3691_v16 }
  0xa0   : > { %v648_v43 = vpop.f32.mrf.mxu0  ;;  %v797_v50 = vpop.f32.mrf.mxu3 }
  0xa1   : > { %v649_v44 = vadd.f32 %v4276_v10, %v648_v43 }
  0xa3   : > { %v3797_v15 = vpop.eup %3796 }
  0xa4   : > { %737 = vrot.lane.b32.xlu0 %v3797_v15, %s4108_s15 }
  0xa5   : > { %v3799_v17 = vpop.eup %3798 }
  0xa6   : > { %v718_v18 = vadd.f32 1.0, %v3799_v17 }
  0xa8   : > { %3800 = vrcp.f32 %v718_v18  ;;  %v730_v24 = vand.u32 2147483648, %v718_v18  ;;  %vm724_vm3 = vweird.f32 %v718_v18  ;;  %v728_v25 = vand.u32 2147483647, %v718_v18 }
  0xaa   : > { %v731_v27 = vor.u32 1.1754944e-38, %v730_v24  ;;  %vm729_vm5 = vcmp.eq.f32.partialorder %v728_v25, 8.507059e+37 }
  0xae   : > { %v3801_v19 = vpop.eup %3800 }
  0xaf   : > { %v720_v20 = vmul.f32 %v3801_v19, %v718_v18  ;;  %vm725_vm2 = vweird.f32 %v3801_v19 }
  0xb0   : > { %vm726_vm4 = vmor %vm724_vm3, %vm725_vm2 }
  0xb1   : > { %v721_v21 = vsub.f32 1.0, %v720_v20 }
  0xb3   : > { %v722_v22 = vmul.f32 %v3801_v19, %v721_v21 }
  0xb5   : > { %v723_v23 = vadd.f32 %v3801_v19, %v722_v22 }
  0xb7   : > { %v727_v26 = vsel %vm726_vm4, %v3801_v19, %v723_v23 }
  0xb8   : > { %v732_v29 = vsel %vm729_vm5, %v731_v27, %v727_v26 }
  0xb9   : > { %v735_v31 = vmul.f32 0.0, %v732_v29 }
 0x116   : > { %v738_v28 = vpop.permute.xlu0 %737 }
 0x117   : > { %v740_v30 = vmul.f32 %v738_v28, %v732_v29 }
 0x119   : > { %742 = vrot.lane.b32.xlu0 %v740_v30, %s4109_s22 }
 0x18b   : > { %v743_v32 = vpop.permute.xlu0 %742 }
 0x18c   : > { %v4281_v33 = vadd.f32 %v743_v32, %v735_v31 }
 0x18e   : > { %3802 = vtanh.f32 %v4281_v33  ;;  %v866_v27 = vsel %vm4293_vm6, 0.0, %v4281_v33  ;;  %v1035_v33 = vstv %s1034_s26  ;;  %s1899_s26 = scalar_select %p1898_p10, 1, 0 }
 0x18f   : > { %vm4328_vm0 = vcmp.eq.s32.totalorder %v1035_v33, 1  ;;  %p1893_p10 = scmp.le.s32.totalorder %s4290_s14, 6 }
 0x194   : > { %v3803_v34 = vpop.eup %3802 }
 0x195   : > { %748 = vrot.lane.b32.xlu1 %v3803_v34, %s4110_s23 }
 0x207   : > { %v749_v37 = vpop.permute.xlu1 %748 }
 0x208   : > { %v751_v38 = vmul.f32 %v749_v37, %v732_v29 }
 0x20a   : > { %756 = vrot.lane.b32.xlu1 %v751_v38, %s4111_s19  ;;  %v864_v40 = vsel %vm4293_vm6, 0.0, %v751_v38 }
 0x20b   : > { %869 = vrot.lane.b32.xlu2 %v864_v40, %s4111_s19 }
 0x265   : > { %v870_v41 = vpop.permute.xlu2 %869 }
 0x266   : > { %3694 = vmatmul.msk.f32.vlgmr.msrb.gmra.mxu1 %vm690_vm7, %v870_v41 }
 0x267   : > { %1233 = vmatpush.msrb.mxu1 %v4231_v2 }
 0x269   : > { %1234 = vmatpush.msrb.mxu1 %v4228_v1 }
 0x27c   : > { %v757_v42 = vpop.permute.xlu1 %756 }
 0x27d   : > { %3692 = vmatmul.msk.f32.vlgmr.msra.gmra.mxu2 %vm690_vm7, %v757_v42 }
 0x27e   : > { %1123 = vmatpush.msra.mxu2 %v4244_v3 }
 0x280   : > { %1124 = vmatpush.msra.mxu2 %v4255_v6 }
 0x2e3   : > { %v890_v45 = vpop.f32.mrf.mxu1 }
 0x2e4   : > { %v893_v46 = vadd.f32 %v890_v45, %v649_v44  ;;  %v547_v45 = vld [vmem:[%s5337_s1 + $0x10] sm:$0xff] }
 0x2e5   : > { %3678 = vmatmul.msk.f32.gmra.mxu0 %vm578_vm1, %v547_v45 }
 0x2e6   : > { %3804 = vtanh.f32 %v893_v46  ;;  %v3695_v54 = vmul.f32 -1.442695, %v893_v46 }
 0x2ec   : > { %v3805_v47 = vpop.eup %3804 }
 0x2ed   : > { %916 = vrot.lane.b32.xlu2 %v3805_v47, %s4108_s15 }
 0x300   : > { %v777_v49 = vpop.f32.mrf.mxu2 }
 0x301   : > { %v778_v51 = vadd.f32 %v4310_v48, %v777_v49 }
 0x303   : > { %v800_v52 = vadd.f32 %v797_v50, %v778_v51 }
 0x305   : > { %3806 = vtanh.f32 %v800_v52  ;;  %v3693_v12 = vmul.f32 -1.442695, %v800_v52 }
 0x306   : > { %3808 = vpow2.f32 %v3695_v54 }
 0x30b   : > { %v3807_v53 = vpop.eup %3806 }
 0x30c   : > { %823 = vrot.lane.b32.xlu0 %v3807_v53, %s4108_s15  ;;  %v3809_v55 = vpop.eup %3808 }
 0x30d   : > { %v897_v56 = vadd.f32 1.0, %v3809_v55 }
 0x30f   : > { %3810 = vrcp.f32 %v897_v56  ;;  %v909_v62 = vand.u32 2147483648, %v897_v56  ;;  %vm903_vm9 = vweird.f32 %v897_v56  ;;  %v907_v63 = vand.u32 2147483647, %v897_v56 }
 0x310   : > { %3812 = vpow2.f32 %v3693_v12 }
 0x311   : > { %v910_v4 = vor.u32 1.1754944e-38, %v909_v62  ;;  %vm908_vm11 = vcmp.eq.f32.partialorder %v907_v63, 8.507059e+37 }
 0x315   : > { %v3811_v57 = vpop.eup %3810 }
 0x316   : > { %v899_v58 = vmul.f32 %v3811_v57, %v897_v56  ;;  %vm904_vm8 = vweird.f32 %v3811_v57  ;;  %v3813_v13 = vpop.eup %3812 }
 0x317   : > { %vm905_vm10 = vmor %vm903_vm9, %vm904_vm8  ;;  %v804_v14 = vadd.f32 1.0, %v3813_v13 }
 0x318   : > { %v900_v59 = vsub.f32 1.0, %v899_v58 }
 0x319   : > { %3814 = vrcp.f32 %v804_v14  ;;  %v816_v20 = vand.u32 2147483648, %v804_v14  ;;  %vm810_vm13 = vweird.f32 %v804_v14  ;;  %v814_v21 = vand.u32 2147483647, %v804_v14 }
 0x31a   : > { %v901_v60 = vmul.f32 %v3811_v57, %v900_v59 }
 0x31b   : > { %v817_v23 = vor.u32 1.1754944e-38, %v816_v20  ;;  %vm815_vm15 = vcmp.eq.f32.partialorder %v814_v21, 8.507059e+37 }
 0x31c   : > { %v902_v61 = vadd.f32 %v3811_v57, %v901_v60 }
 0x31e   : > { %v906_v0 = vsel %vm905_vm10, %v3811_v57, %v902_v61 }
 0x31f   : > { %v911_v9 = vsel %vm908_vm11, %v910_v4, %v906_v0  ;;  %v3815_v15 = vpop.eup %3814 }
 0x320   : > { %v806_v16 = vmul.f32 %v3815_v15, %v804_v14  ;;  %vm811_vm12 = vweird.f32 %v3815_v15  ;;  %v914_v28 = vmul.f32 %v911_v9, %v866_v27 }
 0x321   : > { %vm812_vm14 = vmor %vm810_vm13, %vm811_vm12 }
 0x322   : > { %v807_v17 = vsub.f32 1.0, %v806_v16 }
 0x324   : > { %v808_v18 = vmul.f32 %v3815_v15, %v807_v17 }
 0x326   : > { %v809_v19 = vadd.f32 %v3815_v15, %v808_v18 }
 0x328   : > { %v813_v22 = vsel %vm812_vm14, %v3815_v15, %v809_v19 }
 0x329   : > { %v818_v25 = vsel %vm815_vm15, %v817_v23, %v813_v22 }
 0x32a   : > { %v821_v32 = vmul.f32 0.0, %v818_v25 }
 0x347   : > { %v917_v8 = vpop.permute.xlu2 %916 }
 0x348   : > { %v919_v11 = vmul.f32 %v917_v8, %v911_v9 }
 0x34a   : > { %921 = vrot.lane.b32.xlu1 %v919_v11, %s4109_s22 }
 0x362   : > { %v651_v50 = vpop.f32.mrf.mxu0 }
 0x363   : > { %v652_v51 = vadd.f32 %v4276_v10, %v651_v50 }
 0x37e   : > { %v824_v24 = vpop.permute.xlu0 %823 }
 0x37f   : > { %v826_v26 = vmul.f32 %v824_v24, %v818_v25 }
 0x381   : > { %828 = vrot.lane.b32.xlu2 %v826_v26, %s4109_s22 }
 0x3bc   : > { %v922_v29 = vpop.permute.xlu1 %921 }
 0x3bd   : > { %v4319_v30 = vadd.f32 %v922_v29, %v914_v28 }
 0x3bf   : > { %3816 = vtanh.f32 %v4319_v30 }
 0x3c5   : > { %v3817_v31 = vpop.eup %3816 }
 0x3c6   : > { %927 = vrot.lane.b32.xlu0 %v3817_v31, %s4110_s23 }
 0x3db   : > { %v829_v34 = vpop.permute.xlu2 %828 }
 0x3dc   : > { %v4323_v35 = vadd.f32 %v829_v34, %v821_v32 }
 0x3de   : > { %3818 = vtanh.f32 %v4323_v35 }
 0x3e4   : > { %v3819_v36 = vpop.eup %3818 }
 0x3e5   : > { %834 = vrot.lane.b32.xlu1 %v3819_v36, %s4110_s23  ;;  %v1039_v36 = vsel %vm4328_vm0, 0.0, %v4319_v30 }
 0x438   : > { %v928_v37 = vpop.permute.xlu0 %927 }
 0x439   : > { %v930_v38 = vmul.f32 %v928_v37, %v911_v9 }
 0x43b   : > { %932 = vrot.lane.b32.xlu2 %v930_v38, %s4111_s19  ;;  %v1037_v41 = vsel %vm4328_vm0, 0.0, %v930_v38 }
 0x43c   : > { %1042 = vrot.lane.b32.xlu1 %v1037_v41, %s4111_s19 }
 0x457   : > { %v835_v42 = vpop.permute.xlu1 %834 }
 0x458   : > { %v4336_v43 = vmul.f32 %v835_v42, %v818_v25  ;;  %v867_v42 = vsel %vm4293_vm6, 0.0, %v4323_v35 }
 0x45a   : > { %v865_v44 = vsel %vm4293_vm6, 0.0, %v4336_v43 }
 0x45b   : > { %957 = vrot.lane.b32.xlu0 %v865_v44, %s4111_s19 }
 0x495   : > { %v933_v46 = vpop.permute.xlu2 %932 }
 0x496   : > { %3696 = vmatmul.msk.f32.vlgmr.msrb.gmra.mxu2 %vm690_vm7, %v933_v46 }
 0x497   : > { %1296 = vmatpush.msrb.mxu2 %v4244_v3 }
 0x499   : > { %1297 = vmatpush.msrb.mxu2 %v4255_v6 }
 0x4ae   : > { %v1043_v47 = vpop.permute.xlu1 %1042 }
 0x4af   : > { %3699 = vmatmul.msk.f32.vlgmr.msra.gmra.mxu1 %vm690_vm7, %v1043_v47  ;;  %v1208_v47 = vstv %s1207_s29  ;;  %s2072_s29 = scalar_select %p2071_p11, 1, 0 }
 0x4b0   : > { %1406 = vmatpush.msra.mxu1 %v4231_v2  ;;  %vm4376_vm12 = vcmp.eq.s32.totalorder %v1208_v47, 1  ;;  %p2066_p11 = scmp.le.s32.totalorder %s4290_s14, 7 }
 0x4b2   : > { %1407 = vmatpush.msra.mxu1 %v4228_v1 }
 0x4cd   : > { %v958_v49 = vpop.permute.xlu0 %957 }
 0x4ce   : > { %3697 = vmatmul.msk.f32.vlgmr.msrb.gmra.mxu3 %vm690_vm7, %v958_v49 }
 0x4cf   : > { %1321 = vmatpush.msrb.mxu3 %v4251_v5 }
 0x4d1   : > { %1322 = vmatpush.msrb.mxu3 %v4258_v7 }
 0x519   : > { %v953_v55 = vpop.f32.mrf.mxu2 }
 0x51a   : > { %v954_v56 = vadd.f32 %v4310_v48, %v953_v55 }
 0x52c   : > { %v1063_v52 = vpop.f32.mrf.mxu1 }
 0x52d   : > { %v1066_v53 = vadd.f32 %v1063_v52, %v652_v51 }
 0x52f   : > { %3820 = vtanh.f32 %v1066_v53  ;;  %v3700_v60 = vmul.f32 -1.442695, %v1066_v53 }
 0x535   : > { %v3821_v54 = vpop.eup %3820 }
 0x536   : > { %1089 = vrot.lane.b32.xlu2 %v3821_v54, %s4108_s15  ;;  %v548_v54 = vld [vmem:[%s5337_s1 + $0x18] sm:$0xff] }
 0x537   : > { %3679 = vmatmul.msk.f32.gmra.mxu0 %vm578_vm1, %v548_v54 }
 0x551   : > { %v978_v57 = vpop.f32.mrf.mxu3 }
 0x552   : > { %v981_v58 = vadd.f32 %v978_v57, %v954_v56 }
 0x554   : > { %3822 = vtanh.f32 %v981_v58  ;;  %v3698_v18 = vmul.f32 -1.442695, %v981_v58 }
 0x555   : > { %3824 = vpow2.f32 %v3700_v60 }
 0x55a   : > { %v3823_v59 = vpop.eup %3822 }
 0x55b   : > { %1004 = vrot.lane.b32.xlu0 %v3823_v59, %s4108_s15  ;;  %v3825_v61 = vpop.eup %3824 }
 0x55c   : > { %v1070_v62 = vadd.f32 1.0, %v3825_v61 }
 0x55e   : > { %3826 = vrcp.f32 %v1070_v62  ;;  %v1082_v11 = vand.u32 2147483648, %v1070_v62  ;;  %vm1076_vm3 = vweird.f32 %v1070_v62  ;;  %v1080_v12 = vand.u32 2147483647, %v1070_v62 }
 0x55f   : > { %3828 = vpow2.f32 %v3698_v18 }
 0x560   : > { %v1083_v14 = vor.u32 1.1754944e-38, %v1082_v11  ;;  %vm1081_vm5 = vcmp.eq.f32.partialorder %v1080_v12, 8.507059e+37 }
 0x564   : > { %v3827_v63 = vpop.eup %3826 }
 0x565   : > { %v1072_v0 = vmul.f32 %v3827_v63, %v1070_v62  ;;  %vm1077_vm2 = vweird.f32 %v3827_v63  ;;  %v3829_v19 = vpop.eup %3828 }
 0x566   : > { %vm1078_vm4 = vmor %vm1076_vm3, %vm1077_vm2  ;;  %v985_v20 = vadd.f32 1.0, %v3829_v19 }
 0x567   : > { %v1073_v4 = vsub.f32 1.0, %v1072_v0 }
 0x568   : > { %3830 = vrcp.f32 %v985_v20  ;;  %v997_v26 = vand.u32 2147483648, %v985_v20  ;;  %vm991_vm9 = vweird.f32 %v985_v20  ;;  %v995_v27 = vand.u32 2147483647, %v985_v20 }
 0x569   : > { %v1074_v8 = vmul.f32 %v3827_v63, %v1073_v4 }
 0x56a   : > { %v998_v29 = vor.u32 1.1754944e-38, %v997_v26  ;;  %vm996_vm11 = vcmp.eq.f32.partialorder %v995_v27, 8.507059e+37 }
 0x56b   : > { %v1075_v9 = vadd.f32 %v3827_v63, %v1074_v8 }
 0x56d   : > { %v1079_v13 = vsel %vm1078_vm4, %v3827_v63, %v1075_v9 }
 0x56e   : > { %v1084_v16 = vsel %vm1081_vm5, %v1083_v14, %v1079_v13  ;;  %v3831_v21 = vpop.eup %3830 }
 0x56f   : > { %v987_v22 = vmul.f32 %v3831_v21, %v985_v20  ;;  %vm992_vm8 = vweird.f32 %v3831_v21  ;;  %v1087_v33 = vmul.f32 %v1084_v16, %v1039_v36 }
 0x570   : > { %vm993_vm10 = vmor %vm991_vm9, %vm992_vm8 }
 0x571   : > { %v988_v23 = vsub.f32 1.0, %v987_v22 }
 0x573   : > { %v989_v24 = vmul.f32 %v3831_v21, %v988_v23 }
 0x575   : > { %v990_v25 = vadd.f32 %v3831_v21, %v989_v24 }
 0x577   : > { %v994_v28 = vsel %vm993_vm10, %v3831_v21, %v990_v25 }
 0x578   : > { %v999_v32 = vsel %vm996_vm11, %v998_v29, %v994_v28 }
 0x579   : > { %v1002_v44 = vmul.f32 %v999_v32, %v867_v42 }
 0x590   : > { %v1090_v15 = vpop.permute.xlu2 %1089 }
 0x591   : > { %v1092_v17 = vmul.f32 %v1090_v15, %v1084_v16 }
 0x593   : > { %1094 = vrot.lane.b32.xlu1 %v1092_v17, %s4109_s22 }
 0x5b4   : > { %v654_v58 = vpop.f32.mrf.mxu0 }
 0x5b5   : > { %v655_v59 = vadd.f32 %v4276_v10, %v654_v58 }
 0x5cd   : > { %v1005_v31 = vpop.permute.xlu0 %1004 }
 0x5ce   : > { %v1007_v34 = vmul.f32 %v1005_v31, %v999_v32 }
 0x5d0   : > { %1009 = vrot.lane.b32.xlu2 %v1007_v34, %s4109_s22 }
 0x605   : > { %v1095_v37 = vpop.permute.xlu1 %1094 }
 0x606   : > { %v4364_v38 = vadd.f32 %v1095_v37, %v1087_v33 }
 0x608   : > { %3832 = vtanh.f32 %v4364_v38  ;;  %v1212_v47 = vsel %vm4376_vm12, 0.0, %v4364_v38 }
 0x60e   : > { %v3833_v41 = vpop.eup %3832 }
 0x60f   : > { %1100 = vrot.lane.b32.xlu0 %v3833_v41, %s4110_s23 }
 0x62a   : > { %v1010_v45 = vpop.permute.xlu2 %1009 }
 0x62b   : > { %v4371_v46 = vadd.f32 %v1010_v45, %v1002_v44 }
 0x62d   : > { %3834 = vtanh.f32 %v4371_v46 }
 0x633   : > { %v3835_v30 = vpop.eup %3834 }
 0x634   : > { %1015 = vrot.lane.b32.xlu1 %v3835_v30, %s4110_s23 }
 0x681   : > { %v1101_v49 = vpop.permute.xlu0 %1100 }
 0x682   : > { %v1103_v50 = vmul.f32 %v1101_v49, %v1084_v16 }
 0x684   : > { %1105 = vrot.lane.b32.xlu2 %v1103_v50, %s4111_s19  ;;  %v1210_v39 = vsel %vm4376_vm12, 0.0, %v1103_v50 }
 0x685   : > { %1215 = vrot.lane.b32.xlu1 %v1210_v39, %s4111_s19 }
 0x6a6   : > { %v1016_v35 = vpop.permute.xlu1 %1015 }
 0x6a7   : > { %v4384_v52 = vmul.f32 %v1016_v35, %v999_v32 }
 0x6a9   : > { %v1038_v53 = vsel %vm4328_vm0, 0.0, %v4384_v52 }
 0x6aa   : > { %1130 = vrot.lane.b32.xlu0 %v1038_v53, %s4111_s19  ;;  %v1040_v53 = vsel %vm4328_vm0, 0.0, %v4371_v46 }
 0x6de   : > { %v1106_v55 = vpop.permute.xlu2 %1105 }
 0x6df   : > { %3701 = vmatmul.msk.f32.vlgmr.msra.gmra.mxu2 %vm690_vm7, %v1106_v55 }
 0x6e0   : > { %1469 = vmatpush.msra.mxu2 %v4244_v3 }
 0x6e2   : > { %1470 = vmatpush.msra.mxu2 %v4255_v6 }
 0x6f7   : > { %v1216_v56 = vpop.permute.xlu1 %1215 }
 0x6f8   : > { %3704 = vmatmul.msk.f32.vlgmr.msrb.gmra.mxu1 %vm690_vm7, %v1216_v56 }
 0x6f9   : > { %1579 = vmatpush.msrb.mxu1 %v4231_v2 }
 0x6fb   : > { %1580 = vmatpush.msrb.mxu1 %v4228_v1 }
 0x71c   : > { %v1131_v57 = vpop.permute.xlu0 %1130 }
 0x71d   : > { %3702 = vmatmul.msk.f32.vlgmr.msra.gmra.mxu3 %vm690_vm7, %v1131_v57  ;;  %v1381_v57 = vstv %s1380_s20  ;;  %s2245_s20 = scalar_select %p2244_p12, 1, 0 }
 0x71e   : > { %1494 = vmatpush.msra.mxu3 %v4251_v5  ;;  %vm4424_vm8 = vcmp.eq.s32.totalorder %v1381_v57, 1  ;;  %p2239_p12 = scmp.le.s32.totalorder %s4290_s14, 8 }
 0x720   : > { %1495 = vmatpush.msra.mxu3 %v4258_v7 }
 0x762   : > { %v1126_v63 = vpop.f32.mrf.mxu2 }
 0x763   : > { %v1127_v0 = vadd.f32 %v4310_v48, %v1126_v63  ;;  %v549_v63 = vld [vmem:[%s5337_s1 + $0x20] sm:$0xff] }
 0x764   : > { %3680 = vmatmul.msk.f32.gmra.mxu0 %vm578_vm1, %v549_v63 }
 0x775   : > { %v1236_v60 = vpop.f32.mrf.mxu1 }
 0x776   : > { %v1239_v61 = vadd.f32 %v1236_v60, %v655_v59 }
 0x778   : > { %3836 = vtanh.f32 %v1239_v61  ;;  %v3705_v11 = vmul.f32 -1.442695, %v1239_v61 }
 0x77e   : > { %v3837_v62 = vpop.eup %3836 }
 0x77f   : > { %1262 = vrot.lane.b32.xlu2 %v3837_v62, %s4108_s15 }
 0x7a0   : > { %v1151_v4 = vpop.f32.mrf.mxu3 }
 0x7a1   : > { %v1154_v8 = vadd.f32 %v1151_v4, %v1127_v0 }
 0x7a3   : > { %3838 = vtanh.f32 %v1154_v8  ;;  %v3703_v26 = vmul.f32 -1.442695, %v1154_v8 }
 0x7a4   : > { %3840 = vpow2.f32 %v3705_v11 }
 0x7a9   : > { %v3839_v9 = vpop.eup %3838 }
 0x7aa   : > { %1177 = vrot.lane.b32.xlu0 %v3839_v9, %s4108_s15  ;;  %v3841_v12 = vpop.eup %3840 }
 0x7ab   : > { %v1243_v13 = vadd.f32 1.0, %v3841_v12 }
 0x7ad   : > { %3842 = vrcp.f32 %v1243_v13  ;;  %v1255_v19 = vand.u32 2147483648, %v1243_v13  ;;  %vm1249_vm13 = vweird.f32 %v1243_v13  ;;  %v1253_v20 = vand.u32 2147483647, %v1243_v13 }
 0x7ae   : > { %3844 = vpow2.f32 %v3703_v26 }
 0x7af   : > { %v1256_v22 = vor.u32 1.1754944e-38, %v1255_v19  ;;  %vm1254_vm15 = vcmp.eq.f32.partialorder %v1253_v20, 8.507059e+37 }
 0x7b3   : > { %v3843_v14 = vpop.eup %3842 }
 0x7b4   : > { %v1245_v15 = vmul.f32 %v3843_v14, %v1243_v13  ;;  %vm1250_vm6 = vweird.f32 %v3843_v14  ;;  %v3845_v27 = vpop.eup %3844 }
 0x7b5   : > { %vm1251_vm14 = vmor %vm1249_vm13, %vm1250_vm6  ;;  %v1158_v28 = vadd.f32 1.0, %v3845_v27 }
 0x7b6   : > { %v1246_v16 = vsub.f32 1.0, %v1245_v15 }
 0x7b7   : > { %3846 = vrcp.f32 %v1158_v28  ;;  %v1170_v33 = vand.u32 2147483648, %v1158_v28  ;;  %vm1164_vm3 = vweird.f32 %v1158_v28  ;;  %v1168_v37 = vand.u32 2147483647, %v1158_v28 }
 0x7b8   : > { %v1247_v17 = vmul.f32 %v3843_v14, %v1246_v16 }
 0x7b9   : > { %v1171_v42 = vor.u32 1.1754944e-38, %v1170_v33  ;;  %vm1169_vm5 = vcmp.eq.f32.partialorder %v1168_v37, 8.507059e+37 }
 0x7ba   : > { %v1248_v18 = vadd.f32 %v3843_v14, %v1247_v17 }
 0x7bc   : > { %v1252_v21 = vsel %vm1251_vm14, %v3843_v14, %v1248_v18 }
 0x7bd   : > { %v1257_v24 = vsel %vm1254_vm15, %v1256_v22, %v1252_v21  ;;  %v3847_v29 = vpop.eup %3846 }
 0x7be   : > { %v1160_v31 = vmul.f32 %v3847_v29, %v1158_v28  ;;  %vm1165_vm2 = vweird.f32 %v3847_v29  ;;  %v1260_v49 = vmul.f32 %v1257_v24, %v1212_v47 }
 0x7bf   : > { %vm1166_vm4 = vmor %vm1164_vm3, %vm1165_vm2 }
 0x7c0   : > { %v1161_v32 = vsub.f32 1.0, %v1160_v31 }
 0x7c2   : > { %v1162_v34 = vmul.f32 %v3847_v29, %v1161_v32 }
 0x7c4   : > { %v1163_v36 = vadd.f32 %v3847_v29, %v1162_v34 }
 0x7c6   : > { %v1167_v41 = vsel %vm1166_vm4, %v3847_v29, %v1163_v36 }
 0x7c7   : > { %v1172_v45 = vsel %vm1169_vm5, %v1171_v42, %v1167_v41 }
 0x7c8   : > { %v1175_v54 = vmul.f32 %v1172_v45, %v1040_v53 }
 0x7d9   : > { %v1263_v23 = vpop.permute.xlu2 %1262 }
 0x7da   : > { %v1265_v25 = vmul.f32 %v1263_v23, %v1257_v24 }
 0x7dc   : > { %1267 = vrot.lane.b32.xlu1 %v1265_v25, %s4109_s22 }
 0x7e1   : > { %v657_v9 = vpop.f32.mrf.mxu0 }
 0x7e2   : > { %v658_v11 = vadd.f32 %v4276_v10, %v657_v9  ;;  %v1554_v9 = vstv %s1553_s16  ;;  %s2418_s16 = scalar_select %p2417_p13, 1, 0 }
 0x7e3   : > { %vm4472_vm2 = vcmp.eq.s32.totalorder %v1554_v9, 1  ;;  %p2412_p13 = scmp.le.s32.totalorder %s4290_s14, 9 }
 0x81c   : > { %v1178_v44 = vpop.permute.xlu0 %1177 }
 0x81d   : > { %v1180_v30 = vmul.f32 %v1178_v44, %v1172_v45 }
 0x81f   : > { %1182 = vrot.lane.b32.xlu2 %v1180_v30, %s4109_s22 }
 0x84e   : > { %v1268_v50 = vpop.permute.xlu1 %1267 }
 0x84f   : > { %v4412_v39 = vadd.f32 %v1268_v50, %v1260_v49 }
 0x851   : > { %3848 = vtanh.f32 %v4412_v39 }
 0x857   : > { %v3849_v35 = vpop.eup %3848 }
 0x858   : > { %1273 = vrot.lane.b32.xlu0 %v3849_v35, %s4110_s23 }
 0x879   : > { %v1183_v55 = vpop.permute.xlu2 %1182 }
 0x87a   : > { %v4419_v56 = vadd.f32 %v1183_v55, %v1175_v54 }
 0x87c   : > { %3850 = vtanh.f32 %v4419_v56  ;;  %v1213_v63 = vsel %vm4376_vm12, 0.0, %v4419_v56 }
 0x882   : > { %v3851_v38 = vpop.eup %3850 }
 0x883   : > { %1188 = vrot.lane.b32.xlu1 %v3851_v38, %s4110_s23 }
 0x8ca   : > { %v1274_v58 = vpop.permute.xlu0 %1273 }
 0x8cb   : > { %v1276_v59 = vmul.f32 %v1274_v58, %v1257_v24  ;;  %v1385_v58 = vsel %vm4424_vm8, 0.0, %v4412_v39 }
 0x8cd   : > { %1278 = vrot.lane.b32.xlu2 %v1276_v59, %s4111_s19  ;;  %v1383_v40 = vsel %vm4424_vm8, 0.0, %v1276_v59 }
 0x8ce   : > { %1388 = vrot.lane.b32.xlu1 %v1383_v40, %s4111_s19 }
 0x8f5   : > { %v1189_v46 = vpop.permute.xlu1 %1188 }
 0x8f6   : > { %v4432_v61 = vmul.f32 %v1189_v46, %v1172_v45 }
 0x8f8   : > { %v1211_v62 = vsel %vm4376_vm12, 0.0, %v4432_v61 }
 0x8f9   : > { %1303 = vrot.lane.b32.xlu0 %v1211_v62, %s4111_s19 }
 0x927   : > { %v1279_v0 = vpop.permute.xlu2 %1278 }
 0x928   : > { %3706 = vmatmul.msk.f32.vlgmr.msrb.gmra.mxu2 %vm690_vm7, %v1279_v0 }
 0x929   : > { %1642 = vmatpush.msrb.mxu2 %v4244_v3 }
 0x92b   : > { %1643 = vmatpush.msrb.mxu2 %v4255_v6 }
 0x940   : > { %v1389_v4 = vpop.permute.xlu1 %1388 }
 0x941   : > { %3709 = vmatmul.msk.f32.vlgmr.msra.gmra.mxu1 %vm690_vm7, %v1389_v4 }
 0x942   : > { %1752 = vmatpush.msra.mxu1 %v4231_v2 }
 0x944   : > { %1753 = vmatpush.msra.mxu1 %v4228_v1 }
 0x96b   : > { %v1304_v8 = vpop.permute.xlu0 %1303 }
 0x96c   : > { %3707 = vmatmul.msk.f32.vlgmr.msrb.gmra.mxu3 %vm690_vm7, %v1304_v8 }
 0x96d   : > { %1667 = vmatpush.msrb.mxu3 %v4251_v5 }
 0x96f   : > { %1668 = vmatpush.msrb.mxu3 %v4258_v7 }
 0x9ab   : > { %v1299_v15 = vpop.f32.mrf.mxu2 }
 0x9ac   : > { %v1300_v16 = vadd.f32 %v4310_v48, %v1299_v15 }
 0x9be   : > { %v1409_v12 = vpop.f32.mrf.mxu1 }
 0x9bf   : > { %v1412_v13 = vadd.f32 %v1409_v12, %v658_v11 }
 0x9c1   : > { %3852 = vtanh.f32 %v1412_v13  ;;  %v3710_v19 = vmul.f32 -1.442695, %v1412_v13 }
 0x9c7   : > { %v3853_v14 = vpop.eup %3852 }
 0x9c8   : > { %1435 = vrot.lane.b32.xlu2 %v3853_v14, %s4108_s15 }
 0x9ef   : > { %v1324_v17 = vpop.f32.mrf.mxu3 }
 0x9f0   : > { %v1327_v18 = vadd.f32 %v1324_v17, %v1300_v16  ;;  %v550_v16 = vld [vmem:[%s5337_s1 + $0x28] sm:$0xff] }
 0x9f1   : > { %3681 = vmatmul.msk.f32.gmra.mxu0 %vm578_vm1, %v550_v16 }
 0x9f2   : > { %3854 = vtanh.f32 %v1327_v18  ;;  %v3708_v37 = vmul.f32 -1.442695, %v1327_v18 }
 0x9f3   : > { %3856 = vpow2.f32 %v3710_v19 }
 0x9f8   : > { %v3855_v20 = vpop.eup %3854 }
 0x9f9   : > { %1350 = vrot.lane.b32.xlu0 %v3855_v20, %s4108_s15  ;;  %v3857_v21 = vpop.eup %3856 }
 0x9fa   : > { %v1416_v22 = vadd.f32 1.0, %v3857_v21 }
 0x9fc   : > { %3858 = vrcp.f32 %v1416_v22  ;;  %v1428_v28 = vand.u32 2147483648, %v1416_v22  ;;  %vm1422_vm9 = vweird.f32 %v1416_v22  ;;  %v1426_v29 = vand.u32 2147483647, %v1416_v22 }
 0x9fd   : > { %3860 = vpow2.f32 %v3708_v37 }
 0x9fe   : > { %v1429_v32 = vor.u32 1.1754944e-38, %v1428_v28  ;;  %vm1427_vm11 = vcmp.eq.f32.partialorder %v1426_v29, 8.507059e+37 }
 0xa02   : > { %v3859_v23 = vpop.eup %3858 }
 0xa03   : > { %v1418_v24 = vmul.f32 %v3859_v23, %v1416_v22  ;;  %vm1423_vm0 = vweird.f32 %v3859_v23  ;;  %v3861_v41 = vpop.eup %3860 }
 0xa04   : > { %vm1424_vm10 = vmor %vm1422_vm9, %vm1423_vm0  ;;  %v1331_v42 = vadd.f32 1.0, %v3861_v41 }
 0xa05   : > { %v1419_v25 = vsub.f32 1.0, %v1418_v24 }
 0xa06   : > { %3862 = vrcp.f32 %v1331_v42  ;;  %v1343_v50 = vand.u32 2147483648, %v1331_v42  ;;  %vm1337_vm13 = vweird.f32 %v1331_v42  ;;  %v1341_v35 = vand.u32 2147483647, %v1331_v42 }
 0xa07   : > { %v1420_v26 = vmul.f32 %v3859_v23, %v1419_v25 }
 0xa08   : > { %v1344_v54 = vor.u32 1.1754944e-38, %v1343_v50  ;;  %vm1342_vm15 = vcmp.eq.f32.partialorder %v1341_v35, 8.507059e+37 }
 0xa09   : > { %v1421_v27 = vadd.f32 %v3859_v23, %v1420_v26 }
 0xa0b   : > { %v1425_v31 = vsel %vm1424_vm10, %v3859_v23, %v1421_v27 }
 0xa0c   : > { %v1430_v36 = vsel %vm1427_vm11, %v1429_v32, %v1425_v31  ;;  %v3863_v44 = vpop.eup %3862 }
 0xa0d   : > { %v1333_v45 = vmul.f32 %v3863_v44, %v1331_v42  ;;  %vm1338_vm6 = vweird.f32 %v3863_v44  ;;  %v1433_v59 = vmul.f32 %v1430_v36, %v1385_v58 }
 0xa0e   : > { %vm1339_vm14 = vmor %vm1337_vm13, %vm1338_vm6 }
 0xa0f   : > { %v1334_v30 = vsub.f32 1.0, %v1333_v45 }
 0xa11   : > { %v1335_v47 = vmul.f32 %v3863_v44, %v1334_v30 }
 0xa13   : > { %v1336_v49 = vadd.f32 %v3863_v44, %v1335_v47 }
 0xa15   : > { %v1340_v53 = vsel %vm1339_vm14, %v3863_v44, %v1336_v49 }
 0xa16   : > { %v1345_v38 = vsel %vm1342_vm15, %v1344_v54, %v1340_v53 }
 0xa17   : > { %v1348_v0 = vmul.f32 %v1345_v38, %v1213_v63 }
 0xa22   : > { %v1436_v34 = vpop.permute.xlu2 %1435 }
 0xa23   : > { %v1438_v33 = vmul.f32 %v1436_v34, %v1430_v36 }
 0xa25   : > { %1440 = vrot.lane.b32.xlu1 %v1438_v33, %s4109_s22 }
 0xa6b   : > { %v1351_v55 = vpop.permute.xlu0 %1350 }
 0xa6c   : > { %v1353_v57 = vmul.f32 %v1351_v55, %v1345_v38 }
 0xa6e   : > { %1355 = vrot.lane.b32.xlu2 %v1353_v57, %s4109_s22  ;;  %v660_v20 = vpop.f32.mrf.mxu0 }
 0xa6f   : > { %v661_v21 = vadd.f32 %v4276_v10, %v660_v20  ;;  %v551_v20 = vld [vmem:[%s5337_s1 + $0x30] sm:$0xff] }
 0xa70   : > { %3682 = vmatmul.msk.f32.gmra.mxu0 %vm578_vm1, %v551_v20 }
 0xa97   : > { %v1441_v40 = vpop.permute.xlu1 %1440 }
 0xa98   : > { %v4460_v46 = vadd.f32 %v1441_v40, %v1433_v59 }
 0xa9a   : > { %3864 = vtanh.f32 %v4460_v46 }
 0xaa0   : > { %v3865_v62 = vpop.eup %3864 }
 0xaa1   : > { %1446 = vrot.lane.b32.xlu0 %v3865_v62, %s4110_s23  ;;  %v1558_v62 = vsel %vm4472_vm2, 0.0, %v4460_v46 }
 0xac8   : > { %v1356_v4 = vpop.permute.xlu2 %1355 }
 0xac9   : > { %v4467_v8 = vadd.f32 %v1356_v4, %v1348_v0 }
 0xacb   : > { %3866 = vtanh.f32 %v4467_v8  ;;  %v1386_v9 = vsel %vm4424_vm8, 0.0, %v4467_v8 }
 0xad1   : > { %v3867_v39 = vpop.eup %3866 }
 0xad2   : > { %1361 = vrot.lane.b32.xlu1 %v3867_v39, %s4110_s23 }
 0xb13   : > { %v1447_v11 = vpop.permute.xlu0 %1446 }
 0xb14   : > { %v1449_v12 = vmul.f32 %v1447_v11, %v1430_v36 }
 0xb16   : > { %1451 = vrot.lane.b32.xlu2 %v1449_v12, %s4111_s19  ;;  %v1556_v51 = vsel %vm4472_vm2, 0.0, %v1449_v12 }
 0xb17   : > { %1561 = vrot.lane.b32.xlu1 %v1556_v51, %s4111_s19 }
 0xb44   : > { %v1362_v56 = vpop.permute.xlu1 %1361 }
 0xb45   : > { %v4480_v14 = vmul.f32 %v1362_v56, %v1345_v38  ;;  %v1727_v56 = vstv %s1726_s28  ;;  %s2591_s28 = scalar_select %p2590_p0, 1, 0 }
 0xb46   : > { %vm4520_vm6 = vcmp.eq.s32.totalorder %v1727_v56, 1  ;;  %p2585_p0 = scmp.le.s32.totalorder %s4290_s14, 10 }
 0xb47   : > { %v1384_v15 = vsel %vm4424_vm8, 0.0, %v4480_v14 }
 0xb48   : > { %1476 = vrot.lane.b32.xlu0 %v1384_v15, %s4111_s19 }
 0xb70   : > { %v1452_v17 = vpop.permute.xlu2 %1451 }
 0xb71   : > { %3711 = vmatmul.msk.f32.vlgmr.msra.gmra.mxu2 %vm690_vm7, %v1452_v17 }
 0xb72   : > { %1815 = vmatpush.msra.mxu2 %v4244_v3 }
 0xb74   : > { %1816 = vmatpush.msra.mxu2 %v4255_v6 }
 0xb89   : > { %v1562_v18 = vpop.permute.xlu1 %1561 }
 0xb8a   : > { %3714 = vmatmul.msk.f32.vlgmr.msrb.gmra.mxu1 %vm690_vm7, %v1562_v18 }
 0xb8b   : > { %1925 = vmatpush.msrb.mxu1 %v4231_v2 }
 0xb8d   : > { %1926 = vmatpush.msrb.mxu1 %v4228_v1 }
 0xbba   : > { %v1477_v19 = vpop.permute.xlu0 %1476 }
 0xbbb   : > { %3712 = vmatmul.msk.f32.vlgmr.msra.gmra.mxu3 %vm690_vm7, %v1477_v19 }
 0xbbc   : > { %1840 = vmatpush.msra.mxu3 %v4251_v5 }
 0xbbe   : > { %1841 = vmatpush.msra.mxu3 %v4258_v7 }
 0xbf4   : > { %v1472_v23 = vpop.f32.mrf.mxu2 }
 0xbf5   : > { %v1473_v2 = vadd.f32 %v4310_v48, %v1472_v23  ;;  %v4549_v23 = vld [vmem:[%s4213_s18 + $0x8] sm:$0xff] }
 0xc07   : > { %v1582_v3 = vpop.f32.mrf.mxu1 }
 0xc08   : > { %v1585_v22 = vadd.f32 %v1582_v3, %v661_v21  ;;  %v4540_v3 = vld [vmem:[%s4219_s21 + $0x8] sm:$0xff] }
 0xc0a   : > { %3868 = vtanh.f32 %v1585_v22  ;;  %v3715_v1 = vmul.f32 -1.442695, %v1585_v22  ;;  %v4544_v22 = vld [vmem:[%s4219_s21] sm:$0xff] }
 0xc10   : > { %v3869_v6 = vpop.eup %3868 }
 0xc11   : > { %1608 = vrot.lane.b32.xlu2 %v3869_v6, %s4108_s15 }
 0xc3e   : > { %v1497_v24 = vpop.f32.mrf.mxu3 }
 0xc3f   : > { %v1500_v25 = vadd.f32 %v1497_v24, %v1473_v2  ;;  %v4553_v2 = vld [vmem:[%s4213_s18] sm:$0xff]  ;;  %v4558_v24 = vld [vmem:[%s4225_s24 + $0x8] sm:$0xff] }
 0xc41   : > { %3870 = vtanh.f32 %v1500_v25  ;;  %v3713_v44 = vmul.f32 -1.442695, %v1500_v25  ;;  %v4562_v25 = vld [vmem:[%s4225_s24] sm:$0xff] }
 0xc42   : > { %3872 = vpow2.f32 %v3715_v1 }
 0xc47   : > { %v3871_v5 = vpop.eup %3870 }
 0xc48   : > { %v3873_v26 = vpop.eup %3872  ;;  %1523 = vrot.lane.b32.xlu0 %v3871_v5, %s4108_s15  ;;  %v663_v5 = vpop.f32.mrf.mxu0 }
 0xc49   : > { %v1589_v7 = vadd.f32 1.0, %v3873_v26  ;;  %v4566_v26 = vld [vmem:[%s4203_s30] ss:$0 sm:$0xff] }
 0xc4b   : > { %3874 = vrcp.f32 %v1589_v7  ;;  %v1601_v32 = vand.u32 2147483648, %v1589_v7  ;;  %vm1595_vm3 = vweird.f32 %v1589_v7  ;;  %v1599_v34 = vand.u32 2147483647, %v1589_v7 }
 0xc4c   : > { %3876 = vpow2.f32 %v3713_v44 }
 0xc4d   : > { %v1602_v33 = vor.u32 1.1754944e-38, %v1601_v32  ;;  %vm1600_vm5 = vcmp.eq.f32.partialorder %v1599_v34, 8.507059e+37 }
 0xc51   : > { %v3875_v10 = vpop.eup %3874 }
 0xc52   : > { %v1591_v27 = vmul.f32 %v3875_v10, %v1589_v7  ;;  %vm1596_vm12 = vweird.f32 %v3875_v10  ;;  %v3877_v45 = vpop.eup %3876  ;;  %v664_v7 = vadd.f32 %v4566_v26, %v663_v5 }
 0xc53   : > { %vm1597_vm4 = vmor %vm1595_vm3, %vm1596_vm12  ;;  %v1504_v30 = vadd.f32 1.0, %v3877_v45 }
 0xc54   : > { %v1592_v28 = vsub.f32 1.0, %v1591_v27 }
 0xc55   : > { %3878 = vrcp.f32 %v1504_v30  ;;  %v1516_v54 = vand.u32 2147483648, %v1504_v30  ;;  %vm1510_vm9 = vweird.f32 %v1504_v30  ;;  %v1514_v55 = vand.u32 2147483647, %v1504_v30 }
 0xc56   : > { %v1593_v29 = vmul.f32 %v3875_v10, %v1592_v28 }
 0xc57   : > { %v1517_v57 = vor.u32 1.1754944e-38, %v1516_v54  ;;  %vm1515_vm11 = vcmp.eq.f32.partialorder %v1514_v55, 8.507059e+37 }
 0xc58   : > { %v1594_v31 = vadd.f32 %v3875_v10, %v1593_v29 }
 0xc5a   : > { %v1598_v36 = vsel %vm1597_vm4, %v3875_v10, %v1594_v31 }
 0xc5b   : > { %v1603_v41 = vsel %vm1600_vm5, %v1602_v33, %v1598_v36  ;;  %v3879_v47 = vpop.eup %3878 }
 0xc5c   : > { %v1506_v49 = vmul.f32 %v3879_v47, %v1504_v30  ;;  %vm1511_vm0 = vweird.f32 %v3879_v47  ;;  %v1606_v63 = vmul.f32 %v1603_v41, %v1558_v62 }
 0xc5d   : > { %vm1512_vm10 = vmor %vm1510_vm9, %vm1511_vm0 }
 0xc5e   : > { %v1507_v50 = vsub.f32 1.0, %v1506_v49 }
 0xc60   : > { %v1508_v35 = vmul.f32 %v3879_v47, %v1507_v50 }
 0xc62   : > { %v1509_v53 = vadd.f32 %v3879_v47, %v1508_v35 }
 0xc64   : > { %v1513_v38 = vsel %vm1512_vm10, %v3879_v47, %v1509_v53 }
 0xc65   : > { %v1518_v59 = vsel %vm1515_vm11, %v1517_v57, %v1513_v38 }
 0xc66   : > { %v1521_v11 = vmul.f32 %v1518_v59, %v1386_v9 }
 0xc6b   : > { %v1609_v37 = vpop.permute.xlu2 %1608 }
 0xc6c   : > { %v1611_v42 = vmul.f32 %v1609_v37, %v1603_v41 }
 0xc6e   : > { %1613 = vrot.lane.b32.xlu1 %v1611_v42, %s4109_s22 }
 0xcba   : > { %v1524_v58 = vpop.permute.xlu0 %1523 }
 0xcbb   : > { %v1526_v40 = vmul.f32 %v1524_v58, %v1518_v59 }
 0xcbd   : > { %1528 = vrot.lane.b32.xlu2 %v1526_v40, %s4109_s22 }
 0xce0   : > { %v1614_v0 = vpop.permute.xlu1 %1613 }
 0xce1   : > { %v4508_v4 = vadd.f32 %v1614_v0, %v1606_v63 }
 0xce3   : > { %3880 = vtanh.f32 %v4508_v4 }
 0xce9   : > { %v3881_v39 = vpop.eup %3880 }
 0xcea   : > { %1619 = vrot.lane.b32.xlu0 %v3881_v39, %s4110_s23 }
 0xd17   : > { %v1529_v12 = vpop.permute.xlu2 %1528 }
 0xd18   : > { %v4515_v51 = vadd.f32 %v1529_v12, %v1521_v11 }
 0xd1a   : > { %3882 = vtanh.f32 %v4515_v51 }
 0xd20   : > { %v3883_v46 = vpop.eup %3882 }
 0xd21   : > { %1534 = vrot.lane.b32.xlu1 %v3883_v46, %s4110_s23 }
 0xd5c   : > { %v1620_v15 = vpop.permute.xlu0 %1619 }
 0xd5d   : > { %v1622_v16 = vmul.f32 %v1620_v15, %v1603_v41 }
 0xd5f   : > { %1624 = vrot.lane.b32.xlu2 %v1622_v16, %s4111_s19  ;;  %v1729_v60 = vsel %vm4520_vm6, 0.0, %v1622_v16  ;;  %v1731_v16 = vsel %vm4520_vm6, 0.0, %v4508_v4 }
 0xd60   : > { %1734 = vrot.lane.b32.xlu1 %v1729_v60, %s4111_s19 }
 0xd93   : > { %v1535_v8 = vpop.permute.xlu1 %1534 }
 0xd94   : > { %v4528_v18 = vmul.f32 %v1535_v8, %v1518_v59 }
 0xd96   : > { %v1557_v19 = vsel %vm4472_vm2, 0.0, %v4528_v18 }
 0xd97   : > { %1649 = vrot.lane.b32.xlu0 %v1557_v19, %s4111_s19 }
 0xdb9   : > { %v1625_v21 = vpop.permute.xlu2 %1624 }
 0xdba   : > { %3716 = vmatmul.msk.f32.vlgmr.msrb.gmra.mxu2 %vm690_vm7, %v1625_v21  ;;  %v1559_v21 = vsel %vm4472_vm2, 0.0, %v4515_v51 }
 0xdbb   : > { %1988 = vmatpush.msrb.mxu2 %v4540_v3 }
 0xdbd   : > { %1989 = vmatpush.msrb.mxu2 %v4544_v22 }
 0xdd2   : > { %v1735_v6 = vpop.permute.xlu1 %1734 }
 0xdd3   : > { %3719 = vmatmul.msk.f32.vlgmr.msra.gmra.mxu1 %vm690_vm7, %v1735_v6 }
 0xdd4   : > { %2098 = vmatpush.msra.mxu1 %v4549_v23 }
 0xdd6   : > { %2099 = vmatpush.msra.mxu1 %v4553_v2 }
 0xe09   : > { %v1650_v1 = vpop.permute.xlu0 %1649 }
 0xe0a   : > { %3717 = vmatmul.msk.f32.vlgmr.msrb.gmra.mxu3 %vm690_vm7, %v1650_v1 }
 0xe0b   : > { %2013 = vmatpush.msrb.mxu3 %v4558_v24 }
 0xe0d   : > { %2014 = vmatpush.msrb.mxu3 %v4562_v25 }
 0xe3d   : > { %v1645_v31 = vpop.f32.mrf.mxu2 }
 0xe3e   : > { %v1646_v32 = vadd.f32 %v4310_v48, %v1645_v31  ;;  %v552_v31 = vld [vmem:[%s5337_s1 + $0x38] sm:$0xff] }
 0xe3f   : > { %3683 = vmatmul.msk.f32.gmra.mxu0 %vm578_vm1, %v552_v31 }
 0xe50   : > { %v1755_v10 = vpop.f32.mrf.mxu1 }
 0xe51   : > { %v1758_v27 = vadd.f32 %v1755_v10, %v664_v7  ;;  %v1900_v7 = vstv %s1899_s26  ;;  %s2764_s26 = scalar_select %p2763_p1, 1, 0 }
 0xe52   : > { %vm4589_vm0 = vcmp.eq.s32.totalorder %v1900_v7, 1  ;;  %p2758_p1 = scmp.le.s32.totalorder %s4290_s14, 11 }
 0xe53   : > { %3884 = vtanh.f32 %v1758_v27  ;;  %v3720_v29 = vmul.f32 -1.442695, %v1758_v27 }
 0xe55   : > { %3886 = vpow2.f32 %v3720_v29 }
 0xe59   : > { %v3885_v28 = vpop.eup %3884 }
 0xe5a   : > { %1781 = vrot.lane.b32.xlu2 %v3885_v28, %s4108_s15 }
 0xe5b   : > { %v3887_v33 = vpop.eup %3886 }
 0xe5c   : > { %v1762_v37 = vadd.f32 1.0, %v3887_v33 }
 0xe5e   : > { %v1774_v49 = vand.u32 2147483648, %v1762_v37  ;;  %vm1768_vm13 = vweird.f32 %v1762_v37  ;;  %v1772_v50 = vand.u32 2147483647, %v1762_v37 }
 0xe60   : > { %v1775_v35 = vor.u32 1.1754944e-38, %v1774_v49  ;;  %vm1773_vm15 = vcmp.eq.f32.partialorder %v1772_v50, 8.507059e+37  ;;  %v4619_v50 = vld [vmem:[%s4237_s13] ss:$0 sm:$0xff] }
 0xe8d   : > { %v1670_v34 = vpop.f32.mrf.mxu3 }
 0xe8e   : > { %v1673_v36 = vadd.f32 %v1670_v34, %v1646_v32 }
 0xe90   : > { %3888 = vtanh.f32 %v1673_v36  ;;  %v3718_v38 = vmul.f32 -1.442695, %v1673_v36 }
 0xe91   : > { %3890 = vrcp.f32 %v1762_v37 }
 0xe92   : > { %3892 = vpow2.f32 %v3718_v38 }
 0xe96   : > { %v3889_v41 = vpop.eup %3888 }
 0xe97   : > { %1696 = vrot.lane.b32.xlu0 %v3889_v41, %s4108_s15  ;;  %v3891_v42 = vpop.eup %3890 }
 0xe98   : > { %v1764_v44 = vmul.f32 %v3891_v42, %v1762_v37  ;;  %vm1769_vm8 = vweird.f32 %v3891_v42  ;;  %v3893_v57 = vpop.eup %3892 }
 0xe99   : > { %vm1770_vm14 = vmor %vm1768_vm13, %vm1769_vm8  ;;  %v1677_v58 = vadd.f32 1.0, %v3893_v57 }
 0xe9a   : > { %v1765_v45 = vsub.f32 1.0, %v1764_v44 }
 0xe9b   : > { %3894 = vrcp.f32 %v1677_v58  ;;  %v1689_v39 = vand.u32 2147483648, %v1677_v58  ;;  %vm1683_vm3 = vweird.f32 %v1677_v58  ;;  %v1687_v9 = vand.u32 2147483647, %v1677_v58 }
 0xe9c   : > { %v1766_v30 = vmul.f32 %v3891_v42, %v1765_v45 }
 0xe9d   : > { %v1690_v12 = vor.u32 1.1754944e-38, %v1689_v39  ;;  %vm1688_vm5 = vcmp.eq.f32.partialorder %v1687_v9, 8.507059e+37 }
 0xe9e   : > { %v1767_v47 = vadd.f32 %v3891_v42, %v1766_v30 }
 0xea0   : > { %v1771_v48 = vsel %vm1770_vm14, %v3891_v42, %v1767_v47 }
 0xea1   : > { %v1776_v54 = vsel %vm1773_vm15, %v1775_v35, %v1771_v48  ;;  %v3895_v59 = vpop.eup %3894 }
 0xea2   : > { %v1679_v40 = vmul.f32 %v3895_v59, %v1677_v58  ;;  %vm1684_vm12 = vweird.f32 %v3895_v59  ;;  %v1779_v60 = vmul.f32 %v1776_v54, %v1731_v16 }
 0xea3   : > { %vm1685_vm4 = vmor %vm1683_vm3, %vm1684_vm12 }
 0xea4   : > { %v1680_v62 = vsub.f32 1.0, %v1679_v40 }
 0xea6   : > { %v1681_v63 = vmul.f32 %v3895_v59, %v1680_v62 }
 0xea8   : > { %v1682_v0 = vadd.f32 %v3895_v59, %v1681_v63 }
 0xeaa   : > { %v1686_v11 = vsel %vm1685_vm4, %v3895_v59, %v1682_v0 }
 0xeab   : > { %v1691_v56 = vsel %vm1688_vm5, %v1690_v12, %v1686_v11 }
 0xeac   : > { %v1694_v6 = vmul.f32 %v1691_v56, %v1559_v21 }
 0xeb4   : > { %v1782_v53 = vpop.permute.xlu2 %1781 }
 0xeb5   : > { %v1784_v55 = vmul.f32 %v1782_v53, %v1776_v54 }
 0xeb7   : > { %1786 = vrot.lane.b32.xlu1 %v1784_v55, %s4109_s22 }
 0xebc   : > { %v666_v37 = vpop.f32.mrf.mxu0 }
 0xebd   : > { %v667_v41 = vadd.f32 %v4566_v26, %v666_v37 }
 0xf09   : > { %v1697_v46 = vpop.permute.xlu0 %1696 }
 0xf0a   : > { %v1699_v15 = vmul.f32 %v1697_v46, %v1691_v56 }
 0xf0c   : > { %1701 = vrot.lane.b32.xlu2 %v1699_v15, %s4109_s22 }
 0xf29   : > { %v1787_v8 = vpop.permute.xlu1 %1786 }
 0xf2a   : > { %v4577_v19 = vadd.f32 %v1787_v8, %v1779_v60 }
 0xf2c   : > { %3896 = vtanh.f32 %v4577_v19 }
 0xf32   : > { %v3897_v20 = vpop.eup %3896 }
 0xf33   : > { %1792 = vrot.lane.b32.xlu0 %v3897_v20, %s4110_s23 }
 0xf66   : > { %v1702_v1 = vpop.permute.xlu2 %1701 }
 0xf67   : > { %v4584_v5 = vadd.f32 %v1702_v1, %v1694_v6 }
 0xf69   : > { %3898 = vtanh.f32 %v4584_v5 }
 0xf6f   : > { %v3899_v4 = vpop.eup %3898 }
 0xf70   : > { %1707 = vrot.lane.b32.xlu1 %v3899_v4, %s4110_s23 }
 0xfa5   : > { %v1793_v10 = vpop.permute.xlu0 %1792 }
 0xfa6   : > { %v1795_v27 = vmul.f32 %v1793_v10, %v1776_v54 }
 0xfa8   : > { %1797 = vrot.lane.b32.xlu2 %v1795_v27, %s4111_s19  ;;  %v1902_v13 = vsel %vm4589_vm0, 0.0, %v1795_v27 }
 0xfa9   : > { %1907 = vrot.lane.b32.xlu1 %v1902_v13, %s4111_s19 }
 0xfe2   : > { %v1708_v51 = vpop.permute.xlu1 %1707 }
 0xfe3   : > { %v4597_v29 = vmul.f32 %v1708_v51, %v1691_v56  ;;  %v1904_v51 = vsel %vm4589_vm0, 0.0, %v4577_v19 }
 0xfe5   : > { %v1730_v32 = vsel %vm4520_vm6, 0.0, %v4597_v29 }
 0xfe6   : > { %1822 = vrot.lane.b32.xlu0 %v1730_v32, %s4111_s19 }
0x1002   : > { %v1798_v34 = vpop.permute.xlu2 %1797 }
0x1003   : > { %3721 = vmatmul.msk.f32.vlgmr.msra.gmra.mxu2 %vm690_vm7, %v1798_v34 }
0x1004   : > { %2161 = vmatpush.msra.mxu2 %v4540_v3 }
0x1006   : > { %2162 = vmatpush.msra.mxu2 %v4544_v22 }
0x101b   : > { %v1908_v36 = vpop.permute.xlu1 %1907 }
0x101c   : > { %3724 = vmatmul.msk.f32.vlgmr.msrb.gmra.mxu1 %vm690_vm7, %v1908_v36 }
0x101d   : > { %2271 = vmatpush.msrb.mxu1 %v4549_v23 }
0x101f   : > { %2272 = vmatpush.msrb.mxu1 %v4553_v2 }
0x1058   : > { %v1823_v33 = vpop.permute.xlu0 %1822 }
0x1059   : > { %3722 = vmatmul.msk.f32.vlgmr.msra.gmra.mxu3 %vm690_vm7, %v1823_v33  ;;  %v1732_v33 = vsel %vm4520_vm6, 0.0, %v4584_v5  ;;  %v553_v5 = vld [vmem:[%s5337_s1 + $0x40] sm:$0xff] }
0x105a   : > { %2186 = vmatpush.msra.mxu3 %v4558_v24  ;;  %3684 = vmatmul.msk.f32.gmra.mxu0 %vm578_vm1, %v553_v5 }
0x105c   : > { %2187 = vmatpush.msra.mxu3 %v4562_v25 }
0x1086   : > { %v1818_v47 = vpop.f32.mrf.mxu2 }
0x1087   : > { %v1819_v48 = vadd.f32 %v4619_v50, %v1818_v47 }
0x1099   : > { %v1928_v42 = vpop.f32.mrf.mxu1 }
0x109a   : > { %v1931_v44 = vadd.f32 %v1928_v42, %v667_v41 }
0x109c   : > { %3900 = vtanh.f32 %v1931_v44  ;;  %v3725_v30 = vmul.f32 -1.442695, %v1931_v44  ;;  %v2073_v44 = vstv %s2072_s29  ;;  %s2067_s29 = scalar_select %p2066_p11, 1, 0 }
0x109d   : > { %vm4640_vm12 = vcmp.eq.s32.totalorder %v2073_v44, 1 }
0x109e   : > { %3902 = vpow2.f32 %v3725_v30 }
0x10a2   : > { %v3901_v45 = vpop.eup %3900 }
0x10a3   : > { %1954 = vrot.lane.b32.xlu2 %v3901_v45, %s4108_s15 }
0x10a4   : > { %v3903_v49 = vpop.eup %3902 }
0x10a5   : > { %v1935_v53 = vadd.f32 1.0, %v3903_v49 }
0x10a7   : > { %v1947_v62 = vand.u32 2147483648, %v1935_v53  ;;  %vm1941_vm9 = vweird.f32 %v1935_v53  ;;  %v1945_v63 = vand.u32 2147483647, %v1935_v53 }
0x10a9   : > { %v1948_v39 = vor.u32 1.1754944e-38, %v1947_v62  ;;  %vm1946_vm11 = vcmp.eq.f32.partialorder %v1945_v63, 8.507059e+37 }
0x10dc   : > { %v1843_v35 = vpop.f32.mrf.mxu3 }
0x10dd   : > { %v1846_v54 = vadd.f32 %v1843_v35, %v1819_v48 }
0x10df   : > { %3904 = vtanh.f32 %v1846_v54  ;;  %v3723_v46 = vmul.f32 -1.442695, %v1846_v54 }
0x10e0   : > { %3906 = vrcp.f32 %v1935_v53 }
0x10e1   : > { %3908 = vpow2.f32 %v3723_v46 }
0x10e5   : > { %v3905_v55 = vpop.eup %3904 }
0x10e6   : > { %1869 = vrot.lane.b32.xlu0 %v3905_v55, %s4108_s15  ;;  %v3907_v38 = vpop.eup %3906 }
0x10e7   : > { %v1937_v57 = vmul.f32 %v3907_v38, %v1935_v53  ;;  %vm1942_vm2 = vweird.f32 %v3907_v38  ;;  %v3909_v56 = vpop.eup %3908 }
0x10e8   : > { %vm1943_vm10 = vmor %vm1941_vm9, %vm1942_vm2  ;;  %v1850_v15 = vadd.f32 1.0, %v3909_v56 }
0x10e9   : > { %v1938_v58 = vsub.f32 1.0, %v1937_v57 }
0x10ea   : > { %3910 = vrcp.f32 %v1850_v15  ;;  %v1862_v6 = vand.u32 2147483648, %v1850_v15  ;;  %vm1856_vm13 = vweird.f32 %v1850_v15  ;;  %v1860_v1 = vand.u32 2147483647, %v1850_v15 }
0x10eb   : > { %v1939_v59 = vmul.f32 %v3907_v38, %v1938_v58 }
0x10ec   : > { %v1863_v7 = vor.u32 1.1754944e-38, %v1862_v6  ;;  %vm1861_vm15 = vcmp.eq.f32.partialorder %v1860_v1, 8.507059e+37 }
0x10ed   : > { %v1940_v40 = vadd.f32 %v3907_v38, %v1939_v59 }
0x10ef   : > { %v1944_v0 = vsel %vm1943_vm10, %v3907_v38, %v1940_v40  ;;  %v669_v38 = vpop.f32.mrf.mxu0 }
0x10f0   : > { %v1949_v11 = vsel %vm1946_vm11, %v1948_v39, %v1944_v0  ;;  %v3911_v16 = vpop.eup %3910  ;;  %v670_v57 = vadd.f32 %v4566_v26, %v669_v38 }
0x10f1   : > { %v1852_v60 = vmul.f32 %v3911_v16, %v1850_v15  ;;  %vm1857_vm8 = vweird.f32 %v3911_v16  ;;  %v1952_v31 = vmul.f32 %v1949_v11, %v1904_v51 }
0x10f2   : > { %vm1858_vm14 = vmor %vm1856_vm13, %vm1857_vm8 }
0x10f3   : > { %v1853_v8 = vsub.f32 1.0, %v1852_v60 }
0x10f5   : > { %v1854_v20 = vmul.f32 %v3911_v16, %v1853_v8 }
0x10f7   : > { %v1855_v21 = vadd.f32 %v3911_v16, %v1854_v20 }
0x10f9   : > { %v1859_v4 = vsel %vm1858_vm14, %v3911_v16, %v1855_v21 }
0x10fa   : > { %v1864_v27 = vsel %vm1861_vm15, %v1863_v7, %v1859_v4 }
0x10fb   : > { %v1867_v37 = vmul.f32 %v1864_v27, %v1732_v33 }
0x10fd   : > { %v1955_v9 = vpop.permute.xlu2 %1954 }
0x10fe   : > { %v1957_v12 = vmul.f32 %v1955_v9, %v1949_v11 }
0x1100   : > { %1959 = vrot.lane.b32.xlu1 %v1957_v12, %s4109_s22 }
0x1158   : > { %v1870_v10 = vpop.permute.xlu0 %1869 }
0x1159   : > { %v1872_v13 = vmul.f32 %v1870_v10, %v1864_v27 }
0x115b   : > { %1874 = vrot.lane.b32.xlu2 %v1872_v13, %s4109_s22 }
0x1172   : > { %v1960_v32 = vpop.permute.xlu1 %1959 }
0x1173   : > { %v4628_v34 = vadd.f32 %v1960_v32, %v1952_v31 }
0x1175   : > { %3912 = vtanh.f32 %v4628_v34 }
0x117b   : > { %v3913_v36 = vpop.eup %3912 }
0x117c   : > { %1965 = vrot.lane.b32.xlu0 %v3913_v36, %s4110_s23 }
0x11b5   : > { %v1875_v41 = vpop.permute.xlu2 %1874 }
0x11b6   : > { %v4635_v42 = vadd.f32 %v1875_v41, %v1867_v37 }
0x11b8   : > { %3914 = vtanh.f32 %v4635_v42  ;;  %v1905_v38 = vsel %vm4589_vm0, 0.0, %v4635_v42  ;;  %v554_v42 = vld [vmem:[%s5337_s1 + $0x48] sm:$0xff] }
0x11b9   : > { %3685 = vmatmul.msk.f32.gmra.mxu0 %vm578_vm1, %v554_v42 }
0x11be   : > { %v3915_v19 = vpop.eup %3914 }
0x11bf   : > { %1880 = vrot.lane.b32.xlu1 %v3915_v19, %s4110_s23 }
0x11ee   : > { %v1966_v45 = vpop.permute.xlu0 %1965 }
0x11ef   : > { %v1968_v30 = vmul.f32 %v1966_v45, %v1949_v11 }
0x11f1   : > { %1970 = vrot.lane.b32.xlu2 %v1968_v30, %s4111_s19  ;;  %v2075_v17 = vsel %vm4640_vm12, 0.0, %v1968_v30 }
0x11f2   : > { %2080 = vrot.lane.b32.xlu1 %v2075_v17, %s4111_s19 }
0x1231   : > { %v1881_v49 = vpop.permute.xlu1 %1880 }
0x1232   : > { %v4652_v48 = vmul.f32 %v1881_v49, %v1864_v27  ;;  %v2077_v49 = vsel %vm4640_vm12, 0.0, %v4628_v34 }
0x1234   : > { %v1903_v35 = vsel %vm4589_vm0, 0.0, %v4652_v48 }
0x1235   : > { %1995 = vrot.lane.b32.xlu0 %v1903_v35, %s4111_s19 }
0x124b   : > { %v1971_v53 = vpop.permute.xlu2 %1970 }
0x124c   : > { %3726 = vmatmul.msk.f32.vlgmr.msrb.gmra.mxu2 %vm690_vm7, %v1971_v53 }
0x124d   : > { %2334 = vmatpush.msrb.mxu2 %v4540_v3 }
0x124f   : > { %2335 = vmatpush.msrb.mxu2 %v4544_v22 }
0x1264   : > { %v2081_v54 = vpop.permute.xlu1 %2080 }
0x1265   : > { %3729 = vmatmul.msk.f32.vlgmr.msra.gmra.mxu1 %vm690_vm7, %v2081_v54 }
0x1266   : > { %2444 = vmatpush.msra.mxu1 %v4549_v23 }
0x1268   : > { %2445 = vmatpush.msra.mxu1 %v4553_v2 }
0x12a7   : > { %v1996_v55 = vpop.permute.xlu0 %1995 }
0x12a8   : > { %3727 = vmatmul.msk.f32.vlgmr.msrb.gmra.mxu3 %vm690_vm7, %v1996_v55 }
0x12a9   : > { %2359 = vmatpush.msrb.mxu3 %v4558_v24 }
0x12ab   : > { %2360 = vmatpush.msrb.mxu3 %v4562_v25 }
0x12cf   : > { %v1991_v39 = vpop.f32.mrf.mxu2 }
0x12d0   : > { %v1992_v9 = vadd.f32 %v4619_v50, %v1991_v39 }
0x12e2   : > { %v2101_v58 = vpop.f32.mrf.mxu1 }
0x12e3   : > { %v2104_v59 = vadd.f32 %v2101_v58, %v670_v57 }
0x12e5   : > { %3916 = vtanh.f32 %v2104_v59  ;;  %v3730_v62 = vmul.f32 -1.442695, %v2104_v59 }
0x12e7   : > { %3918 = vpow2.f32 %v3730_v62 }
0x12eb   : > { %v3917_v40 = vpop.eup %3916 }
0x12ec   : > { %2127 = vrot.lane.b32.xlu2 %v3917_v40, %s4108_s15  ;;  %v2246_v40 = vstv %s2245_s20  ;;  %s528_s20 = scalar_lea.vmem %s5344_s8, %s4194_s0 }
0x12ed   : > { %v3919_v63 = vpop.eup %3918  ;;  %vm4688_vm8 = vcmp.eq.s32.totalorder %v2246_v40, 1 }
0x12ee   : > { %v2108_v0 = vadd.f32 1.0, %v3919_v63 }
0x12f0   : > { %3920 = vrcp.f32 %v2108_v0  ;;  %v2120_v20 = vand.u32 2147483648, %v2108_v0  ;;  %vm2114_vm3 = vweird.f32 %v2108_v0  ;;  %v2118_v21 = vand.u32 2147483647, %v2108_v0 }
0x12f2   : > { %v2121_v1 = vor.u32 1.1754944e-38, %v2120_v20  ;;  %vm2119_vm5 = vcmp.eq.f32.partialorder %v2118_v21, 8.507059e+37 }
0x12f6   : > { %v3921_v46 = vpop.eup %3920 }
0x12f7   : > { %v2110_v56 = vmul.f32 %v3921_v46, %v2108_v0  ;;  %vm2115_vm6 = vweird.f32 %v3921_v46 }
0x12f8   : > { %vm2116_vm4 = vmor %vm2114_vm3, %vm2115_vm6 }
0x12f9   : > { %v2111_v16 = vsub.f32 1.0, %v2110_v56 }
0x12fb   : > { %v2112_v60 = vmul.f32 %v3921_v46, %v2111_v16 }
0x12fd   : > { %v2113_v8 = vadd.f32 %v3921_v46, %v2112_v60 }
0x12ff   : > { %v2117_v6 = vsel %vm2116_vm4, %v3921_v46, %v2113_v8 }
0x1300   : > { %v2122_v7 = vsel %vm2119_vm5, %v2121_v1, %v2117_v6 }
0x1301   : > { %v2125_v35 = vmul.f32 %v2122_v7, %v2077_v49 }
0x132b   : > { %v2016_v11 = vpop.f32.mrf.mxu3 }
0x132c   : > { %v2019_v12 = vadd.f32 %v2016_v11, %v1992_v9 }
0x132e   : > { %3922 = vtanh.f32 %v2019_v12  ;;  %v3728_v27 = vmul.f32 -1.442695, %v2019_v12 }
0x1330   : > { %3924 = vpow2.f32 %v3728_v27 }
0x1334   : > { %v3923_v15 = vpop.eup %3922 }
0x1335   : > { %2042 = vrot.lane.b32.xlu0 %v3923_v15, %s4108_s15  ;;  %v672_v15 = vpop.f32.mrf.mxu0 }
0x1336   : > { %v3925_v13 = vpop.eup %3924  ;;  %v673_v16 = vadd.f32 %v4566_v26, %v672_v15 }
0x1337   : > { %v2023_v51 = vadd.f32 1.0, %v3925_v13 }
0x1339   : > { %3926 = vrcp.f32 %v2023_v51  ;;  %v2035_v41 = vand.u32 2147483648, %v2023_v51  ;;  %vm2029_vm9 = vweird.f32 %v2023_v51  ;;  %v2033_v19 = vand.u32 2147483647, %v2023_v51 }
0x133b   : > { %v2036_v45 = vor.u32 1.1754944e-38, %v2035_v41  ;;  %vm2034_vm11 = vcmp.eq.f32.partialorder %v2033_v19, 8.507059e+37 }
0x133f   : > { %v3927_v31 = vpop.eup %3926 }
0x1340   : > { %v2025_v32 = vmul.f32 %v3927_v31, %v2023_v51  ;;  %vm2030_vm2 = vweird.f32 %v3927_v31 }
0x1341   : > { %vm2031_vm10 = vmor %vm2029_vm9, %vm2030_vm2 }
0x1342   : > { %v2026_v36 = vsub.f32 1.0, %v2025_v32 }
0x1344   : > { %v2027_v33 = vmul.f32 %v3927_v31, %v2026_v36 }
0x1346   : > { %v2128_v4 = vpop.permute.xlu2 %2127  ;;  %v2028_v37 = vadd.f32 %v3927_v31, %v2027_v33 }
0x1347   : > { %v2130_v10 = vmul.f32 %v2128_v4, %v2122_v7 }
0x1348   : > { %v2032_v44 = vsel %vm2031_vm10, %v3927_v31, %v2028_v37 }
0x1349   : > { %2132 = vrot.lane.b32.xlu1 %v2130_v10, %s4109_s22  ;;  %v2037_v17 = vsel %vm2034_vm11, %v2036_v45, %v2032_v44 }
0x134a   : > { %v2040_v57 = vmul.f32 %v2037_v17, %v1905_v38 }
0x13a7   : > { %v2043_v30 = vpop.permute.xlu0 %2042 }
0x13a8   : > { %v2045_v5 = vmul.f32 %v2043_v30, %v2037_v17 }
0x13aa   : > { %2047 = vrot.lane.b32.xlu2 %v2045_v5, %s4109_s22 }
0x13bb   : > { %v2133_v53 = vpop.permute.xlu1 %2132 }
0x13bc   : > { %v4676_v54 = vadd.f32 %v2133_v53, %v2125_v35 }
0x13be   : > { %3928 = vtanh.f32 %v4676_v54 }
0x13c4   : > { %v3929_v55 = vpop.eup %3928 }
0x13c5   : > { %2138 = vrot.lane.b32.xlu0 %v3929_v55, %s4110_s23 }
0x1404   : > { %v2048_v58 = vpop.permute.xlu2 %2047 }
0x1405   : > { %v4683_v59 = vadd.f32 %v2048_v58, %v2040_v57 }
0x1407   : > { %3930 = vtanh.f32 %v4683_v59 }
0x140d   : > { %v3931_v34 = vpop.eup %3930 }
0x140e   : > { %2053 = vrot.lane.b32.xlu1 %v3931_v34, %s4110_s23 }
0x1437   : > { %v2139_v62 = vpop.permute.xlu0 %2138 }
0x1438   : > { %v2141_v63 = vmul.f32 %v2139_v62, %v2122_v7 }
0x143a   : > { %2143 = vrot.lane.b32.xlu2 %v2141_v63, %s4111_s19  ;;  %v2248_v28 = vsel %vm4688_vm8, 0.0, %v2141_v63 }
0x143b   : > { %2253 = vrot.lane.b32.xlu1 %v2248_v28, %s4111_s19 }
0x1480   : > { %v2054_v39 = vpop.permute.xlu1 %2053 }
0x1481   : > { %v4700_v9 = vmul.f32 %v2054_v39, %v2037_v17 }
0x1483   : > { %v2076_v11 = vsel %vm4640_vm12, 0.0, %v4700_v9 }
0x1484   : > { %2168 = vrot.lane.b32.xlu0 %v2076_v11, %s4111_s19  ;;  %v2250_v11 = vsel %vm4688_vm8, 0.0, %v4676_v54 }
0x1494   : > { %v2144_v12 = vpop.permute.xlu2 %2143 }
0x1495   : > { %3731 = vmatmul.msk.f32.vlgmr.msra.gmra.mxu2 %vm690_vm7, %v2144_v12 }
0x1496   : > { %2507 = vmatpush.msra.mxu2 %v4540_v3 }
0x1498   : > { %2508 = vmatpush.msra.mxu2 %v4544_v22 }
0x14ad   : > { %v2254_v46 = vpop.permute.xlu1 %2253 }
0x14ae   : > { %3734 = vmatmul.msk.f32.vlgmr.msrb.gmra.mxu1 %vm690_vm7, %v2254_v46 }
0x14af   : > { %2617 = vmatpush.msrb.mxu1 %v4549_v23 }
0x14b1   : > { %2618 = vmatpush.msrb.mxu1 %v4553_v2 }
0x14f6   : > { %v2169_v56 = vpop.permute.xlu0 %2168 }
0x14f7   : > { %3732 = vmatmul.msk.f32.vlgmr.msra.gmra.mxu3 %vm690_vm7, %v2169_v56 }
0x14f8   : > { %2532 = vmatpush.msra.mxu3 %v4558_v24 }
0x14fa   : > { %2533 = vmatpush.msra.mxu3 %v4562_v25 }
0x1518   : > { %v2164_v4 = vpop.f32.mrf.mxu2 }
0x1519   : > { %v2165_v10 = vadd.f32 %v4619_v50, %v2164_v4 }
0x152b   : > { %v2274_v60 = vpop.f32.mrf.mxu1 }
0x152c   : > { %v2277_v8 = vadd.f32 %v2274_v60, %v673_v16  ;;  %v2078_v16 = vsel %vm4640_vm12, 0.0, %v4683_v59  ;;  %v555_v59 = vld [vmem:[%s5337_s1 + $0x50] sm:$0xff] }
0x152d   : > { %3686 = vmatmul.msk.f32.gmra.mxu0 %vm578_vm1, %v555_v59 }
0x152e   : > { %3932 = vtanh.f32 %v2277_v8  ;;  %v3735_v21 = vmul.f32 -1.442695, %v2277_v8 }
0x1530   : > { %3934 = vpow2.f32 %v3735_v21  ;;  %v2419_v21 = vstv %s2418_s16  ;;  %s2240_s16 = scalar_select %p2239_p12, 1, 0 }
0x1531   : > { %vm4736_vm2 = vcmp.eq.s32.totalorder %v2419_v21, 1 }
0x1534   : > { %v3933_v20 = vpop.eup %3932 }
0x1535   : > { %2300 = vrot.lane.b32.xlu2 %v3933_v20, %s4108_s15 }
0x1536   : > { %v3935_v6 = vpop.eup %3934 }
0x1537   : > { %v2281_v1 = vadd.f32 1.0, %v3935_v6 }
0x1539   : > { %3936 = vrcp.f32 %v2281_v1  ;;  %v2293_v37 = vand.u32 2147483648, %v2281_v1  ;;  %vm2287_vm13 = vweird.f32 %v2281_v1  ;;  %v2291_v41 = vand.u32 2147483647, %v2281_v1 }
0x153b   : > { %v2294_v44 = vor.u32 1.1754944e-38, %v2293_v37  ;;  %vm2292_vm15 = vcmp.eq.f32.partialorder %v2291_v41, 8.507059e+37 }
0x153f   : > { %v3937_v7 = vpop.eup %3936 }
0x1540   : > { %v2283_v51 = vmul.f32 %v3937_v7, %v2281_v1  ;;  %vm2288_vm0 = vweird.f32 %v3937_v7 }
0x1541   : > { %vm2289_vm14 = vmor %vm2287_vm13, %vm2288_vm0 }
0x1542   : > { %v2284_v31 = vsub.f32 1.0, %v2283_v51 }
0x1544   : > { %v2285_v36 = vmul.f32 %v3937_v7, %v2284_v31 }
0x1546   : > { %v2286_v33 = vadd.f32 %v3937_v7, %v2285_v36 }
0x1548   : > { %v2290_v19 = vsel %vm2289_vm14, %v3937_v7, %v2286_v33 }
0x1549   : > { %v2295_v30 = vsel %vm2292_vm15, %v2294_v44, %v2290_v19 }
0x154a   : > { %v2298_v12 = vmul.f32 %v2295_v30, %v2250_v11 }
0x157a   : > { %v2189_v27 = vpop.f32.mrf.mxu3 }
0x157b   : > { %v2192_v13 = vadd.f32 %v2189_v27, %v2165_v10 }
0x157d   : > { %3938 = vtanh.f32 %v2192_v13  ;;  %v3733_v5 = vmul.f32 -1.442695, %v2192_v13 }
0x157f   : > { %3940 = vpow2.f32 %v3733_v5 }
0x1583   : > { %v3939_v32 = vpop.eup %3938 }
0x1584   : > { %2215 = vrot.lane.b32.xlu0 %v3939_v32, %s4108_s15 }
0x1585   : > { %v3941_v49 = vpop.eup %3940 }
0x1586   : > { %v2196_v35 = vadd.f32 1.0, %v3941_v49 }
0x1588   : > { %3942 = vrcp.f32 %v2196_v35  ;;  %v2208_v34 = vand.u32 2147483648, %v2196_v35  ;;  %vm2202_vm3 = vweird.f32 %v2196_v35  ;;  %v2206_v40 = vand.u32 2147483647, %v2196_v35 }
0x158a   : > { %v2209_v63 = vor.u32 1.1754944e-38, %v2208_v34  ;;  %vm2207_vm5 = vcmp.eq.f32.partialorder %v2206_v40, 8.507059e+37 }
0x158e   : > { %v3943_v53 = vpop.eup %3942 }
0x158f   : > { %v2301_v45 = vpop.permute.xlu2 %2300  ;;  %v2198_v55 = vmul.f32 %v3943_v53, %v2196_v35  ;;  %vm2203_vm6 = vweird.f32 %v3943_v53 }
0x1590   : > { %v2303_v17 = vmul.f32 %v2301_v45, %v2295_v30  ;;  %vm2204_vm4 = vmor %vm2202_vm3, %vm2203_vm6 }
0x1591   : > { %v2199_v38 = vsub.f32 1.0, %v2198_v55 }
0x1592   : > { %2305 = vrot.lane.b32.xlu1 %v2303_v17, %s4109_s22 }
0x1593   : > { %v2200_v57 = vmul.f32 %v3943_v53, %v2199_v38 }
0x1595   : > { %v2201_v58 = vadd.f32 %v3943_v53, %v2200_v57 }
0x1597   : > { %v2205_v62 = vsel %vm2204_vm4, %v3943_v53, %v2201_v58 }
0x1598   : > { %v2210_v42 = vsel %vm2207_vm5, %v2209_v63, %v2205_v62 }
0x1599   : > { %v2213_v60 = vmul.f32 %v2210_v42, %v2078_v16 }
0x15aa   : > { %v675_v32 = vpop.f32.mrf.mxu0 }
0x15ab   : > { %v676_v36 = vadd.f32 %v4566_v26, %v675_v32 }
0x15f6   : > { %v2216_v28 = vpop.permute.xlu0 %2215 }
0x15f7   : > { %v2218_v39 = vmul.f32 %v2216_v28, %v2210_v42 }
0x15f9   : > { %2220 = vrot.lane.b32.xlu2 %v2218_v39, %s4109_s22 }
0x1604   : > { %v2306_v46 = vpop.permute.xlu1 %2305 }
0x1605   : > { %v4724_v56 = vadd.f32 %v2306_v46, %v2298_v12 }
0x1607   : > { %3944 = vtanh.f32 %v4724_v56 }
0x160d   : > { %v3945_v15 = vpop.eup %3944 }
0x160e   : > { %2311 = vrot.lane.b32.xlu0 %v3945_v15, %s4110_s23 }
0x1653   : > { %v2221_v8 = vpop.permute.xlu2 %2220 }
0x1654   : > { %v4731_v20 = vadd.f32 %v2221_v8, %v2213_v60 }
0x1656   : > { %3946 = vtanh.f32 %v4731_v20 }
0x165c   : > { %v3947_v54 = vpop.eup %3946 }
0x165d   : > { %2226 = vrot.lane.b32.xlu1 %v3947_v54, %s4110_s23 }
0x1680   : > { %v2312_v6 = vpop.permute.xlu0 %2311 }
0x1681   : > { %v2314_v1 = vmul.f32 %v2312_v6, %v2295_v30 }
0x1683   : > { %2316 = vrot.lane.b32.xlu2 %v2314_v1, %s4111_s19  ;;  %v2421_v47 = vsel %vm4736_vm2, 0.0, %v2314_v1 }
0x1684   : > { %2426 = vrot.lane.b32.xlu1 %v2421_v47, %s4111_s19 }
0x16cf   : > { %v2227_v7 = vpop.permute.xlu1 %2226 }
0x16d0   : > { %v4748_v10 = vmul.f32 %v2227_v7, %v2210_v42 }
0x16d2   : > { %v2249_v27 = vsel %vm4688_vm8, 0.0, %v4748_v10 }
0x16d3   : > { %2341 = vrot.lane.b32.xlu0 %v2249_v27, %s4111_s19 }
0x16dd   : > { %v2317_v13 = vpop.permute.xlu2 %2316 }
0x16de   : > { %3736 = vmatmul.msk.f32.vlgmr.msrb.gmra.mxu2 %vm690_vm7, %v2317_v13  ;;  %v2423_v13 = vsel %vm4736_vm2, 0.0, %v4724_v56 }
0x16df   : > { %2680 = vmatpush.msrb.mxu2 %v4540_v3 }
0x16e1   : > { %2681 = vmatpush.msrb.mxu2 %v4544_v22 }
0x16f6   : > { %v2427_v51 = vpop.permute.xlu1 %2426 }
0x16f7   : > { %3739 = vmatmul.msk.f32.vlgmr.msra.gmra.mxu1 %vm690_vm7, %v2427_v51 }
0x16f8   : > { %2790 = vmatpush.msra.mxu1 %v4549_v23 }
0x16fa   : > { %2791 = vmatpush.msra.mxu1 %v4553_v2 }
0x1745   : > { %v2342_v31 = vpop.permute.xlu0 %2341 }
0x1746   : > { %3737 = vmatmul.msk.f32.vlgmr.msrb.gmra.mxu3 %vm690_vm7, %v2342_v31 }
0x1747   : > { %2705 = vmatpush.msrb.mxu3 %v4558_v24 }
0x1749   : > { %2706 = vmatpush.msrb.mxu3 %v4562_v25 }
0x1761   : > { %v2337_v17 = vpop.f32.mrf.mxu2 }
0x1762   : > { %v2338_v49 = vadd.f32 %v4619_v50, %v2337_v17 }
0x1774   : > { %v2447_v33 = vpop.f32.mrf.mxu1 }
0x1775   : > { %v2450_v37 = vadd.f32 %v2447_v33, %v676_v36  ;;  %v2251_v33 = vsel %vm4688_vm8, 0.0, %v4731_v20  ;;  %v556_v20 = vld [vmem:[%s5337_s1 + $0x58] sm:$0xff] }
0x1776   : > { %3687 = vmatmul.msk.f32.gmra.mxu0 %vm578_vm1, %v556_v20 }
0x1777   : > { %3948 = vtanh.f32 %v2450_v37  ;;  %v3740_v19 = vmul.f32 -1.442695, %v2450_v37 }
0x1779   : > { %3950 = vpow2.f32 %v3740_v19 }
0x177d   : > { %v3949_v41 = vpop.eup %3948 }
0x177e   : > { %2473 = vrot.lane.b32.xlu2 %v3949_v41, %s4108_s15 }
0x177f   : > { %v3951_v44 = vpop.eup %3950 }
0x1780   : > { %v2454_v45 = vadd.f32 1.0, %v3951_v44  ;;  %v2592_v44 = vstv %s2591_s28  ;;  %s4112_s28 = smov 48  }
0x1781   : > { %vm4784_vm6 = vcmp.eq.s32.totalorder %v2592_v44, 1 }
0x1782   : > { %3952 = vrcp.f32 %v2454_v45  ;;  %v2466_v34 = vand.u32 2147483648, %v2454_v45  ;;  %vm2460_vm9 = vweird.f32 %v2454_v45  ;;  %v2464_v40 = vand.u32 2147483647, %v2454_v45 }
0x1784   : > { %v2467_v63 = vor.u32 1.1754944e-38, %v2466_v34  ;;  %vm2465_vm11 = vcmp.eq.f32.partialorder %v2464_v40, 8.507059e+37 }
0x1788   : > { %v3953_v30 = vpop.eup %3952 }
0x1789   : > { %v2456_v5 = vmul.f32 %v3953_v30, %v2454_v45  ;;  %vm2461_vm12 = vweird.f32 %v3953_v30 }
0x178a   : > { %vm2462_vm10 = vmor %vm2460_vm9, %vm2461_vm12 }
0x178b   : > { %v2457_v53 = vsub.f32 1.0, %v2456_v5 }
0x178d   : > { %v2458_v38 = vmul.f32 %v3953_v30, %v2457_v53 }
0x178f   : > { %v2459_v57 = vadd.f32 %v3953_v30, %v2458_v38 }
0x1791   : > { %v2463_v62 = vsel %vm2462_vm10, %v3953_v30, %v2459_v57 }
0x1792   : > { %v2468_v42 = vsel %vm2465_vm11, %v2467_v63, %v2463_v62 }
0x1793   : > { %v2471_v51 = vmul.f32 %v2468_v42, %v2423_v13 }
0x17c9   : > { %v2362_v35 = vpop.f32.mrf.mxu3 }
0x17ca   : > { %v2365_v55 = vadd.f32 %v2362_v35, %v2338_v49 }
0x17cc   : > { %3954 = vtanh.f32 %v2365_v55  ;;  %v3738_v11 = vmul.f32 -1.442695, %v2365_v55 }
0x17ce   : > { %3956 = vpow2.f32 %v3738_v11 }
0x17d2   : > { %v3955_v58 = vpop.eup %3954 }
0x17d3   : > { %2388 = vrot.lane.b32.xlu0 %v3955_v58, %s4108_s15 }
0x17d4   : > { %v3957_v12 = vpop.eup %3956 }
0x17d5   : > { %v2369_v46 = vadd.f32 1.0, %v3957_v12 }
0x17d7   : > { %3958 = vrcp.f32 %v2369_v46  ;;  %v2381_v21 = vand.u32 2147483648, %v2369_v46  ;;  %vm2375_vm13 = vweird.f32 %v2369_v46  ;;  %v2379_v6 = vand.u32 2147483647, %v2369_v46 }
0x17d8   : > { %v2474_v28 = vpop.permute.xlu2 %2473 }
0x17d9   : > { %v2476_v39 = vmul.f32 %v2474_v28, %v2468_v42  ;;  %v2382_v47 = vor.u32 1.1754944e-38, %v2381_v21  ;;  %vm2380_vm15 = vcmp.eq.f32.partialorder %v2379_v6, 8.507059e+37 }
0x17db   : > { %2478 = vrot.lane.b32.xlu1 %v2476_v39, %s4109_s22 }
0x17dd   : > { %v3959_v15 = vpop.eup %3958 }
0x17de   : > { %v2371_v16 = vmul.f32 %v3959_v15, %v2369_v46  ;;  %vm2376_vm0 = vweird.f32 %v3959_v15 }
0x17df   : > { %vm2377_vm14 = vmor %vm2375_vm13, %vm2376_vm0 }
0x17e0   : > { %v2372_v60 = vsub.f32 1.0, %v2371_v16 }
0x17e2   : > { %v2373_v8 = vmul.f32 %v3959_v15, %v2372_v60 }
0x17e4   : > { %v2374_v54 = vadd.f32 %v3959_v15, %v2373_v8 }
0x17e6   : > { %v2378_v1 = vsel %vm2377_vm14, %v3959_v15, %v2374_v54 }
0x17e7   : > { %v2383_v7 = vsel %vm2380_vm15, %v2382_v47, %v2378_v1 }
0x17e8   : > { %v2386_v37 = vmul.f32 %v2383_v7, %v2251_v33 }
0x17f3   : > { %v678_v57 = vpop.f32.mrf.mxu0 }
0x17f4   : > { %v679_v58 = vadd.f32 %v4566_v26, %v678_v57  ;;  %v2765_v57 = vstv %s2764_s26  ;;  %s2413_s26 = scalar_select %p2412_p13, 1, 0 }
0x17f5   : > { %vm4832_vm0 = vcmp.eq.s32.totalorder %v2765_v57, 1 }
0x1845   : > { %v2389_v59 = vpop.permute.xlu0 %2388 }
0x1846   : > { %v2391_v27 = vmul.f32 %v2389_v59, %v2383_v7 }
0x1848   : > { %2393 = vrot.lane.b32.xlu2 %v2391_v27, %s4109_s22 }
0x184d   : > { %v2479_v31 = vpop.permute.xlu1 %2478 }
0x184e   : > { %v4772_v32 = vadd.f32 %v2479_v31, %v2471_v51 }
0x1850   : > { %3960 = vtanh.f32 %v4772_v32 }
0x1856   : > { %v3961_v36 = vpop.eup %3960 }
0x1857   : > { %2484 = vrot.lane.b32.xlu0 %v3961_v36, %s4110_s23 }
0x18a2   : > { %v2394_v41 = vpop.permute.xlu2 %2393 }
0x18a3   : > { %v4779_v19 = vadd.f32 %v2394_v41, %v2386_v37  ;;  %v2596_v41 = vsel %vm4784_vm6, 0.0, %v4772_v32 }
0x18a5   : > { %3962 = vtanh.f32 %v4779_v19 }
0x18ab   : > { %v3963_v56 = vpop.eup %3962 }
0x18ac   : > { %2399 = vrot.lane.b32.xlu1 %v3963_v56, %s4110_s23 }
0x18c9   : > { %v2485_v45 = vpop.permute.xlu0 %2484 }
0x18ca   : > { %v2487_v30 = vmul.f32 %v2485_v45, %v2468_v42 }
0x18cc   : > { %2489 = vrot.lane.b32.xlu2 %v2487_v30, %s4111_s19  ;;  %v2594_v0 = vsel %vm4784_vm6, 0.0, %v2487_v30 }
0x18cd   : > { %2599 = vrot.lane.b32.xlu1 %v2594_v0, %s4111_s19 }
0x191e   : > { %v2400_v5 = vpop.permute.xlu1 %2399 }
0x191f   : > { %v4796_v49 = vmul.f32 %v2400_v5, %v2383_v7 }
0x1921   : > { %v2422_v35 = vsel %vm4736_vm2, 0.0, %v4796_v49 }
0x1922   : > { %2514 = vrot.lane.b32.xlu0 %v2422_v35, %s4111_s19  ;;  %v2424_v35 = vsel %vm4736_vm2, 0.0, %v4779_v19  ;;  %v557_v19 = vld [vmem:[%s5337_s1 + $0x60] sm:$0xff] }
0x1923   : > { %3688 = vmatmul.msk.f32.gmra.mxu0 %vm578_vm1, %v557_v19 }
0x1926   : > { %v2490_v53 = vpop.permute.xlu2 %2489 }
0x1927   : > { %3741 = vmatmul.msk.f32.vlgmr.msra.gmra.mxu2 %vm690_vm7, %v2490_v53 }
0x1928   : > { %2853 = vmatpush.msra.mxu2 %v4540_v3 }
0x192a   : > { %2854 = vmatpush.msra.mxu2 %v4544_v22 }
0x193f   : > { %v2600_v55 = vpop.permute.xlu1 %2599 }
0x1940   : > { %3744 = vmatmul.msk.f32.vlgmr.msrb.gmra.mxu1 %vm690_vm7, %v2600_v55 }
0x1941   : > { %2963 = vmatpush.msrb.mxu1 %v4549_v23 }
0x1943   : > { %2964 = vmatpush.msrb.mxu1 %v4553_v2 }
0x1994   : > { %v2515_v38 = vpop.permute.xlu0 %2514 }
0x1995   : > { %3742 = vmatmul.msk.f32.vlgmr.msra.gmra.mxu3 %vm690_vm7, %v2515_v38 }
0x1996   : > { %2878 = vmatpush.msra.mxu3 %v4558_v24 }
0x1998   : > { %2879 = vmatpush.msra.mxu3 %v4562_v25 }
0x19aa   : > { %v2510_v24 = vpop.f32.mrf.mxu2 }
0x19ab   : > { %v2511_v25 = vadd.f32 %v4619_v50, %v2510_v24  ;;  %v4078_v24 = vld [vmem:[%s4213_s18 + $0x8] sm:$0xff] }
0x19bd   : > { %v2620_v3 = vpop.f32.mrf.mxu1 }
0x19be   : > { %v2623_v34 = vadd.f32 %v2620_v3, %v679_v58 }
0x19c0   : > { %3964 = vtanh.f32 %v2623_v34  ;;  %v3745_v40 = vmul.f32 -1.442695, %v2623_v34 }
0x19c2   : > { %3966 = vpow2.f32 %v3745_v40 }
0x19c6   : > { %v3965_v22 = vpop.eup %3964 }
0x19c7   : > { %2646 = vrot.lane.b32.xlu2 %v3965_v22, %s4108_s15 }
0x19c8   : > { %v3967_v23 = vpop.eup %3966 }
0x19c9   : > { %v2627_v2 = vadd.f32 1.0, %v3967_v23 }
0x19cb   : > { %3968 = vrcp.f32 %v2627_v2  ;;  %v2639_v12 = vand.u32 2147483648, %v2627_v2  ;;  %vm2633_vm3 = vweird.f32 %v2627_v2  ;;  %v2637_v46 = vand.u32 2147483647, %v2627_v2 }
0x19cd   : > { %v2640_v16 = vor.u32 1.1754944e-38, %v2639_v12  ;;  %vm2638_vm5 = vcmp.eq.f32.partialorder %v2637_v46, 8.507059e+37  ;;  %v4872_v12 = vld [vmem:[%s4203_s30] ss:$0 sm:$0xff]  ;;  %s2937_s30 = scalar_select %p2936_p2, 1, 0 }
0x19ce   : > { %p2931_p2 = scmp.le.s32.totalorder %s4290_s14, 12 }
0x19d1   : > { %v3969_v62 = vpop.eup %3968 }
0x19d2   : > { %v2629_v63 = vmul.f32 %v3969_v62, %v2627_v2  ;;  %vm2634_vm8 = vweird.f32 %v3969_v62 }
0x19d3   : > { %vm2635_vm4 = vmor %vm2633_vm3, %vm2634_vm8 }
0x19d4   : > { %v2630_v28 = vsub.f32 1.0, %v2629_v63  ;;  %v4856_v63 = vld [vmem:[%s4219_s21] sm:$0xff] }
0x19d6   : > { %v2631_v42 = vmul.f32 %v3969_v62, %v2630_v28 }
0x19d8   : > { %v2632_v11 = vadd.f32 %v3969_v62, %v2631_v42  ;;  %v4079_v42 = vld [vmem:[%s4213_s18] sm:$0xff]  ;;  %s1375_s18 = scalar_select %p1374_p7, 1, 0 }
0x19da   : > { %v2636_v15 = vsel %vm2635_vm4, %v3969_v62, %v2632_v11  ;;  %v4852_v62 = vld [vmem:[%s4219_s21 + $0x8] sm:$0xff]  ;;  %v681_v11 = vpop.f32.mrf.mxu0  ;;  %s1548_s21 = scalar_select %p1547_p8, 1, 0 }
0x19db   : > { %v2641_v54 = vsel %vm2638_vm5, %v2640_v16, %v2636_v15  ;;  %v682_v46 = vadd.f32 %v4872_v12, %v681_v11 }
0x19dc   : > { %v2644_v30 = vmul.f32 %v2641_v54, %v2596_v41 }
0x1a18   : > { %v2535_v39 = vpop.f32.mrf.mxu3 }
0x1a19   : > { %v2538_v26 = vadd.f32 %v2535_v39, %v2511_v25  ;;  %v4864_v39 = vld [vmem:[%s4225_s24 + $0x8] sm:$0xff] }
0x1a1b   : > { %3970 = vtanh.f32 %v2538_v26  ;;  %v3743_v6 = vmul.f32 -1.442695, %v2538_v26  ;;  %v4868_v26 = vld [vmem:[%s4225_s24] sm:$0xff]  ;;  %s3110_s24 = scalar_select %p3109_p3, 1, 0 }
0x1a1c   : > { %p3104_p3 = scmp.le.s32.totalorder %s4290_s14, 13 }
0x1a1d   : > { %3972 = vpow2.f32 %v3743_v6 }
0x1a21   : > { %v3971_v60 = vpop.eup %3970  ;;  %v2647_v8 = vpop.permute.xlu2 %2646 }
0x1a22   : > { %v2649_v21 = vmul.f32 %v2647_v8, %v2641_v54  ;;  %2561 = vrot.lane.b32.xlu0 %v3971_v60, %s4108_s15 }
0x1a23   : > { %v3973_v1 = vpop.eup %3972 }
0x1a24   : > { %2651 = vrot.lane.b32.xlu1 %v2649_v21, %s4109_s22  ;;  %v2542_v47 = vadd.f32 1.0, %v3973_v1 }
0x1a26   : > { %3974 = vrcp.f32 %v2542_v47  ;;  %v2554_v31 = vand.u32 2147483648, %v2542_v47  ;;  %vm2548_vm9 = vweird.f32 %v2542_v47  ;;  %v2552_v36 = vand.u32 2147483647, %v2542_v47 }
0x1a28   : > { %v2555_v37 = vor.u32 1.1754944e-38, %v2554_v31  ;;  %vm2553_vm11 = vcmp.eq.f32.partialorder %v2552_v36, 8.507059e+37 }
0x1a2c   : > { %v3975_v59 = vpop.eup %3974 }
0x1a2d   : > { %v2544_v7 = vmul.f32 %v3975_v59, %v2542_v47  ;;  %vm2549_vm12 = vweird.f32 %v3975_v59 }
0x1a2e   : > { %vm2550_vm10 = vmor %vm2548_vm9, %vm2549_vm12 }
0x1a2f   : > { %v2545_v27 = vsub.f32 1.0, %v2544_v7 }
0x1a31   : > { %v2546_v13 = vmul.f32 %v3975_v59, %v2545_v27 }
0x1a33   : > { %v2547_v51 = vadd.f32 %v3975_v59, %v2546_v13 }
0x1a35   : > { %v2551_v33 = vsel %vm2550_vm10, %v3975_v59, %v2547_v51 }
0x1a36   : > { %v2556_v44 = vsel %vm2553_vm11, %v2555_v37, %v2551_v33 }
0x1a37   : > { %v2559_v32 = vmul.f32 %v2556_v44, %v2424_v35 }
0x1a94   : > { %v2562_v56 = vpop.permute.xlu0 %2561 }
0x1a95   : > { %v2564_v45 = vmul.f32 %v2562_v56, %v2556_v44 }
0x1a96   : > { %v2652_v0 = vpop.permute.xlu1 %2651 }
0x1a97   : > { %v4819_v20 = vadd.f32 %v2652_v0, %v2644_v30  ;;  %2566 = vrot.lane.b32.xlu2 %v2564_v45, %s4109_s22 }
0x1a99   : > { %3976 = vtanh.f32 %v4819_v20 }
0x1a9f   : > { %v3977_v5 = vpop.eup %3976 }
0x1aa0   : > { %2657 = vrot.lane.b32.xlu0 %v3977_v5, %s4110_s23 }
0x1af1   : > { %v2567_v53 = vpop.permute.xlu2 %2566 }
0x1af2   : > { %v4827_v55 = vadd.f32 %v2567_v53, %v2559_v32 }
0x1af4   : > { %3978 = vtanh.f32 %v4827_v55  ;;  %v2597_v11 = vsel %vm4784_vm6, 0.0, %v4827_v55  ;;  %v558_v55 = vld [vmem:[%s5337_s1 + $0x68] sm:$0xff] }
0x1af5   : > { %3689 = vmatmul.msk.f32.gmra.mxu0 %vm578_vm1, %v558_v55 }
0x1afa   : > { %v3979_v38 = vpop.eup %3978 }
0x1afb   : > { %2572 = vrot.lane.b32.xlu1 %v3979_v38, %s4110_s23 }
0x1b12   : > { %v2658_v58 = vpop.permute.xlu0 %2657 }
0x1b13   : > { %v2660_v3 = vmul.f32 %v2658_v58, %v2641_v54  ;;  %v2769_v58 = vsel %vm4832_vm0, 0.0, %v4819_v20 }
0x1b15   : > { %2662 = vrot.lane.b32.xlu2 %v2660_v3, %s4111_s19  ;;  %v2767_v4 = vsel %vm4832_vm0, 0.0, %v2660_v3 }
0x1b16   : > { %2772 = vrot.lane.b32.xlu1 %v2767_v4, %s4111_s19 }
0x1b6d   : > { %v2573_v22 = vpop.permute.xlu1 %2572 }
0x1b6e   : > { %v4844_v40 = vmul.f32 %v2573_v22, %v2556_v44 }
0x1b6f   : > { %v2663_v23 = vpop.permute.xlu2 %2662 }
0x1b70   : > { %3746 = vmatmul.msk.f32.vlgmr.msrb.gmra.mxu2 %vm690_vm7, %v2663_v23  ;;  %v2595_v2 = vsel %vm4784_vm6, 0.0, %v4844_v40 }
0x1b71   : > { %2687 = vrot.lane.b32.xlu0 %v2595_v2, %s4111_s19  ;;  %3026 = vmatpush.msrb.mxu2 %v4852_v62 }
0x1b73   : > { %3027 = vmatpush.msrb.mxu2 %v4856_v63 }
0x1b88   : > { %v2773_v28 = vpop.permute.xlu1 %2772 }
0x1b89   : > { %3749 = vmatmul.msk.f32.vlgmr.msra.gmra.mxu1 %vm690_vm7, %v2773_v28 }
0x1b8a   : > { %3136 = vmatpush.msra.mxu1 %v4078_v24 }
0x1b8c   : > { %3137 = vmatpush.msra.mxu1 %v4079_v42 }
0x1be3   : > { %v2688_v25 = vpop.permute.xlu0 %2687 }
0x1be4   : > { %3747 = vmatmul.msk.f32.vlgmr.msrb.gmra.mxu3 %vm690_vm7, %v2688_v25 }
0x1be5   : > { %3051 = vmatpush.msrb.mxu3 %v4864_v39 }
0x1be7   : > { %3052 = vmatpush.msrb.mxu3 %v4868_v26 }
0x1bf3   : > { %v2683_v7 = vpop.f32.mrf.mxu2 }
0x1bf4   : > { %v2684_v31 = vadd.f32 %v4619_v50, %v2683_v7 }
0x1c06   : > { %v2793_v15 = vpop.f32.mrf.mxu1 }
0x1c07   : > { %v2796_v16 = vadd.f32 %v2793_v15, %v682_v46 }
0x1c09   : > { %3980 = vtanh.f32 %v2796_v16  ;;  %v3750_v8 = vmul.f32 -1.442695, %v2796_v16 }
0x1c0b   : > { %3982 = vpow2.f32 %v3750_v8  ;;  %v2938_v8 = vstv %s2937_s30  ;;  %s3105_s30 = scalar_select %p3104_p3, 1, 0 }
0x1c0c   : > { %vm4895_vm12 = vcmp.eq.s32.totalorder %v2938_v8, 1 }
0x1c0f   : > { %v3981_v60 = vpop.eup %3980 }
0x1c10   : > { %2819 = vrot.lane.b32.xlu2 %v3981_v60, %s4108_s15 }
0x1c11   : > { %v3983_v54 = vpop.eup %3982 }
0x1c12   : > { %v2800_v21 = vadd.f32 1.0, %v3983_v54 }
0x1c14   : > { %3984 = vrcp.f32 %v2800_v21  ;;  %v2812_v13 = vand.u32 2147483648, %v2800_v21  ;;  %vm2806_vm13 = vweird.f32 %v2800_v21  ;;  %v2810_v51 = vand.u32 2147483647, %v2800_v21 }
0x1c16   : > { %v2813_v41 = vor.u32 1.1754944e-38, %v2812_v13  ;;  %vm2811_vm15 = vcmp.eq.f32.partialorder %v2810_v51, 8.507059e+37 }
0x1c1a   : > { %v3985_v6 = vpop.eup %3984 }
0x1c1b   : > { %v2802_v1 = vmul.f32 %v3985_v6, %v2800_v21  ;;  %vm2807_vm2 = vweird.f32 %v3985_v6 }
0x1c1c   : > { %vm2808_vm14 = vmor %vm2806_vm13, %vm2807_vm2 }
0x1c1d   : > { %v2803_v47 = vsub.f32 1.0, %v2802_v1 }
0x1c1f   : > { %v2804_v59 = vmul.f32 %v3985_v6, %v2803_v47 }
0x1c21   : > { %v2805_v27 = vadd.f32 %v3985_v6, %v2804_v59 }
0x1c23   : > { %v2809_v33 = vsel %vm2808_vm14, %v3985_v6, %v2805_v27 }
0x1c24   : > { %v2814_v44 = vsel %vm2811_vm15, %v2813_v41, %v2809_v33 }
0x1c25   : > { %v2817_v4 = vmul.f32 %v2814_v44, %v2769_v58 }
0x1c67   : > { %v2708_v36 = vpop.f32.mrf.mxu3 }
0x1c68   : > { %v2711_v37 = vadd.f32 %v2708_v36, %v2684_v31 }
0x1c6a   : > { %3986 = vtanh.f32 %v2711_v37  ;;  %v2820_v56 = vpop.permute.xlu2 %2819  ;;  %v3748_v0 = vmul.f32 -1.442695, %v2711_v37 }
0x1c6b   : > { %v2822_v45 = vmul.f32 %v2820_v56, %v2814_v44 }
0x1c6c   : > { %3988 = vpow2.f32 %v3748_v0 }
0x1c6d   : > { %2824 = vrot.lane.b32.xlu1 %v2822_v45, %s4109_s22 }
0x1c70   : > { %v3987_v30 = vpop.eup %3986 }
0x1c71   : > { %2734 = vrot.lane.b32.xlu0 %v3987_v30, %s4108_s15 }
0x1c72   : > { %v3989_v5 = vpop.eup %3988 }
0x1c73   : > { %v2715_v35 = vadd.f32 1.0, %v3989_v5 }
0x1c75   : > { %3990 = vrcp.f32 %v2715_v35  ;;  %v2727_v3 = vand.u32 2147483648, %v2715_v35  ;;  %vm2721_vm3 = vweird.f32 %v2715_v35  ;;  %v2725_v19 = vand.u32 2147483647, %v2715_v35 }
0x1c77   : > { %v2728_v28 = vor.u32 1.1754944e-38, %v2727_v3  ;;  %vm2726_vm5 = vcmp.eq.f32.partialorder %v2725_v19, 8.507059e+37 }
0x1c7b   : > { %v3991_v50 = vpop.eup %3990 }
0x1c7c   : > { %v2717_v32 = vmul.f32 %v3991_v50, %v2715_v35  ;;  %vm2722_vm8 = vweird.f32 %v3991_v50 }
0x1c7d   : > { %vm2723_vm4 = vmor %vm2721_vm3, %vm2722_vm8 }
0x1c7e   : > { %v2718_v53 = vsub.f32 1.0, %v2717_v32 }
0x1c80   : > { %v2719_v38 = vmul.f32 %v3991_v50, %v2718_v53 }
0x1c82   : > { %v2720_v57 = vadd.f32 %v3991_v50, %v2719_v38 }
0x1c84   : > { %v2724_v2 = vsel %vm2723_vm4, %v3991_v50, %v2720_v57  ;;  %v4923_v57 = vld [vmem:[%s4237_s13] ss:$0 sm:$0xff]  ;;  %s1894_s13 = scalar_select %p1893_p10, 1, 0 }
0x1c85   : > { %v2729_v42 = vsel %vm2726_vm5, %v2728_v28, %v2724_v2 }
0x1c86   : > { %v2732_v46 = vmul.f32 %v2729_v42, %v2597_v11 }
0x1cdf   : > { %v2825_v22 = vpop.permute.xlu1 %2824 }
0x1ce0   : > { %v4882_v23 = vadd.f32 %v2825_v22, %v2817_v4 }
0x1ce2   : > { %3992 = vtanh.f32 %v4882_v23 }
0x1ce3   : > { %v2735_v24 = vpop.permute.xlu0 %2734 }
0x1ce4   : > { %v2737_v25 = vmul.f32 %v2735_v24, %v2729_v42 }
0x1ce6   : > { %2739 = vrot.lane.b32.xlu2 %v2737_v25, %s4109_s22 }
0x1ce8   : > { %v3993_v20 = vpop.eup %3992 }
0x1ce9   : > { %2830 = vrot.lane.b32.xlu0 %v3993_v20, %s4110_s23  ;;  %v2942_v20 = vsel %vm4895_vm12, 0.0, %v4882_v23 }
0x1d40   : > { %v2740_v15 = vpop.permute.xlu2 %2739 }
0x1d41   : > { %v4890_v16 = vadd.f32 %v2740_v15, %v2732_v46 }
0x1d43   : > { %3994 = vtanh.f32 %v4890_v16 }
0x1d49   : > { %v3995_v60 = vpop.eup %3994 }
0x1d4a   : > { %2745 = vrot.lane.b32.xlu1 %v3995_v60, %s4110_s23 }
0x1d5b   : > { %v2831_v54 = vpop.permute.xlu0 %2830 }
0x1d5c   : > { %v2833_v21 = vmul.f32 %v2831_v54, %v2814_v44 }
0x1d5e   : > { %2835 = vrot.lane.b32.xlu2 %v2833_v21, %s4111_s19  ;;  %v2940_v17 = vsel %vm4895_vm12, 0.0, %v2833_v21 }
0x1d5f   : > { %2945 = vrot.lane.b32.xlu1 %v2940_v17, %s4111_s19 }
0x1db8   : > { %v2836_v1 = vpop.permute.xlu2 %2835 }
0x1db9   : > { %3751 = vmatmul.msk.f32.vlgmr.msra.gmra.mxu2 %vm690_vm7, %v2836_v1 }
0x1dba   : > { %3199 = vmatpush.msra.mxu2 %v4852_v62  ;;  %v684_v62 = vpop.f32.mrf.mxu0 }
0x1dbc   : > { %v2746_v47 = vpop.permute.xlu1 %2745  ;;  %3200 = vmatpush.msra.mxu2 %v4856_v63  ;;  %v685_v63 = vadd.f32 %v4872_v12, %v684_v62 }
0x1dbd   : > { %v4910_v59 = vmul.f32 %v2746_v47, %v2729_v42 }
0x1dbf   : > { %v2768_v7 = vsel %vm4832_vm0, 0.0, %v4910_v59 }
0x1dc0   : > { %2860 = vrot.lane.b32.xlu0 %v2768_v7, %s4111_s19 }
0x1dd1   : > { %v2946_v27 = vpop.permute.xlu1 %2945 }
0x1dd2   : > { %3754 = vmatmul.msk.f32.vlgmr.msrb.gmra.mxu1 %vm690_vm7, %v2946_v27  ;;  %v2770_v27 = vsel %vm4832_vm0, 0.0, %v4890_v16  ;;  %v559_v16 = vld [vmem:[%s5337_s1 + $0x70] sm:$0xff] }
0x1dd3   : > { %3690 = vmatmul.msk.f32.gmra.mxu0 %vm578_vm1, %v559_v16 }
0x1e32   : > { %v2861_v13 = vpop.permute.xlu0 %2860 }
0x1e33   : > { %3752 = vmatmul.msk.f32.vlgmr.msra.gmra.mxu3 %vm690_vm7, %v2861_v13 }
0x1e34   : > { %3224 = vmatpush.msra.mxu3 %v4864_v39 }
0x1e36   : > { %3225 = vmatpush.msra.mxu3 %v4868_v26 }
0x1e3c   : > { %v2856_v50 = vpop.f32.mrf.mxu2 }
0x1e3d   : > { %v2857_v58 = vadd.f32 %v4923_v57, %v2856_v50 }
0x1e4f   : > { %v2966_v51 = vpop.f32.mrf.mxu1 }
0x1e50   : > { %v2969_v31 = vadd.f32 %v2966_v51, %v685_v63 }
0x1e52   : > { %3996 = vtanh.f32 %v2969_v31  ;;  %v3755_v33 = vmul.f32 -1.442695, %v2969_v31  ;;  %v3111_v31 = vstv %s3110_s24  ;;  %s1721_s24 = scalar_select %p1720_p9, 1, 0 }
0x1e53   : > { %vm4944_vm8 = vcmp.eq.s32.totalorder %v3111_v31, 1 }
0x1e54   : > { %3998 = vpow2.f32 %v3755_v33 }
0x1e58   : > { %v3997_v36 = vpop.eup %3996 }
0x1e59   : > { %2992 = vrot.lane.b32.xlu2 %v3997_v36, %s4108_s15 }
0x1e5a   : > { %v3999_v37 = vpop.eup %3998 }
0x1e5b   : > { %v2973_v41 = vadd.f32 1.0, %v3999_v37 }
0x1e5d   : > { %4000 = vrcp.f32 %v2973_v41  ;;  %v2985_v30 = vand.u32 2147483648, %v2973_v41  ;;  %vm2979_vm9 = vweird.f32 %v2973_v41  ;;  %v2983_v0 = vand.u32 2147483647, %v2973_v41 }
0x1e5f   : > { %v2986_v35 = vor.u32 1.1754944e-38, %v2985_v30  ;;  %vm2984_vm11 = vcmp.eq.f32.partialorder %v2983_v0, 8.507059e+37  ;;  %v687_v30 = vpop.f32.mrf.mxu0 }
0x1e60   : > { %v688_v0 = vadd.f32 %v4872_v12, %v687_v30 }
0x1e63   : > { %v4001_v56 = vpop.eup %4000 }
0x1e64   : > { %v2975_v44 = vmul.f32 %v4001_v56, %v2973_v41  ;;  %vm2980_vm6 = vweird.f32 %v4001_v56 }
0x1e65   : > { %vm2981_vm10 = vmor %vm2979_vm9, %vm2980_vm6 }
0x1e66   : > { %v2976_v39 = vsub.f32 1.0, %v2975_v44 }
0x1e68   : > { %v2977_v45 = vmul.f32 %v4001_v56, %v2976_v39 }
0x1e6a   : > { %v2978_v26 = vadd.f32 %v4001_v56, %v2977_v45 }
0x1e6c   : > { %v2982_v5 = vsel %vm2981_vm10, %v4001_v56, %v2978_v26 }
0x1e6d   : > { %v2987_v53 = vsel %vm2984_vm11, %v2986_v35, %v2982_v5 }
0x1e6e   : > { %v2990_v11 = vmul.f32 %v2987_v53, %v2942_v20 }
0x1eb3   : > { %v2993_v32 = vpop.permute.xlu2 %2992 }
0x1eb4   : > { %v2995_v38 = vmul.f32 %v2993_v32, %v2987_v53 }
0x1eb6   : > { %v2881_v3 = vpop.f32.mrf.mxu3  ;;  %2997 = vrot.lane.b32.xlu1 %v2995_v38, %s4109_s22 }
0x1eb7   : > { %v2884_v4 = vadd.f32 %v2881_v3, %v2857_v58 }
0x1eb9   : > { %4002 = vtanh.f32 %v2884_v4  ;;  %v3753_v22 = vmul.f32 -1.442695, %v2884_v4 }
0x1ebb   : > { %4004 = vpow2.f32 %v3753_v22 }
0x1ebf   : > { %v4003_v19 = vpop.eup %4002 }
0x1ec0   : > { %2907 = vrot.lane.b32.xlu0 %v4003_v19, %s4108_s15 }
0x1ec1   : > { %v4005_v2 = vpop.eup %4004 }
0x1ec2   : > { %v2888_v28 = vadd.f32 1.0, %v4005_v2 }
0x1ec4   : > { %4006 = vrcp.f32 %v2888_v28  ;;  %v2900_v54 = vand.u32 2147483648, %v2888_v28  ;;  %vm2894_vm13 = vweird.f32 %v2888_v28  ;;  %v2898_v21 = vand.u32 2147483647, %v2888_v28 }
0x1ec6   : > { %v2901_v55 = vor.u32 1.1754944e-38, %v2900_v54  ;;  %vm2899_vm15 = vcmp.eq.f32.partialorder %v2898_v21, 8.507059e+37 }
0x1eca   : > { %v4007_v24 = vpop.eup %4006 }
0x1ecb   : > { %v2890_v42 = vmul.f32 %v4007_v24, %v2888_v28  ;;  %vm2895_vm2 = vweird.f32 %v4007_v24 }
0x1ecc   : > { %vm2896_vm14 = vmor %vm2894_vm13, %vm2895_vm2 }
0x1ecd   : > { %v2891_v25 = vsub.f32 1.0, %v2890_v42 }
0x1ecf   : > { %v2892_v46 = vmul.f32 %v4007_v24, %v2891_v25 }
0x1ed1   : > { %v2893_v8 = vadd.f32 %v4007_v24, %v2892_v46 }
0x1ed3   : > { %v2897_v17 = vsel %vm2896_vm14, %v4007_v24, %v2893_v8 }
0x1ed4   : > { %v2902_v23 = vsel %vm2899_vm15, %v2901_v55, %v2897_v17 }
0x1ed5   : > { %v2905_v13 = vmul.f32 %v2902_v23, %v2770_v27 }
0x1f28   : > { %v2998_v15 = vpop.permute.xlu1 %2997 }
0x1f29   : > { %v4931_v60 = vadd.f32 %v2998_v15, %v2990_v11 }
0x1f2b   : > { %4008 = vtanh.f32 %v4931_v60 }
0x1f31   : > { %v4009_v1 = vpop.eup %4008 }
0x1f32   : > { %v2908_v47 = vpop.permute.xlu0 %2907  ;;  %3003 = vrot.lane.b32.xlu0 %v4009_v1, %s4110_s23 }
0x1f33   : > { %v2910_v7 = vmul.f32 %v2908_v47, %v2902_v23 }
0x1f35   : > { %2912 = vrot.lane.b32.xlu2 %v2910_v7, %s4109_s22 }
0x1f8f   : > { %v2913_v62 = vpop.permute.xlu2 %2912 }
0x1f90   : > { %v4939_v63 = vadd.f32 %v2913_v62, %v2905_v13 }
0x1f92   : > { %4010 = vtanh.f32 %v4939_v63 }
0x1f98   : > { %v4011_v51 = vpop.eup %4010 }
0x1f99   : > { %2918 = vrot.lane.b32.xlu1 %v4011_v51, %s4110_s23 }
0x1fa4   : > { %v3004_v36 = vpop.permute.xlu0 %3003 }
0x1fa5   : > { %v3006_v33 = vmul.f32 %v3004_v36, %v2987_v53 }
0x1fa7   : > { %3008 = vrot.lane.b32.xlu2 %v3006_v33, %s4111_s19  ;;  %v3113_v34 = vsel %vm4944_vm8, 0.0, %v3006_v33 }
0x1fa8   : > { %3118 = vrot.lane.b32.xlu1 %v3113_v34, %s4111_s19 }
0x2001   : > { %v3009_v41 = vpop.permute.xlu2 %3008 }
0x2002   : > { %3756 = vmatmul.msk.f32.vlgmr.msrb.gmra.mxu2 %vm690_vm7, %v3009_v41 }
0x200b   : > { %v2919_v56 = vpop.permute.xlu1 %2918 }
0x200c   : > { %v4957_v44 = vmul.f32 %v2919_v56, %v2902_v23  ;;  %v3115_v23 = vsel %vm4944_vm8, 0.0, %v4931_v60 }
0x200e   : > { %v2941_v39 = vsel %vm4895_vm12, 0.0, %v4957_v44 }
0x200f   : > { %3033 = vrot.lane.b32.xlu0 %v2941_v39, %s4111_s19 }
0x201a   : > { %v3119_v45 = vpop.permute.xlu1 %3118 }
0x201b   : > { %3759 = vmatmul.msk.f32.vlgmr.msra.gmra.mxu1 %vm690_vm7, %v3119_v45  ;;  %v2943_v45 = vsel %vm4895_vm12, 0.0, %v4939_v63 }
0x2081   : > { %v3034_v26 = vpop.permute.xlu0 %3033 }
0x2082   : > { %3757 = vmatmul.msk.f32.vlgmr.msrb.gmra.mxu3 %vm690_vm7, %v3034_v26 }
0x2085   : > { %v3029_v11 = vpop.f32.mrf.mxu2 }
0x2086   : > { %v3030_v46 = vadd.f32 %v4923_v57, %v3029_v11 }
0x2098   : > { %v3139_v5 = vpop.f32.mrf.mxu1 }
0x2099   : > { %v3142_v35 = vadd.f32 %v3139_v5, %v688_v0 }
0x209b   : > { %4012 = vtanh.f32 %v3142_v35  ;;  %v3760_v32 = vmul.f32 -1.442695, %v3142_v35 }
0x209d   : > { %4014 = vpow2.f32 %v3760_v32 }
0x20a1   : > { %v4013_v50 = vpop.eup %4012 }
0x20a2   : > { %3165 = vrot.lane.b32.xlu2 %v4013_v50, %s4108_s15 }
0x20a3   : > { %v4015_v53 = vpop.eup %4014 }
0x20a4   : > { %v3146_v38 = vadd.f32 1.0, %v4015_v53 }
0x20a6   : > { %4016 = vrcp.f32 %v3146_v38  ;;  %v3158_v2 = vand.u32 2147483648, %v3146_v38  ;;  %vm3152_vm0 = vweird.f32 %v3146_v38  ;;  %v3156_v12 = vand.u32 2147483647, %v3146_v38 }
0x20a8   : > { %v3159_v24 = vor.u32 1.1754944e-38, %v3158_v2  ;;  %vm3157_vm4 = vcmp.eq.f32.partialorder %v3156_v12, 8.507059e+37 }
0x20ac   : > { %v4017_v58 = vpop.eup %4016 }
0x20ad   : > { %v3148_v3 = vmul.f32 %v4017_v58, %v3146_v38  ;;  %vm3153_vm1 = vweird.f32 %v4017_v58  ;;  %v3794_v38 = vld [vmem:[%s528_s20] ss:$0 sm:$0xff]  ;;  %s2586_s20 = scalar_select %p2585_p0, 1, 0 }
0x20ae   : > { %vm3154_vm3 = vmor %vm3152_vm0, %vm3153_vm1 }
0x20af   : > { %v3149_v4 = vsub.f32 1.0, %v3148_v3 }
0x20b1   : > { %v3150_v19 = vmul.f32 %v4017_v58, %v3149_v4 }
0x20b3   : > { %v3151_v22 = vadd.f32 %v4017_v58, %v3150_v19 }
0x20b5   : > { %v3155_v28 = vsel %vm3154_vm3, %v4017_v58, %v3151_v22 }
0x20b6   : > { %v3160_v25 = vsel %vm3157_vm4, %v3159_v24, %v3155_v28 }
0x20b7   : > { %v3163_v7 = vmul.f32 %v3160_v25, %v3115_v23 }
0x20fc   : > { %v3166_v42 = vpop.permute.xlu2 %3165 }
0x20fd   : > { %v3168_v20 = vmul.f32 %v3166_v42, %v3160_v25 }
0x20ff   : > { %3170 = vrot.lane.b32.xlu1 %v3168_v20, %s4109_s22 }
0x2105   : > { %v3054_v15 = vpop.f32.mrf.mxu3 }
0x2106   : > { %v3057_v8 = vadd.f32 %v3054_v15, %v3030_v46 }
0x2108   : > { %4018 = vtanh.f32 %v3057_v8  ;;  %v3758_v21 = vmul.f32 -1.442695, %v3057_v8 }
0x210a   : > { %4020 = vpow2.f32 %v3758_v21 }
0x210e   : > { %v4019_v54 = vpop.eup %4018 }
0x210f   : > { %3080 = vrot.lane.b32.xlu0 %v4019_v54, %s4108_s15 }
0x2110   : > { %v4021_v17 = vpop.eup %4020 }
0x2111   : > { %v3061_v55 = vadd.f32 1.0, %v4021_v17 }
0x2113   : > { %4022 = vrcp.f32 %v3061_v55  ;;  %v3073_v33 = vand.u32 2147483648, %v3061_v55  ;;  %vm3067_vm6 = vweird.f32 %v3061_v55  ;;  %v3071_v34 = vand.u32 2147483647, %v3061_v55 }
0x2115   : > { %v3074_v41 = vor.u32 1.1754944e-38, %v3073_v33  ;;  %vm3072_vm10 = vcmp.eq.f32.partialorder %v3071_v34, 8.507059e+37 }
0x2119   : > { %v4023_v1 = vpop.eup %4022 }
0x211a   : > { %v3063_v47 = vmul.f32 %v4023_v1, %v3061_v55  ;;  %vm3068_vm5 = vweird.f32 %v4023_v1 }
0x211b   : > { %vm3069_vm9 = vmor %vm3067_vm6, %vm3068_vm5 }
0x211c   : > { %v3064_v62 = vsub.f32 1.0, %v3063_v47 }
0x211e   : > { %v3065_v51 = vmul.f32 %v4023_v1, %v3064_v62 }
0x2120   : > { %v3066_v36 = vadd.f32 %v4023_v1, %v3065_v51 }
0x2122   : > { %v3070_v16 = vsel %vm3069_vm9, %v4023_v1, %v3066_v36 }
0x2123   : > { %v3075_v56 = vsel %vm3072_vm10, %v3074_v41, %v3070_v16  ;;  %v5034_v41 = vld [vmem:[%s531_s17] ss:$0 sm:$0xff]  ;;  %s1029_s17 = scalar_select %p1028_p4, 1, 0 }
0x2124   : > { %v3078_v26 = vmul.f32 %v3075_v56, %v2943_v45  ;;  %p3277_p4 = scmp.le.s32.totalorder %s4290_s14, 14 }
0x2171   : > { %v3171_v27 = vpop.permute.xlu1 %3170 }
0x2172   : > { %v3173_v13 = vadd.f32 %v3171_v27, %v3163_v7 }
0x2174   : > { %4024 = vtanh.f32 %v3173_v13 }
0x217a   : > { %v4025_v31 = vpop.eup %4024 }
0x217b   : > { %3176 = vrot.lane.b32.xlu0 %v4025_v31, %s4110_s23 }
0x2181   : > { %v3081_v60 = vpop.permute.xlu0 %3080 }
0x2182   : > { %v3083_v39 = vmul.f32 %v3081_v60, %v3075_v56 }
0x2184   : > { %3085 = vrot.lane.b32.xlu2 %v3083_v39, %s4109_s22 }
0x21de   : > { %v3086_v30 = vpop.permute.xlu2 %3085 }
0x21df   : > { %v4982_v0 = vadd.f32 %v3086_v30, %v3078_v26 }
0x21e1   : > { %4026 = vtanh.f32 %v4982_v0 }
0x21e7   : > { %v4027_v5 = vpop.eup %4026 }
0x21e8   : > { %3091 = vrot.lane.b32.xlu1 %v4027_v5, %s4110_s23  ;;  %v1030_v5 = vstv %s1029_s17  ;;  %s3278_s17 = scalar_select %p3277_p4, 1, 0 }
0x21e9   : > { %vm5051_vm14 = vcmp.eq.s32.totalorder %v1030_v5, 1 }
0x21ed   : > { %v3177_v35 = vpop.permute.xlu0 %3176 }
0x21ee   : > { %v3179_v50 = vmul.f32 %v3177_v35, %v3160_v25 }
0x21f0   : > { %3181 = vrot.lane.b32.xlu2 %v3179_v50, %s4111_s19 }
0x224a   : > { %v3182_v32 = vpop.permute.xlu2 %3181 }
0x224b   : > { %3761 = vmatmul.msk.f32.vlgmr.msra.gmra.mxu2 %vm690_vm7, %v3182_v32 }
0x225a   : > { %v3092_v6 = vpop.permute.xlu1 %3091 }
0x225b   : > { %v4988_v63 = vmul.f32 %v3092_v6, %v3075_v56 }
0x225d   : > { %v3114_v53 = vsel %vm4944_vm8, 0.0, %v4988_v63 }
0x225e   : > { %3206 = vrot.lane.b32.xlu0 %v3114_v53, %s4111_s19 }
0x2266   : > { %840 = vrot.lane.b32.xlu0 %v3794_v38, %s4112_s28  ;;  %s2759_s28 = scalar_select %p2758_p1, 1, 0 }
0x22ce   : > { %v3202_v22 = vpop.f32.mrf.mxu2 }
0x22cf   : > { %v3203_v2 = vadd.f32 %v4923_v57, %v3202_v22 }
0x22d0   : > { %v3207_v58 = vpop.permute.xlu0 %3206 }
0x22d1   : > { %3762 = vmatmul.msk.f32.vlgmr.msra.gmra.mxu3 %vm690_vm7, %v3207_v58 }
0x22d8   : > { %v4995_v3 = vpop.permute.xlu0 %840 }
0x22d9   : > { %v1019_v4 = vmul.f32 %v4384_v52, %v4995_v3  ;;  %v1192_v19 = vmul.f32 %v4432_v61, %v4995_v3  ;;  %v843_v42 = vmul.f32 %v4995_v3, %v4336_v43  ;;  %v1538_v11 = vmul.f32 %v4528_v18, %v4995_v3 }
0x22da   : > { %v2230_v57 = vmul.f32 %v4748_v10, %v4995_v3  ;;  %v2576_v46 = vmul.f32 %v4844_v40, %v4995_v3  ;;  %v2922_v15 = vmul.f32 %v4957_v44, %v4995_v3  ;;  %v1365_v16 = vmul.f32 %v4480_v14, %v4995_v3 }
0x22db   : > { %1021 = vrot.lane.b32.xlu0 %v1019_v4, %s4111_s19  ;;  %v1711_v60 = vmul.f32 %v4597_v29, %v4995_v3  ;;  %v1884_v45 = vmul.f32 %v4652_v48, %v4995_v3  ;;  %v2403_v26 = vmul.f32 %v4796_v49, %v4995_v3  ;;  %v2749_v30 = vmul.f32 %v4910_v59, %v4995_v3 }
0x22e3   : > { %1194 = vrot.lane.b32.xlu0 %v1192_v19, %s4111_s19  ;;  %v3116_v19 = vsel %vm4944_vm8, 0.0, %v4982_v0 }
0x234d   : > { %v1022_v25 = vpop.permute.xlu0 %1021 }
0x234e   : > { %v1024_v20 = vsel %vm690_vm7, %v1022_v25, 0.0 }
0x2354   : > { %v3227_v12 = vpop.f32.mrf.mxu3 }
0x2355   : > { %v3230_v28 = vadd.f32 %v3227_v12, %v3203_v2 }
0x2357   : > { %4028 = vtanh.f32 %v3230_v28  ;;  %v3763_v8 = vmul.f32 -1.442695, %v3230_v28 }
0x2359   : > { %4030 = vpow2.f32 %v3763_v8 }
0x235d   : > { %v4029_v24 = vpop.eup %4028 }
0x235e   : > { %3253 = vrot.lane.b32.xlu1 %v4029_v24, %s4108_s15  ;;  %s2932_s15 = scalar_select %p2931_p2, 1, 0 }
0x235f   : > { %v4031_v54 = vpop.eup %4030 }
0x2360   : > { %v3234_v21 = vadd.f32 1.0, %v4031_v54 }
0x2362   : > { %4032 = vrcp.f32 %v3234_v21  ;;  %v3246_v62 = vand.u32 2147483648, %v3234_v21  ;;  %vm3240_vm11 = vweird.f32 %v3234_v21  ;;  %v3244_v51 = vand.u32 2147483647, %v3234_v21 }
0x2364   : > { %v3247_v36 = vor.u32 1.1754944e-38, %v3246_v62  ;;  %vm3245_vm13 = vcmp.eq.f32.partialorder %v3244_v51, 8.507059e+37 }
0x2366   : > { %845 = vrot.lane.b32.xlu1 %v843_v42, %s4111_s19 }
0x2368   : > { %v4033_v1 = vpop.eup %4032 }
0x2369   : > { %v3236_v23 = vmul.f32 %v4033_v1, %v3234_v21  ;;  %vm3241_vm12 = vweird.f32 %v4033_v1 }
0x236a   : > { %vm3242_vm2 = vmor %vm3240_vm11, %vm3241_vm12 }
0x236b   : > { %v3237_v7 = vsub.f32 1.0, %v3236_v23 }
0x236d   : > { %v3238_v27 = vmul.f32 %v4033_v1, %v3237_v7 }
0x236f   : > { %v3239_v13 = vadd.f32 %v4033_v1, %v3238_v27 }
0x2371   : > { %v3243_v31 = vsel %vm3242_vm2, %v4033_v1, %v3239_v13  ;;  %v2057_v1 = vmul.f32 %v4700_v9, %v4995_v3 }
0x2372   : > { %v5022_v33 = vsel %vm3245_vm13, %v3247_v36, %v3243_v31  ;;  %v1376_v31 = vstv %s1375_s18 }
0x2373   : > { %v3251_v22 = vmul.f32 %v5022_v33, %v3116_v19  ;;  %vm5103_vm1 = vcmp.eq.s32.totalorder %v1376_v31, 1  ;;  %v2414_v31 = vstv %s2413_s26 }
0x2374   : > { %vm5176_vm9 = vcmp.eq.s32.totalorder %v2414_v31, 1 }
0x2390   : > { %1025 = vadd.xlane.f32.xlu1 %v1024_v20 }
0x23a9   : > { %1540 = vrot.lane.b32.xlu1 %v1538_v11, %s4111_s19 }
0x23b1   : > { %2232 = vrot.lane.b32.xlu1 %v2230_v57, %s4111_s19 }
0x23b9   : > { %2578 = vrot.lane.b32.xlu1 %v2576_v46, %s4111_s19 }
0x23c1   : > { %2924 = vrot.lane.b32.xlu1 %v2922_v15, %s4111_s19 }
0x23d0   : > { %v3254_v17 = vpop.permute.xlu1 %3253 }
0x23d1   : > { %v3256_v34 = vmul.f32 %v3254_v17, %v5022_v33  ;;  %v1195_v17 = vpop.permute.xlu0 %1194 }
0x23d8   : > { %v846_v55 = vpop.permute.xlu1 %845 }
0x23d9   : > { %v848_v47 = vsel %vm690_vm7, %v846_v55, 0.0  ;;  %v1197_v55 = vsel %vm690_vm7, %v1195_v17, 0.0 }
0x23da   : > { %849 = vadd.xlane.f32.xlu2 %v848_v47  ;;  %v3095_v47 = vmul.f32 %v4988_v63, %v4995_v3 }
0x23f2   : > { %3258 = vrot.lane.b32.xlu2 %v3256_v34, %s4109_s22  ;;  %s856_s22 = scalar_select %p855_p5, 1, 0 }
0x23f4   : > { %v857_v35 = vstv %s856_s22 }
0x23f5   : > { %vm5055_vm15 = vcmp.eq.s32.totalorder %v857_v35, 1 }
0x23fa   : > { %1367 = vrot.lane.b32.xlu2 %v1365_v16, %s4111_s19 }
0x2402   : > { %1713 = vrot.lane.b32.xlu2 %v1711_v60, %s4111_s19 }
0x2403   : > { %v1026_v56 = vpop.xlane.xlu1 %1025 }
0x2404   : > { %v1027_v39 = vadd.f32 %v5034_v41, %v1026_v56 }
0x2406   : > { %v5062_v38 = vsel %vm5051_vm14, %v1027_v39, -1e+30 }
0x240a   : > { %1886 = vrot.lane.b32.xlu2 %v1884_v45, %s4111_s19 }
0x2412   : > { %2405 = vrot.lane.b32.xlu2 %v2403_v26, %s4111_s19 }
0x241a   : > { %2751 = vrot.lane.b32.xlu2 %v2749_v30, %s4111_s19 }
0x241b   : > { %v1541_v28 = vpop.permute.xlu1 %1540 }
0x241c   : > { %v1543_v23 = vsel %vm690_vm7, %v1541_v28, 0.0  ;;  %v1549_v28 = vstv %s1548_s21  ;;  %s539_s21 = scalar_lea.vmem %s5347_s11, %s4194_s0 }
0x241d   : > { %vm5125_vm0 = vcmp.eq.s32.totalorder %v1549_v28, 1 }
0x2423   : > { %v2233_v57 = vpop.permute.xlu1 %2232 }
0x242b   : > { %v2579_v46 = vpop.permute.xlu1 %2578 }
0x2433   : > { %v2925_v54 = vpop.permute.xlu1 %2924 }
0x2434   : > { %v2927_v21 = vsel %vm690_vm7, %v2925_v54, 0.0 }
0x244d   : > { %v850_v6 = vpop.xlane.xlu2 %849 }
0x244e   : > { %v854_v53 = vadd.f32 %v5034_v41, %v850_v6 }
0x2450   : > { %v5066_v58 = vsel %vm5055_vm15, %v854_v53, -1e+30  ;;  %v2581_v53 = vsel %vm690_vm7, %v2579_v46, 0.0 }
0x2451   : > { %v3282_v4 = vmax.f32 %v5066_v58, %v5062_v38 }
0x2455   : > { %v3259_v2 = vpop.permute.xlu2 %3258 }
0x2456   : > { %v3261_v12 = vadd.f32 %v3259_v2, %v3251_v22 }
0x2458   : > { %4034 = vtanh.f32 %v3261_v12 }
0x245d   : > { %v1368_v24 = vpop.permute.xlu2 %1367 }
0x245e   : > { %v4035_v42 = vpop.eup %4034  ;;  %v1370_v25 = vsel %vm690_vm7, %v1368_v24, 0.0  ;;  %v1722_v24 = vstv %s1721_s24  ;;  %s3674_s24 = sshll.u32 %s4194_s0, 3 }
0x245f   : > { %3264 = vrot.lane.b32.xlu0 %v4035_v42, %s4110_s23  ;;  %1371 = vadd.xlane.f32.xlu1 %v1370_v25  ;;  %s1202_s23 = scalar_select %p1201_p6, 1, 0  ;;  %vm5131_vm3 = vcmp.eq.s32.totalorder %v1722_v24, 1  ;;  %v2933_v24 = vstv %s2932_s15 }
0x2460   : > { %vm5207_vm11 = vcmp.eq.s32.totalorder %v2933_v24, 1 }
0x2461   : > { %v1203_v62 = vstv %s1202_s23  ;;  %s536_s23 = scalar_lea.vmem %s5346_s10, %s4197_s27 }
0x2462   : > { %vm5096_vm8 = vcmp.eq.s32.totalorder %v1203_v62, 1 }
0x2465   : > { %v1714_v20 = vpop.permute.xlu2 %1713 }
0x2466   : > { %v1716_v11 = vsel %vm690_vm7, %v1714_v20, 0.0 }
0x2467   : > { %1717 = vadd.xlane.f32.xlu2 %v1716_v11 }
0x246d   : > { %v1887_v37 = vpop.permute.xlu2 %1886 }
0x246e   : > { %v1889_v0 = vsel %vm690_vm7, %v1887_v37, 0.0 }
0x246f   : > { %1890 = vadd.xlane.f32.xlu1 %v1889_v0 }
0x2475   : > { %v2406_v15 = vpop.permute.xlu2 %2405 }
0x2476   : > { %v2408_v8 = vsel %vm690_vm7, %v2406_v15, 0.0 }
0x2477   : > { %2409 = vadd.xlane.f32.xlu1 %v2408_v8 }
0x247d   : > { %v2752_v30 = vpop.permute.xlu2 %2751 }
0x247e   : > { %v2754_v5 = vsel %vm690_vm7, %v2752_v30, 0.0 }
0x247f   : > { %2928 = vadd.xlane.f32.xlu1 %v2927_v21 }
0x2489   : > { %1198 = vadd.xlane.f32.xlu0 %v1197_v55 }
0x249d   : > { %2059 = vrot.lane.b32.xlu0 %v2057_v1, %s4111_s19 }
0x24a5   : > { %3097 = vrot.lane.b32.xlu0 %v3095_v47, %s4111_s19 }
0x24cf   : > { %1544 = vadd.xlane.f32.xlu0 %v1543_v23  ;;  %v2068_v23 = vstv %s2067_s29 }
0x24d0   : > { %vm5161_vm5 = vcmp.eq.s32.totalorder %v2068_v23, 1 }
0x24d1   : > { %v3265_v7 = vpop.permute.xlu0 %3264 }
0x24d2   : > { %v5089_v27 = vmul.f32 %v3265_v7, %v5022_v33  ;;  %v1372_v51 = vpop.xlane.xlu1 %1371 }
0x24d3   : > { %v1373_v33 = vadd.f32 %v5034_v41, %v1372_v51 }
0x24d4   : > { %v3268_v13 = vmul.f32 %v5089_v27, %v4995_v3  ;;  %v2235_v3 = vsel %vm690_vm7, %v2233_v57, 0.0  ;;  %v1895_v57 = vstv %s1894_s13 }
0x24d5   : > { %v5114_v45 = vsel %vm5103_vm1, %v1373_v33, -1e+30  ;;  %vm5140_vm4 = vcmp.eq.s32.totalorder %v1895_v57, 1 }
0x24d6   : > { %3270 = vrot.lane.b32.xlu2 %v3268_v13, %s4111_s19  ;;  %v2241_v13 = vstv %s2240_s16  ;;  %s543_s16 = scalar_lea.vmem %s5348_s12, %s3674_s24 }
0x24d7   : > { %vm5167_vm6 = vcmp.eq.s32.totalorder %v2241_v13, 1 }
0x24da   : > { %v1718_v22 = vpop.xlane.xlu2 %1717 }
0x24db   : > { %v1719_v11 = vadd.f32 %v5034_v41, %v1718_v22 }
0x24dd   : > { %v5147_v21 = vsel %vm5131_vm3, %v1719_v11, -1e+30 }
0x24e2   : > { %v1891_v42 = vpop.xlane.xlu1 %1890 }
0x24e3   : > { %v1892_v46 = vadd.f32 %v5034_v41, %v1891_v42 }
0x24e5   : > { %v5152_v55 = vsel %vm5140_vm4, %v1892_v46, -1e+30 }
0x24ea   : > { %v2410_v7 = vpop.xlane.xlu1 %2409 }
0x24f2   : > { %v2929_v22 = vpop.xlane.xlu1 %2928 }
0x24f3   : > { %v2930_v57 = vadd.f32 %v5034_v41, %v2929_v22 }
0x24fc   : > { %v1199_v34 = vpop.xlane.xlu0 %1198 }
0x24fd   : > { %v1200_v16 = vadd.f32 %v5034_v41, %v1199_v34 }
0x24ff   : > { %v5109_v56 = vsel %vm5096_vm8, %v1200_v16, -1e+30  ;;  %2236 = vadd.xlane.f32.xlu2 %v2235_v3  ;;  %v2411_v3 = vadd.f32 %v5034_v41, %v2410_v7  ;;  %v5216_v7 = vsel %vm5207_vm11, %v2930_v57, -1e+30 }
0x2500   : > { %v3283_v39 = vmax.f32 %v3282_v4, %v5109_v56 }
0x2502   : > { %v3284_v26 = vmax.f32 %v3283_v39, %v5114_v45 }
0x2507   : > { %2755 = vadd.xlane.f32.xlu2 %v2754_v5 }
0x250f   : > { %v2060_v35 = vpop.permute.xlu0 %2059 }
0x2510   : > { %v2062_v6 = vsel %vm690_vm7, %v2060_v35, 0.0  ;;  %v2587_v35 = vstv %s2586_s20 }
0x2511   : > { %2063 = vadd.xlane.f32.xlu0 %v2062_v6  ;;  %vm5191_vm10 = vcmp.eq.s32.totalorder %v2587_v35, 1 }
0x2517   : > { %v3098_v4 = vpop.permute.xlu0 %3097 }
0x2518   : > { %v3100_v19 = vsel %vm690_vm7, %v3098_v4, 0.0  ;;  %v5189_v4 = vsel %vm5176_vm9, %v2411_v3, -1e+30 }
0x2519   : > { %2582 = vadd.xlane.f32.xlu0 %v2581_v53 }
0x2521   : > { %3101 = vadd.xlane.f32.xlu0 %v3100_v19  ;;  %v2760_v19 = vstv %s2759_s28 }
0x2522   : > { %vm5198_vm12 = vcmp.eq.s32.totalorder %v2760_v19, 1 }
0x2530   : > { %v3271_v2 = vpop.permute.xlu2 %3270 }
0x2531   : > { %v3273_v12 = vsel %vm690_vm7, %v3271_v2, 0.0 }
0x2532   : > { %3274 = vadd.xlane.f32.xlu2 %v3273_v12 }
0x2542   : > { %v1545_v20 = vpop.xlane.xlu0 %1544 }
0x2543   : > { %v1546_v37 = vadd.f32 %v5034_v41, %v1545_v20 }
0x2545   : > { %v5138_v15 = vsel %vm5125_vm0, %v1546_v37, -1e+30 }
0x2546   : > { %v3285_v54 = vmax.f32 %v3284_v26, %v5138_v15 }
0x2548   : > { %v3286_v17 = vmax.f32 %v3285_v54, %v5147_v21 }
0x254a   : > { %v3287_v1 = vmax.f32 %v3286_v17, %v5152_v55  ;;  %v4113_v17 = vmov 0  }
0x254b   : > { %3790 = vset.pattern.permute.xlu2 %v4113_v17  ;;  %3789 = vset.pattern.permute.xlu0 %v4113_v17 }
0x254c   : > { %3788 = vset.pattern.permute.xlu1 %v4113_v17 }
0x2572   : > { %v2237_v47 = vpop.xlane.xlu2 %2236 }
0x2573   : > { %v2238_v34 = vadd.f32 %v5034_v41, %v2237_v47  ;;  %v3106_v47 = vstv %s3105_s30 }
0x2574   : > { %vm5218_vm2 = vcmp.eq.s32.totalorder %v3106_v47, 1 }
0x2575   : > { %v5183_v5 = vsel %vm5167_vm6, %v2238_v34, -1e+30 }
0x257a   : > { %v2756_v6 = vpop.xlane.xlu2 %2755 }
0x257b   : > { %v2757_v42 = vadd.f32 %v5034_v41, %v2756_v6 }
0x2584   : > { %v2064_v51 = vpop.xlane.xlu0 %2063 }
0x2585   : > { %v2065_v33 = vadd.f32 %v5034_v41, %v2064_v51 }
0x2587   : > { %v5174_v39 = vsel %vm5161_vm5, %v2065_v33, -1e+30 }
0x2588   : > { %v3288_v30 = vmax.f32 %v3287_v1, %v5174_v39  ;;  %v2762_v1 = vsel %vm5198_vm12, %v2757_v42, -1e+30 }
0x258a   : > { %v3289_v53 = vmax.f32 %v3288_v30, %v5183_v5  ;;  %v3279_v30 = vstv %s3278_s17 }
0x258b   : > { %vm5230_vm13 = vcmp.eq.s32.totalorder %v3279_v30, 1 }
0x258c   : > { %v3290_v12 = vmax.f32 %v3289_v53, %v5189_v4  ;;  %v2583_v28 = vpop.xlane.xlu0 %2582 }
0x258d   : > { %v2584_v20 = vadd.f32 %v5034_v41, %v2583_v28 }
0x258f   : > { %v5205_v37 = vsel %vm5191_vm10, %v2584_v20, -1e+30 }
0x2590   : > { %v3291_v54 = vmax.f32 %v3290_v12, %v5205_v37 }
0x2592   : > { %v3292_v23 = vmax.f32 %v3291_v54, %v2762_v1 }
0x2594   : > { %v3293_v51 = vmax.f32 %v3292_v23, %v5216_v7  ;;  %v3102_v31 = vpop.xlane.xlu0 %3101 }
0x2595   : > { %v3103_v34 = vadd.f32 %v5034_v41, %v3102_v31 }
0x2597   : > { %v5226_v33 = vsel %vm5218_vm2, %v3103_v34, -1e+30 }
0x2598   : > { %v3294_v3 = vmax.f32 %v3293_v51, %v5226_v33 }
0x25a5   : > { %v3275_v6 = vpop.xlane.xlu2 %3274 }
0x25a6   : > { %v3276_v53 = vadd.f32 %v5034_v41, %v3275_v6 }
0x25a8   : > { %v5237_v19 = vsel %vm5230_vm13, %v3276_v53, -1e+30 }
0x25a9   : > { %v5240_v22 = vmax.f32 %v3294_v3, %v5237_v19 }
0x25ab   : > { %v3464_v12 = vsub.f32 %v5237_v19, %v5240_v22  ;;  %v3320_v28 = vsub.f32 %v5109_v56, %v5240_v22  ;;  %v3308_v24 = vsub.f32 %v5062_v38, %v5240_v22  ;;  %v3296_v42 = vsub.f32 %v5066_v58, %v5240_v22 }
0x25ac   : > { %v3344_v41 = vsub.f32 %v5138_v15, %v5240_v22  ;;  %v3392_v20 = vsub.f32 %v5183_v5, %v5240_v22  ;;  %v3332_v57 = vsub.f32 %v5114_v45, %v5240_v22  ;;  %v3368_v54 = vsub.f32 %v5152_v55, %v5240_v22 }
0x25ad   : > { %v3321_v17 = vmul.f32 1.442695, %v3320_v28  ;;  %v3309_v56 = vmul.f32 1.442695, %v3308_v24  ;;  %v3428_v47 = vsub.f32 %v2762_v1, %v5240_v22  ;;  %v3297_v38 = vmul.f32 1.442695, %v3296_v42 }
0x25ae   : > { %v3356_v58 = vsub.f32 %v5147_v21, %v5240_v22  ;;  %v3333_v23 = vmul.f32 1.442695, %v3332_v57  ;;  %v3404_v15 = vsub.f32 %v5189_v4, %v5240_v22  ;;  %v3380_v5 = vsub.f32 %v5174_v39, %v5240_v22 }
0x25af   : > { %4036 = vpow2.f32 %v3321_v17  ;;  %v3440_v45 = vsub.f32 %v5216_v7, %v5240_v22  ;;  %v3416_v55 = vsub.f32 %v5205_v37, %v5240_v22  ;;  %v3452_v1 = vsub.f32 %v5226_v33, %v5240_v22 }
0x25b0   : > { %4038 = vpow2.f32 %v3309_v56  ;;  %v3345_v21 = vmul.f32 1.442695, %v3344_v41  ;;  %v3393_v51 = vmul.f32 1.442695, %v3392_v20  ;;  %v3357_v31 = vmul.f32 1.442695, %v3356_v58 }
0x25b1   : > { %4040 = vpow2.f32 %v3297_v38  ;;  %v3369_v4 = vmul.f32 1.442695, %v3368_v54  ;;  %v3381_v33 = vmul.f32 1.442695, %v3380_v5  ;;  %v3429_v28 = vmul.f32 1.442695, %v3428_v47 }
0x25b2   : > { %4042 = vpow2.f32 %v3333_v23  ;;  %v3405_v42 = vmul.f32 1.442695, %v3404_v15  ;;  %v3417_v54 = vmul.f32 1.442695, %v3416_v55  ;;  %v3441_v23 = vmul.f32 1.442695, %v3440_v45 }
0x25b3   : > { %4044 = vpow2.f32 %v3345_v21  ;;  %v3465_v25 = vmul.f32 1.442695, %v3464_v12  ;;  %v3453_v5 = vmul.f32 1.442695, %v3452_v1 }
0x25b4   : > { %4046 = vpow2.f32 %v3393_v51 }
0x25b5   : > { %v4037_v34 = vpop.eup %4036  ;;  %4048 = vpow2.f32 %v3357_v31 }
0x25b6   : > { %v4039_v3 = vpop.eup %4038  ;;  %v3323_v39 = vsel %vm5096_vm8, %v4037_v34, 0.0  ;;  %4050 = vpow2.f32 %v3369_v4 }
0x25b7   : > { %v4041_v7 = vpop.eup %4040  ;;  %3326 = vperm.xlu2 %3790, %v3323_v39   ;;  %v3311_v37 = vsel %vm5051_vm14, %v4039_v3, 0.0  ;;  %4052 = vpow2.f32 %v3381_v33  ;;  %vm3511_vm14 = vcmask 7168  }
0x25b8   : > { %3314 = vperm.xlu0 %3789, %v3311_v37   ;;  %v3299_v30 = vsel %vm5055_vm15, %v4041_v7, 0.0  ;;  %v4043_v53 = vpop.eup %4042  ;;  %4054 = vpow2.f32 %v3429_v28 }
0x25b9   : > { %3302 = vperm.xlu1 %3788, %v3299_v30   ;;  %v3319_v6 = vadd.f32 %v3311_v37, %v3299_v30  ;;  %v4045_v24 = vpop.eup %4044  ;;  %v3335_v50 = vsel %vm5103_vm1, %v4043_v53, 0.0  ;;  %4056 = vpow2.f32 %v3405_v42 }
0x25ba   : > { %v4047_v41 = vpop.eup %4046  ;;  %v3347_v32 = vsel %vm5125_vm0, %v4045_v24, 0.0  ;;  %4058 = vpow2.f32 %v3417_v54 }
0x25bb   : > { %v3331_v36 = vadd.f32 %v3323_v39, %v3319_v6  ;;  %v4049_v20 = vpop.eup %4048  ;;  %v3395_v56 = vsel %vm5167_vm6, %v4047_v41, 0.0  ;;  %4060 = vpow2.f32 %v3441_v23 }
0x25bc   : > { %v4051_v17 = vpop.eup %4050  ;;  %v3359_v38 = vsel %vm5131_vm3, %v4049_v20, 0.0  ;;  %4062 = vpow2.f32 %v3465_v25  ;;  %v573_v20 = vld [vmem:[%s536_s23 + $0x8] sm:$0xff] }
0x25bd   : > { %v3343_v57 = vadd.f32 %v3335_v50, %v3331_v36  ;;  %v4053_v60 = vpop.eup %4052  ;;  %v3371_v15 = vsel %vm5140_vm4, %v4051_v17, 0.0  ;;  %4064 = vpow2.f32 %v3453_v5  ;;  %3505 = vmatpush.msrb.mxu0 %v573_v20 }
0x25be   : > { %v4055_v55 = vpop.eup %4054  ;;  %v3383_v21 = vsel %vm5161_vm5, %v4053_v60, 0.0 }
0x25bf   : > { %3350 = vperm.xlu2 %3790, %v3347_v32   ;;  %v3355_v47 = vadd.f32 %v3347_v32, %v3343_v57  ;;  %v4057_v0 = vpop.eup %4056  ;;  %v3431_v45 = vsel %vm5198_vm12, %v4055_v55, 0.0  ;;  %v572_v32 = vld [vmem:[%s536_s23] sm:$0xff] }
0x25c0   : > { %3398 = vperm.xlu0 %3789, %v3395_v56   ;;  %v4059_v31 = vpop.eup %4058  ;;  %v3407_v8 = vsel %vm5176_vm9, %v4057_v0, 0.0  ;;  %3506 = vmatpush.msrb.mxu0 %v572_v32 }
0x25c1   : > { %3338 = vperm.xlu1 %3788, %v3335_v50   ;;  %v3367_v58 = vadd.f32 %v3359_v38, %v3355_v47  ;;  %v3419_v62 = vsel %vm5191_vm10, %v4059_v31, 0.0  ;;  %v4061_v12 = vpop.eup %4060 }
0x25c2   : > { %v4063_v34 = vpop.eup %4062  ;;  %v3443_v11 = vsel %vm5207_vm11, %v4061_v12, 0.0  ;;  %v3795_v12 = vld [vmem:[%s539_s21] ss:$0 sm:$0xff] }
0x25c3   : > { %v3379_v16 = vadd.f32 %v3371_v15, %v3367_v58  ;;  %v4065_v4 = vpop.eup %4064  ;;  %v3467_v39 = vsel %vm5230_vm13, %v4063_v34, 0.0 }
0x25c4   : > { %v3455_v26 = vsel %vm5218_vm2, %v4065_v4, 0.0 }
0x25c5   : > { %v3391_v51 = vadd.f32 %v3383_v21, %v3379_v16 }
0x25c7   : > { %3374 = vperm.xlu2 %3790, %v3371_v15   ;;  %v3403_v19 = vadd.f32 %v3395_v56, %v3391_v51 }
0x25c8   : > { %3434 = vperm.xlu0 %3789, %v3431_v45  }
0x25c9   : > { %3362 = vperm.xlu1 %3788, %v3359_v38   ;;  %v3415_v22 = vadd.f32 %v3407_v8, %v3403_v19 }
0x25cb   : > { %v3427_v1 = vadd.f32 %v3419_v62, %v3415_v22 }
0x25cd   : > { %v3439_v3 = vadd.f32 %v3431_v45, %v3427_v1 }
0x25cf   : > { %3410 = vperm.xlu2 %3790, %v3407_v8   ;;  %v3451_v7 = vadd.f32 %v3443_v11, %v3439_v3 }
0x25d0   : > { %3470 = vperm.xlu0 %3789, %v3467_v39  }
0x25d1   : > { %3386 = vperm.xlu1 %3788, %v3383_v21   ;;  %v3463_v2 = vadd.f32 %v3455_v26, %v3451_v7 }
0x25d3   : > { %v3475_v37 = vadd.f32 %v3467_v39, %v3463_v2 }
0x25d5   : > { %4066 = vrcp.f32 %v3475_v37 }
0x25d7   : > { %3446 = vperm.xlu2 %3790, %v3443_v11  }
0x25d9   : > { %3422 = vperm.xlu1 %3788, %v3419_v62  }
0x25db   : > { %v4067_v33 = vpop.eup %4066 }
0x25df   : > { %3479 = vperm.xlu2 %3790, %v4067_v33  }
0x25e1   : > { %3458 = vperm.xlu1 %3788, %v3455_v26  }
0x2611   : > { %v3327_v46 = vpop.permute.xlu2 %3326 }
0x2612   : > { %v3329_v36 = vmul.f32 %v3327_v46, %v4432_v61 }
0x2619   : > { %v3351_v28 = vpop.permute.xlu2 %3350 }
0x2621   : > { %v3375_v57 = vpop.permute.xlu2 %3374 }
0x2629   : > { %v3411_v58 = vpop.permute.xlu2 %3410 }
0x262a   : > { %v3315_v6 = vpop.permute.xlu0 %3314 }
0x262b   : > { %v3303_v30 = vpop.permute.xlu1 %3302  ;;  %v3317_v35 = vmul.f32 %v3315_v6, %v4384_v52  ;;  %v3353_v52 = vmul.f32 %v3351_v28, %v4528_v18 }
0x262c   : > { %v3305_v53 = vmul.f32 %v3303_v30, %v4336_v43 }
0x262e   : > { %v3318_v24 = vadd.f32 %v3317_v35, %v3305_v53 }
0x2630   : > { %v3330_v41 = vadd.f32 %v3329_v36, %v3318_v24 }
0x2631   : > { %v3447_v0 = vpop.permute.xlu2 %3446 }
0x2632   : > { %v3399_v61 = vpop.permute.xlu0 %3398 }
0x2633   : > { %v3339_v13 = vpop.permute.xlu1 %3338  ;;  %v3401_v23 = vmul.f32 %v3399_v61, %v4748_v10  ;;  %v3449_v10 = vmul.f32 %v3447_v0, %v4957_v44 }
0x2634   : > { %v3341_v42 = vmul.f32 %v3339_v13, %v4480_v14  ;;  %v3377_v14 = vmul.f32 %v3375_v57, %v4652_v48 }
0x2636   : > { %v3342_v50 = vadd.f32 %v3341_v42, %v3330_v41 }
0x2638   : > { %v3354_v17 = vadd.f32 %v3353_v52, %v3342_v50 }
0x263a   : > { %v3435_v18 = vpop.permute.xlu0 %3434 }
0x263b   : > { %v3363_v54 = vpop.permute.xlu1 %3362  ;;  %v3437_v21 = vmul.f32 %v3435_v18, %v4910_v59  ;;  %v3480_v59 = vpop.permute.xlu2 %3479 }
0x263c   : > { %v3365_v43 = vmul.f32 %v3363_v54, %v4597_v29  ;;  %v3413_v29 = vmul.f32 %v3411_v58, %v4796_v49 }
0x263e   : > { %v3366_v56 = vadd.f32 %v3365_v43, %v3354_v17 }
0x2640   : > { %v3378_v38 = vadd.f32 %v3377_v14, %v3366_v56 }
0x2642   : > { %v3471_v51 = vpop.permute.xlu0 %3470 }
0x2643   : > { %v3387_v47 = vpop.permute.xlu1 %3386  ;;  %v3473_v19 = vmul.f32 %v3471_v51, %v5089_v27 }
0x2644   : > { %v3389_v60 = vmul.f32 %v3387_v47, %v4700_v9 }
0x2646   : > { %v3390_v25 = vadd.f32 %v3389_v60, %v3378_v38 }
0x2648   : > { %v3402_v15 = vadd.f32 %v3401_v23, %v3390_v25 }
0x264a   : > { %v3414_v5 = vadd.f32 %v3413_v29, %v3402_v15 }
0x264b   : > { %v3423_v16 = vpop.permute.xlu1 %3422 }
0x264c   : > { %v3425_v55 = vmul.f32 %v3423_v16, %v4844_v40 }
0x264e   : > { %v3426_v48 = vadd.f32 %v3425_v55, %v3414_v5 }
0x2650   : > { %v3438_v9 = vadd.f32 %v3437_v21, %v3426_v48 }
0x2652   : > { %v3450_v45 = vadd.f32 %v3449_v10, %v3438_v9 }
0x2653   : > { %v3459_v31 = vpop.permute.xlu1 %3458 }
0x2654   : > { %v3461_v49 = vmul.f32 %v3459_v31, %v4988_v63 }
0x2656   : > { %v3462_v40 = vadd.f32 %v3461_v49, %v3450_v45 }
0x2658   : > { %v3474_v8 = vadd.f32 %v3473_v19, %v3462_v40 }
0x265a   : > { %v3482_v22 = vmul.f32 %v3480_v59, %v3474_v8 }
0x265c   : > { %3487 = vrot.lane.b32.xlu1 %v3482_v22, %s4111_s19 }
0x26ce   : > { %v3488_v62 = vpop.permute.xlu1 %3487 }
0x26cf   : > { %3764 = vmatmul.msk.f32.vlgmr.msrb.gmra.mxu0 %vm690_vm7, %v3488_v62 }
0x274c   : > { %v3508_v44 = vpop.f32.mrf.mxu0 }
0x274d   : > { %v3509_v63 = vadd.f32 %v3795_v12, %v3508_v44 }
0x274f   : > { %3512 = vst.msk [vmem:[%s543_s16] sm:$0xff] %vm3511_vm14, %v3509_v63 }
0x2750 PF: > { %s30_s25 = sadd.s32 1, %s4104_s25  }
0x2751   : > { %p27_p5 = scmp.ge.s32.totalorder %s30_s25, 5  }
0x2753   :  { %29 = sbr.rel (!%p27_p5) target bundleno = 7 (0x7), region = 121 }

</bundles_post_ra>
